<compile_context>
chip_gen: v5e
topology: v5e:2x2
jax: 0.10.0
libtpu: 0.0.40
codegen_flags: <defaults>
</compile_context>

<pallas_src>
import math
from functools import partial

import jax
import jax.numpy as jnp
from jax.experimental import pallas as pl
from jax.experimental.pallas import tpu as pltpu


D_MODEL = 256
LN_EPS = 1e-5   # PyTorch LayerNorm default


def _round_up(n, m):
    return ((n + m - 1) // m) * m


def _pad_to(a, target, axis):
    pad = target - a.shape[axis]
    if pad <= 0:
        return a
    widths = [(0, 0)] * a.ndim
    widths[axis] = (0, pad)
    return jnp.pad(a, widths)


# --------------------------------------------------------------------------
# Fused Pallas kernel: whole forward pass in one invocation
# --------------------------------------------------------------------------
def _layernorm(y, gamma, beta):
    # One-pass statistics: var = E[y^2] - mean^2 (biased, matches PyTorch).
    mean = jnp.mean(y, axis=-1, keepdims=True)
    msq = jnp.mean(y * y, axis=-1, keepdims=True)
    var = msq - mean * mean
    return (y - mean) * jax.lax.rsqrt(var + LN_EPS) * gamma + beta


def _generator_kernel(z_ref, in_w_ref, in_b_ref,
                      wqkv_ref, bqkv_ref, wo_ref, bo_ref,
                      ln1g_ref, ln1b_ref,
                      w1_ref, bf1_ref, w2_ref, bf2_ref,
                      ln2g_ref, ln2b_ref,
                      out_w_ref, out_b_ref,
                      o_ref,
                      *, num_layers, num_heads, batch, seq):
    D = D_MODEL
    H = num_heads
    hd = D // H
    M = batch * seq
    bf16 = jnp.bfloat16

    # ---- input projection: (M, K_pad) @ (K_pad, D) -> f32 activation slab ----
    x = jnp.dot(z_ref[...].astype(bf16), in_w_ref[...],
                preferred_element_type=jnp.float32) + in_b_ref[...]

    # Static unroll over layers; all per-layer weight slabs are VMEM-resident and
    # indexed with a static leading index, so the activation stays in vregs/VMEM.
    for l in range(num_layers):
        # ---- QKV projection (Q weights & bias pre-scaled by 1/sqrt(hd)) ----
        qkv = jnp.dot(x.astype(bf16), wqkv_ref[l],
                      preferred_element_type=jnp.float32) + bqkv_ref[l]
        qkv = qkv.astype(bf16)

        # ---- head split: static lane slices -> one leading (H*B) group axis ----
        # group index g = h*B + b ; rows within a group are that batch's S tokens.
        q = jnp.stack([qkv[:, h * hd:(h + 1) * hd] for h in range(H)],
                      axis=0).reshape(H * batch, seq, hd)
        k = jnp.stack([qkv[:, D + h * hd:D + (h + 1) * hd] for h in range(H)],
                      axis=0).reshape(H * batch, seq, hd)
        v = jnp.stack([qkv[:, 2 * D + h * hd:2 * D + (h + 1) * hd] for h in range(H)],
                      axis=0).reshape(H * batch, seq, hd)

        # ---- attention, batched over (head, batch) in a single pair of einsums ----
        s = jnp.einsum('gqd,gkd->gqk', q, k,
                       preferred_element_type=jnp.float32)          # (H*B, S, S) f32
        m = jnp.max(s, axis=-1, keepdims=True)
        p = jnp.exp(s - m)
        p = p * pl.reciprocal(jnp.sum(p, axis=-1, keepdims=True), approx=True)
        ctx = jnp.einsum('gqk,gkd->gqd', p.astype(bf16), v,
                         preferred_element_type=jnp.float32)         # (H*B, S, hd)

        # ---- merge heads back into a lane-dense (M, D) slab before out-proj ----
        ctx = ctx.astype(bf16).reshape(H, M, hd)
        attn = jnp.concatenate([ctx[h] for h in range(H)], axis=-1)  # (M, D) bf16

        attn = jnp.dot(attn, wo_ref[l],
                       preferred_element_type=jnp.float32) + bo_ref[l]

        # ---- add & norm 1 (post-norm, eps=1e-5) ----
        y = _layernorm(x + attn, ln1g_ref[l], ln1b_ref[l])

        # ---- feed-forward (hidden width zero-padded to 128 lanes; padding inert) ----
        hdn = jnp.dot(y.astype(bf16), w1_ref[l],
                      preferred_element_type=jnp.float32) + bf1_ref[l]
        hdn = jnp.maximum(hdn, 0.0)
        f = jnp.dot(hdn.astype(bf16), w2_ref[l],
                    preferred_element_type=jnp.float32) + bf2_ref[l]

        # ---- add & norm 2 ----
        x = _layernorm(y + f, ln2g_ref[l], ln2b_ref[l])

    # ---- output projection (classes lane-padded to 128; sliced off outside) ----
    logits = jnp.dot(x.astype(bf16), out_w_ref[...],
                     preferred_element_type=jnp.float32) + out_b_ref[...]
    o_ref[...] = logits.astype(o_ref.dtype)


# --------------------------------------------------------------------------
# Wrapper: one pallas_call for the whole network
# --------------------------------------------------------------------------
def generator_forward(z, params, num_heads, num_classes):
    # z: (B, S, input_dim)
    B, S, in_dim = z.shape
    M = B * S
    K_pad = params["in_w_t"].shape[0]
    L = params["in_proj_w_t"].shape[0]
    NCp = params["out_w_t"].shape[1]

    z2d = z.reshape(M, in_dim).astype(jnp.float32)
    if K_pad > in_dim:
        z2d = jnp.pad(z2d, ((0, 0), (0, K_pad - in_dim)))   # lane-dense K, inert

    args = (z2d,
            params["in_w_t"], params["in_b"],
            params["in_proj_w_t"], params["in_proj_b"],
            params["out_proj_w_t"], params["out_proj_b"],
            params["ln1_g"], params["ln1_b"],
            params["lin1_w_t"], params["lin1_b"],
            params["lin2_w_t"], params["lin2_b"],
            params["ln2_g"], params["ln2_b"],
            params["out_w_t"], params["out_b"])

    vmem_spec = pl.BlockSpec(memory_space=pltpu.MemorySpace.VMEM)
    out2d = pl.pallas_call(
        partial(_generator_kernel, num_layers=L, num_heads=num_heads,
                batch=B, seq=S),
        out_shape=jax.ShapeDtypeStruct((M, NCp), jnp.float32),
        in_specs=[vmem_spec] * len(args),
        out_specs=vmem_spec,
    )(*args)

    return out2d[:, :num_classes].reshape(B, S, num_classes)


# --------------------------------------------------------------------------
# Parameter construction / kernel-ready preparation
# --------------------------------------------------------------------------
def init_raw_params(key, input_dim, dim_feedforward, num_layers, num_classes):
    """PyTorch-shaped (transposed) parameters, f32."""
    def nrm(k, shape, scale=0.02):
        return (scale * jax.random.normal(k, shape)).astype(jnp.float32)

    keys = jax.random.split(key, 4 + num_layers)
    params = {
        "in_w_t": nrm(keys[0], (input_dim, D_MODEL)),     # Linear(input_dim, 256).W^T
        "in_b": jnp.zeros((D_MODEL,), jnp.float32),
        "out_w_t": nrm(keys[1], (D_MODEL, num_classes)),  # Linear(256, num_classes).W^T
        "out_b": jnp.zeros((num_classes,), jnp.float32),
        "layers": [],
    }
    for l in range(num_layers):
        lk = jax.random.split(keys[4 + l], 4)
        params["layers"].append({
            "in_proj_w_t": nrm(lk[0], (D_MODEL, 3 * D_MODEL)),
            "in_proj_b": jnp.zeros((3 * D_MODEL,), jnp.float32),
            "out_proj_w_t": nrm(lk[1], (D_MODEL, D_MODEL)),
            "out_proj_b": jnp.zeros((D_MODEL,), jnp.float32),
            "lin1_w_t": nrm(lk[2], (D_MODEL, dim_feedforward)),
            "lin1_b": jnp.zeros((dim_feedforward,), jnp.float32),
            "lin2_w_t": nrm(lk[3], (dim_feedforward, D_MODEL)),
            "lin2_b": jnp.zeros((D_MODEL,), jnp.float32),
            "ln1_g": jnp.ones((D_MODEL,), jnp.float32),
            "ln1_b": jnp.zeros((D_MODEL,), jnp.float32),
            "ln2_g": jnp.ones((D_MODEL,), jnp.float32),
            "ln2_b": jnp.zeros((D_MODEL,), jnp.float32),
        })
    return params


def prepare_params(raw, num_heads):
    """Kernel-ready params:
       - fold 1/sqrt(head_dim) into the Q slice of in_proj,
       - zero-pad narrow dims (input_dim / dim_feedforward / num_classes) to 128 lanes,
       - stack per-layer tensors along a leading L axis (single fused kernel),
       - cast matmul weight slabs to bf16 (biases / LN affines stay f32)."""
    bf16 = jnp.bfloat16
    scale = 1.0 / math.sqrt(D_MODEL // num_heads)

    in_dim = raw["in_w_t"].shape[0]
    k_pad = _round_up(in_dim, 128)
    nc = raw["out_w_t"].shape[1]
    nc_pad = _round_up(nc, 128)
    ff = raw["layers"][0]["lin1_w_t"].shape[1]
    ff_pad = _round_up(ff, 128)

    def stack(key):
        return jnp.stack([lp[key] for lp in raw["layers"]], axis=0)

    wqkv = jnp.stack([lp["in_proj_w_t"].at[:, :D_MODEL].multiply(scale)
                      for lp in raw["layers"]], axis=0)            # (L, D, 3D)
    bqkv = jnp.stack([lp["in_proj_b"].at[:D_MODEL].multiply(scale)
                      for lp in raw["layers"]], axis=0)            # (L, 3D)

    return {
        "in_w_t": _pad_to(raw["in_w_t"], k_pad, axis=0).astype(bf16),        # (Kp, D)
        "in_b": raw["in_b"].reshape(1, -1),                                   # (1, D)
        "out_w_t": _pad_to(raw["out_w_t"], nc_pad, axis=1).astype(bf16),      # (D, NCp)
        "out_b": _pad_to(raw["out_b"], nc_pad, axis=0).reshape(1, -1),        # (1, NCp)
        "in_proj_w_t": wqkv.astype(bf16),                                     # (L, D, 3D)
        "in_proj_b": bqkv[:, None, :],                                        # (L, 1, 3D)
        "out_proj_w_t": stack("out_proj_w_t").astype(bf16),                   # (L, D, D)
        "out_proj_b": stack("out_proj_b")[:, None, :],                        # (L, 1, D)
        "ln1_g": stack("ln1_g")[:, None, :],                                  # (L, 1, D)
        "ln1_b": stack("ln1_b")[:, None, :],
        "lin1_w_t": _pad_to(stack("lin1_w_t"), ff_pad, axis=2).astype(bf16),  # (L, D, Fp)
        "lin1_b": _pad_to(stack("lin1_b"), ff_pad, axis=1)[:, None, :],       # (L, 1, Fp)
        "lin2_w_t": _pad_to(stack("lin2_w_t"), ff_pad, axis=1).astype(bf16),  # (L, Fp, D)
        "lin2_b": stack("lin2_b")[:, None, :],                                # (L, 1, D)
        "ln2_g": stack("ln2_g")[:, None, :],
        "ln2_b": stack("ln2_b")[:, None, :],
    }


if __name__ == "__main__":
    # Small shapes consistent with the module.
    input_dim = 32
    heads_num = 4
    dim_feedforward = 64
    num_layers = 2
    num_classes = 16
    B, S = 2, 8

    root = jax.random.PRNGKey(0)
    k_params, k_input = jax.random.split(root)
    raw = init_raw_params(k_params, input_dim, dim_feedforward, num_layers, num_classes)
    params = prepare_params(raw, heads_num)
    z = jax.random.normal(k_input, (B, S, input_dim), dtype=jnp.float32)

    out = generator_forward(z, params, heads_num, num_classes)
    out = jax.block_until_ready(out)
    assert out.shape == (B, S, num_classes), out.shape
    assert bool(jnp.all(jnp.isfinite(out)))
    print("KERNEL_OK")
</pallas_src>

<mosaic_0001>
module attributes {stable_mosaic.version = 11 : i64} {
  func.func @_generator_kernel(%arg0: memref<16x128xf32, #tpu.memory_space<vmem>>, %arg1: memref<128x256xbf16, #tpu.memory_space<vmem>>, %arg2: memref<1x256xf32, #tpu.memory_space<vmem>>, %arg3: memref<2x256x768xbf16, #tpu.memory_space<vmem>>, %arg4: memref<2x1x768xf32, #tpu.memory_space<vmem>>, %arg5: memref<2x256x256xbf16, #tpu.memory_space<vmem>>, %arg6: memref<2x1x256xf32, #tpu.memory_space<vmem>>, %arg7: memref<2x1x256xf32, #tpu.memory_space<vmem>>, %arg8: memref<2x1x256xf32, #tpu.memory_space<vmem>>, %arg9: memref<2x256x128xbf16, #tpu.memory_space<vmem>>, %arg10: memref<2x1x128xf32, #tpu.memory_space<vmem>>, %arg11: memref<2x128x256xbf16, #tpu.memory_space<vmem>>, %arg12: memref<2x1x256xf32, #tpu.memory_space<vmem>>, %arg13: memref<2x1x256xf32, #tpu.memory_space<vmem>>, %arg14: memref<2x1x256xf32, #tpu.memory_space<vmem>>, %arg15: memref<256x128xbf16, #tpu.memory_space<vmem>>, %arg16: memref<1x128xf32, #tpu.memory_space<vmem>>, %arg17: memref<16x128xf32, #tpu.memory_space<vmem>>) attributes {dimension_semantics = [], scalar_prefetch = 0 : i64, scratch_operands = 0 : i64, tpu.core_type = #tpu.core_type<tc>} {
    %c0 = arith.constant 0 : index
    %c0_0 = arith.constant 0 : index
    %0 = vector.load %arg0[%c0, %c0_0] : memref<16x128xf32, #tpu.memory_space<vmem>>, vector<16x128xf32>
    %1 = arith.truncf %0 : vector<16x128xf32> to vector<16x128xbf16>
    %c0_1 = arith.constant 0 : index
    %c0_2 = arith.constant 0 : index
    %2 = vector.load %arg1[%c0_1, %c0_2] : memref<128x256xbf16, #tpu.memory_space<vmem>>, vector<128x256xbf16>
    %cst = arith.constant dense<0.000000e+00> : vector<16x256xf32>
    %3 = tpu.matmul %1, %2, %cst {dimension_numbers = #tpu.dot_dimension_numbers<[1], [0], [0], [1], [0, 0, 1, 1], [], []>} : vector<16x128xbf16>, vector<128x256xbf16>, vector<16x256xf32> -> vector<16x256xf32>
    %c0_3 = arith.constant 0 : index
    %c0_4 = arith.constant 0 : index
    %4 = vector.load %arg2[%c0_3, %c0_4] : memref<1x256xf32, #tpu.memory_space<vmem>>, vector<1x256xf32>
    %5 = vector.broadcast %4 : vector<1x256xf32> to vector<16x256xf32>
    %6 = arith.addf %3, %5 : vector<16x256xf32>
    %7 = arith.truncf %6 : vector<16x256xf32> to vector<16x256xbf16>
    %c0_5 = arith.constant 0 : index
    %c0_6 = arith.constant 0 : index
    %c0_7 = arith.constant 0 : index
    %8 = vector.load %arg3[%c0_5, %c0_6, %c0_7] : memref<2x256x768xbf16, #tpu.memory_space<vmem>>, vector<1x256x768xbf16>
    %9 = vector.shape_cast %8 : vector<1x256x768xbf16> to vector<256x768xbf16>
    %cst_8 = arith.constant dense<0.000000e+00> : vector<16x768xf32>
    %10 = tpu.matmul %7, %9, %cst_8 {dimension_numbers = #tpu.dot_dimension_numbers<[1], [0], [0], [1], [0, 0, 1, 1], [], []>} : vector<16x256xbf16>, vector<256x768xbf16>, vector<16x768xf32> -> vector<16x768xf32>
    %c0_9 = arith.constant 0 : index
    %c0_10 = arith.constant 0 : index
    %c0_11 = arith.constant 0 : index
    %11 = vector.load %arg4[%c0_9, %c0_10, %c0_11] : memref<2x1x768xf32, #tpu.memory_space<vmem>>, vector<1x1x768xf32>
    %12 = vector.shape_cast %11 : vector<1x1x768xf32> to vector<1x768xf32>
    %13 = vector.broadcast %12 : vector<1x768xf32> to vector<16x768xf32>
    %14 = arith.addf %10, %13 : vector<16x768xf32>
    %15 = arith.truncf %14 : vector<16x768xf32> to vector<16x768xbf16>
    %16 = vector.extract_strided_slice %15 {offsets = [0, 0], sizes = [16, 64], strides = [1, 1]} : vector<16x768xbf16> to vector<16x64xbf16>
    %17 = vector.extract_strided_slice %15 {offsets = [0, 64], sizes = [16, 64], strides = [1, 1]} : vector<16x768xbf16> to vector<16x64xbf16>
    %18 = vector.extract_strided_slice %15 {offsets = [0, 128], sizes = [16, 64], strides = [1, 1]} : vector<16x768xbf16> to vector<16x64xbf16>
    %19 = vector.extract_strided_slice %15 {offsets = [0, 192], sizes = [16, 64], strides = [1, 1]} : vector<16x768xbf16> to vector<16x64xbf16>
    %20 = vector.shape_cast %16 : vector<16x64xbf16> to vector<1x16x64xbf16>
    %21 = vector.shape_cast %17 : vector<16x64xbf16> to vector<1x16x64xbf16>
    %22 = vector.shape_cast %18 : vector<16x64xbf16> to vector<1x16x64xbf16>
    %23 = vector.shape_cast %19 : vector<16x64xbf16> to vector<1x16x64xbf16>
    %24 = tpu.concatenate %20, %21, %22, %23 in 0 : vector<1x16x64xbf16>, vector<1x16x64xbf16>, vector<1x16x64xbf16>, vector<1x16x64xbf16> -> vector<4x16x64xbf16>
    %25 = vector.shape_cast %24 : vector<4x16x64xbf16> to vector<8x8x64xbf16>
    %26 = vector.extract_strided_slice %15 {offsets = [0, 256], sizes = [16, 64], strides = [1, 1]} : vector<16x768xbf16> to vector<16x64xbf16>
    %27 = vector.extract_strided_slice %15 {offsets = [0, 320], sizes = [16, 64], strides = [1, 1]} : vector<16x768xbf16> to vector<16x64xbf16>
    %28 = vector.extract_strided_slice %15 {offsets = [0, 384], sizes = [16, 64], strides = [1, 1]} : vector<16x768xbf16> to vector<16x64xbf16>
    %29 = vector.extract_strided_slice %15 {offsets = [0, 448], sizes = [16, 64], strides = [1, 1]} : vector<16x768xbf16> to vector<16x64xbf16>
    %30 = vector.shape_cast %26 : vector<16x64xbf16> to vector<1x16x64xbf16>
    %31 = vector.shape_cast %27 : vector<16x64xbf16> to vector<1x16x64xbf16>
    %32 = vector.shape_cast %28 : vector<16x64xbf16> to vector<1x16x64xbf16>
    %33 = vector.shape_cast %29 : vector<16x64xbf16> to vector<1x16x64xbf16>
    %34 = tpu.concatenate %30, %31, %32, %33 in 0 : vector<1x16x64xbf16>, vector<1x16x64xbf16>, vector<1x16x64xbf16>, vector<1x16x64xbf16> -> vector<4x16x64xbf16>
    %35 = vector.shape_cast %34 : vector<4x16x64xbf16> to vector<8x8x64xbf16>
    %36 = vector.extract_strided_slice %15 {offsets = [0, 512], sizes = [16, 64], strides = [1, 1]} : vector<16x768xbf16> to vector<16x64xbf16>
    %37 = vector.extract_strided_slice %15 {offsets = [0, 576], sizes = [16, 64], strides = [1, 1]} : vector<16x768xbf16> to vector<16x64xbf16>
    %38 = vector.extract_strided_slice %15 {offsets = [0, 640], sizes = [16, 64], strides = [1, 1]} : vector<16x768xbf16> to vector<16x64xbf16>
    %39 = vector.extract_strided_slice %15 {offsets = [0, 704], sizes = [16, 64], strides = [1, 1]} : vector<16x768xbf16> to vector<16x64xbf16>
    %40 = vector.shape_cast %36 : vector<16x64xbf16> to vector<1x16x64xbf16>
    %41 = vector.shape_cast %37 : vector<16x64xbf16> to vector<1x16x64xbf16>
    %42 = vector.shape_cast %38 : vector<16x64xbf16> to vector<1x16x64xbf16>
    %43 = vector.shape_cast %39 : vector<16x64xbf16> to vector<1x16x64xbf16>
    %44 = tpu.concatenate %40, %41, %42, %43 in 0 : vector<1x16x64xbf16>, vector<1x16x64xbf16>, vector<1x16x64xbf16>, vector<1x16x64xbf16> -> vector<4x16x64xbf16>
    %45 = vector.shape_cast %44 : vector<4x16x64xbf16> to vector<8x8x64xbf16>
    "tpu.trace_start"() <{level = 10 : i32, message = "gqd,gkd->gqk"}> : () -> ()
    %cst_12 = arith.constant dense<0.000000e+00> : vector<8x8x8xf32>
    %46 = tpu.matmul %25, %35, %cst_12 {dimension_numbers = #tpu.dot_dimension_numbers<[2], [2], [1], [1], [0, 0, 0, 1, 1, 1], [0], [0]>} : vector<8x8x64xbf16>, vector<8x8x64xbf16>, vector<8x8x8xf32> -> vector<8x8x8xf32>
    "tpu.trace_stop"() : () -> ()
    %cst_13 = arith.constant dense<0xFF800000> : vector<8x8xf32>
    %47 = vector.multi_reduction <maximumf>, %46, %cst_13 [2] : vector<8x8x8xf32> to vector<8x8xf32>
    %48 = vector.shape_cast %47 : vector<8x8xf32> to vector<8x8x1xf32>
    %49 = vector.broadcast %48 : vector<8x8x1xf32> to vector<8x8x8xf32>
    %50 = arith.subf %46, %49 : vector<8x8x8xf32>
    %51 = math.exp %50 : vector<8x8x8xf32>
    %cst_14 = arith.constant dense<0.000000e+00> : vector<8x8xf32>
    %52 = vector.multi_reduction <add>, %51, %cst_14 [2] : vector<8x8x8xf32> to vector<8x8xf32>
    %53 = vector.shape_cast %52 : vector<8x8xf32> to vector<8x8x1xf32>
    %54 = tpu.reciprocal %53 {approx = true} : vector<8x8x1xf32> -> vector<8x8x1xf32>
    %55 = vector.broadcast %54 : vector<8x8x1xf32> to vector<8x8x8xf32>
    %56 = arith.mulf %51, %55 : vector<8x8x8xf32>
    %57 = arith.truncf %56 : vector<8x8x8xf32> to vector<8x8x8xbf16>
    "tpu.trace_start"() <{level = 10 : i32, message = "gqk,gkd->gqd"}> : () -> ()
    %cst_15 = arith.constant dense<0.000000e+00> : vector<8x8x64xf32>
    %58 = tpu.matmul %57, %45, %cst_15 {dimension_numbers = #tpu.dot_dimension_numbers<[2], [1], [1], [2], [0, 0, 0, 1, 1, 2], [0], [0]>} : vector<8x8x8xbf16>, vector<8x8x64xbf16>, vector<8x8x64xf32> -> vector<8x8x64xf32>
    "tpu.trace_stop"() : () -> ()
    %59 = arith.truncf %58 : vector<8x8x64xf32> to vector<8x8x64xbf16>
    %60 = vector.shape_cast %59 : vector<8x8x64xbf16> to vector<4x16x64xbf16>
    %61 = vector.extract_strided_slice %60 {offsets = [0, 0, 0], sizes = [1, 16, 64], strides = [1, 1, 1]} : vector<4x16x64xbf16> to vector<1x16x64xbf16>
    %62 = vector.shape_cast %61 : vector<1x16x64xbf16> to vector<16x64xbf16>
    %63 = vector.extract_strided_slice %60 {offsets = [1, 0, 0], sizes = [1, 16, 64], strides = [1, 1, 1]} : vector<4x16x64xbf16> to vector<1x16x64xbf16>
    %64 = vector.shape_cast %63 : vector<1x16x64xbf16> to vector<16x64xbf16>
    %65 = vector.extract_strided_slice %60 {offsets = [2, 0, 0], sizes = [1, 16, 64], strides = [1, 1, 1]} : vector<4x16x64xbf16> to vector<1x16x64xbf16>
    %66 = vector.shape_cast %65 : vector<1x16x64xbf16> to vector<16x64xbf16>
    %67 = vector.extract_strided_slice %60 {offsets = [3, 0, 0], sizes = [1, 16, 64], strides = [1, 1, 1]} : vector<4x16x64xbf16> to vector<1x16x64xbf16>
    %68 = vector.shape_cast %67 : vector<1x16x64xbf16> to vector<16x64xbf16>
    %69 = tpu.concatenate %62, %64, %66, %68 in 1 : vector<16x64xbf16>, vector<16x64xbf16>, vector<16x64xbf16>, vector<16x64xbf16> -> vector<16x256xbf16>
    %c0_16 = arith.constant 0 : index
    %c0_17 = arith.constant 0 : index
    %c0_18 = arith.constant 0 : index
    %70 = vector.load %arg5[%c0_16, %c0_17, %c0_18] : memref<2x256x256xbf16, #tpu.memory_space<vmem>>, vector<1x256x256xbf16>
    %71 = vector.shape_cast %70 : vector<1x256x256xbf16> to vector<256x256xbf16>
    %cst_19 = arith.constant dense<0.000000e+00> : vector<16x256xf32>
    %72 = tpu.matmul %69, %71, %cst_19 {dimension_numbers = #tpu.dot_dimension_numbers<[1], [0], [0], [1], [0, 0, 1, 1], [], []>} : vector<16x256xbf16>, vector<256x256xbf16>, vector<16x256xf32> -> vector<16x256xf32>
    %c0_20 = arith.constant 0 : index
    %c0_21 = arith.constant 0 : index
    %c0_22 = arith.constant 0 : index
    %73 = vector.load %arg6[%c0_20, %c0_21, %c0_22] : memref<2x1x256xf32, #tpu.memory_space<vmem>>, vector<1x1x256xf32>
    %74 = vector.shape_cast %73 : vector<1x1x256xf32> to vector<1x256xf32>
    %75 = vector.broadcast %74 : vector<1x256xf32> to vector<16x256xf32>
    %76 = arith.addf %72, %75 : vector<16x256xf32>
    %77 = arith.addf %6, %76 : vector<16x256xf32>
    %c0_23 = arith.constant 0 : index
    %c0_24 = arith.constant 0 : index
    %c0_25 = arith.constant 0 : index
    %78 = vector.load %arg7[%c0_23, %c0_24, %c0_25] : memref<2x1x256xf32, #tpu.memory_space<vmem>>, vector<1x1x256xf32>
    %79 = vector.shape_cast %78 : vector<1x1x256xf32> to vector<1x256xf32>
    %c0_26 = arith.constant 0 : index
    %c0_27 = arith.constant 0 : index
    %c0_28 = arith.constant 0 : index
    %80 = vector.load %arg8[%c0_26, %c0_27, %c0_28] : memref<2x1x256xf32, #tpu.memory_space<vmem>>, vector<1x1x256xf32>
    %81 = vector.shape_cast %80 : vector<1x1x256xf32> to vector<1x256xf32>
    %cst_29 = arith.constant dense<0.000000e+00> : vector<16xf32>
    %82 = vector.multi_reduction <add>, %77, %cst_29 [1] : vector<16x256xf32> to vector<16xf32>
    %83 = vector.shape_cast %82 : vector<16xf32> to vector<16x1xf32>
    %cst_30 = arith.constant 2.560000e+02 : f32
    %84 = vector.broadcast %cst_30 : f32 to vector<16x1xf32>
    %85 = arith.divf %83, %84 : vector<16x1xf32>
    %86 = arith.mulf %77, %77 : vector<16x256xf32>
    %cst_31 = arith.constant dense<0.000000e+00> : vector<16xf32>
    %87 = vector.multi_reduction <add>, %86, %cst_31 [1] : vector<16x256xf32> to vector<16xf32>
    %88 = vector.shape_cast %87 : vector<16xf32> to vector<16x1xf32>
    %cst_32 = arith.constant 2.560000e+02 : f32
    %89 = vector.broadcast %cst_32 : f32 to vector<16x1xf32>
    %90 = arith.divf %88, %89 : vector<16x1xf32>
    %91 = arith.mulf %85, %85 : vector<16x1xf32>
    %92 = arith.subf %90, %91 : vector<16x1xf32>
    %93 = vector.broadcast %85 : vector<16x1xf32> to vector<16x256xf32>
    %94 = arith.subf %77, %93 : vector<16x256xf32>
    %cst_33 = arith.constant 9.99999974E-6 : f32
    %95 = vector.broadcast %cst_33 : f32 to vector<16x1xf32>
    %96 = arith.addf %92, %95 : vector<16x1xf32>
    %97 = math.rsqrt %96 : vector<16x1xf32>
    %98 = vector.broadcast %97 : vector<16x1xf32> to vector<16x256xf32>
    %99 = arith.mulf %94, %98 : vector<16x256xf32>
    %100 = vector.broadcast %79 : vector<1x256xf32> to vector<16x256xf32>
    %101 = arith.mulf %99, %100 : vector<16x256xf32>
    %102 = vector.broadcast %81 : vector<1x256xf32> to vector<16x256xf32>
    %103 = arith.addf %101, %102 : vector<16x256xf32>
    %104 = arith.truncf %103 : vector<16x256xf32> to vector<16x256xbf16>
    %c0_34 = arith.constant 0 : index
    %c0_35 = arith.constant 0 : index
    %c0_36 = arith.constant 0 : index
    %105 = vector.load %arg9[%c0_34, %c0_35, %c0_36] : memref<2x256x128xbf16, #tpu.memory_space<vmem>>, vector<1x256x128xbf16>
    %106 = vector.shape_cast %105 : vector<1x256x128xbf16> to vector<256x128xbf16>
    %cst_37 = arith.constant dense<0.000000e+00> : vector<16x128xf32>
    %107 = tpu.matmul %104, %106, %cst_37 {dimension_numbers = #tpu.dot_dimension_numbers<[1], [0], [0], [1], [0, 0, 1, 1], [], []>} : vector<16x256xbf16>, vector<256x128xbf16>, vector<16x128xf32> -> vector<16x128xf32>
    %c0_38 = arith.constant 0 : index
    %c0_39 = arith.constant 0 : index
    %c0_40 = arith.constant 0 : index
    %108 = vector.load %arg10[%c0_38, %c0_39, %c0_40] : memref<2x1x128xf32, #tpu.memory_space<vmem>>, vector<1x1x128xf32>
    %109 = vector.shape_cast %108 : vector<1x1x128xf32> to vector<1x128xf32>
    %110 = vector.broadcast %109 : vector<1x128xf32> to vector<16x128xf32>
    %111 = arith.addf %107, %110 : vector<16x128xf32>
    %cst_41 = arith.constant 0.000000e+00 : f32
    %112 = vector.broadcast %cst_41 : f32 to vector<16x128xf32>
    %113 = arith.maximumf %111, %112 : vector<16x128xf32>
    %114 = arith.truncf %113 : vector<16x128xf32> to vector<16x128xbf16>
    %c0_42 = arith.constant 0 : index
    %c0_43 = arith.constant 0 : index
    %c0_44 = arith.constant 0 : index
    %115 = vector.load %arg11[%c0_42, %c0_43, %c0_44] : memref<2x128x256xbf16, #tpu.memory_space<vmem>>, vector<1x128x256xbf16>
    %116 = vector.shape_cast %115 : vector<1x128x256xbf16> to vector<128x256xbf16>
    %cst_45 = arith.constant dense<0.000000e+00> : vector<16x256xf32>
    %117 = tpu.matmul %114, %116, %cst_45 {dimension_numbers = #tpu.dot_dimension_numbers<[1], [0], [0], [1], [0, 0, 1, 1], [], []>} : vector<16x128xbf16>, vector<128x256xbf16>, vector<16x256xf32> -> vector<16x256xf32>
    %c0_46 = arith.constant 0 : index
    %c0_47 = arith.constant 0 : index
    %c0_48 = arith.constant 0 : index
    %118 = vector.load %arg12[%c0_46, %c0_47, %c0_48] : memref<2x1x256xf32, #tpu.memory_space<vmem>>, vector<1x1x256xf32>
    %119 = vector.shape_cast %118 : vector<1x1x256xf32> to vector<1x256xf32>
    %120 = vector.broadcast %119 : vector<1x256xf32> to vector<16x256xf32>
    %121 = arith.addf %117, %120 : vector<16x256xf32>
    %122 = arith.addf %103, %121 : vector<16x256xf32>
    %c0_49 = arith.constant 0 : index
    %c0_50 = arith.constant 0 : index
    %c0_51 = arith.constant 0 : index
    %123 = vector.load %arg13[%c0_49, %c0_50, %c0_51] : memref<2x1x256xf32, #tpu.memory_space<vmem>>, vector<1x1x256xf32>
    %124 = vector.shape_cast %123 : vector<1x1x256xf32> to vector<1x256xf32>
    %c0_52 = arith.constant 0 : index
    %c0_53 = arith.constant 0 : index
    %c0_54 = arith.constant 0 : index
    %125 = vector.load %arg14[%c0_52, %c0_53, %c0_54] : memref<2x1x256xf32, #tpu.memory_space<vmem>>, vector<1x1x256xf32>
    %126 = vector.shape_cast %125 : vector<1x1x256xf32> to vector<1x256xf32>
    %cst_55 = arith.constant dense<0.000000e+00> : vector<16xf32>
    %127 = vector.multi_reduction <add>, %122, %cst_55 [1] : vector<16x256xf32> to vector<16xf32>
    %128 = vector.shape_cast %127 : vector<16xf32> to vector<16x1xf32>
    %cst_56 = arith.constant 2.560000e+02 : f32
    %129 = vector.broadcast %cst_56 : f32 to vector<16x1xf32>
    %130 = arith.divf %128, %129 : vector<16x1xf32>
    %131 = arith.mulf %122, %122 : vector<16x256xf32>
    %cst_57 = arith.constant dense<0.000000e+00> : vector<16xf32>
    %132 = vector.multi_reduction <add>, %131, %cst_57 [1] : vector<16x256xf32> to vector<16xf32>
    %133 = vector.shape_cast %132 : vector<16xf32> to vector<16x1xf32>
    %cst_58 = arith.constant 2.560000e+02 : f32
    %134 = vector.broadcast %cst_58 : f32 to vector<16x1xf32>
    %135 = arith.divf %133, %134 : vector<16x1xf32>
    %136 = arith.mulf %130, %130 : vector<16x1xf32>
    %137 = arith.subf %135, %136 : vector<16x1xf32>
    %138 = vector.broadcast %130 : vector<16x1xf32> to vector<16x256xf32>
    %139 = arith.subf %122, %138 : vector<16x256xf32>
    %cst_59 = arith.constant 9.99999974E-6 : f32
    %140 = vector.broadcast %cst_59 : f32 to vector<16x1xf32>
    %141 = arith.addf %137, %140 : vector<16x1xf32>
    %142 = math.rsqrt %141 : vector<16x1xf32>
    %143 = vector.broadcast %142 : vector<16x1xf32> to vector<16x256xf32>
    %144 = arith.mulf %139, %143 : vector<16x256xf32>
    %145 = vector.broadcast %124 : vector<1x256xf32> to vector<16x256xf32>
    %146 = arith.mulf %144, %145 : vector<16x256xf32>
    %147 = vector.broadcast %126 : vector<1x256xf32> to vector<16x256xf32>
    %148 = arith.addf %146, %147 : vector<16x256xf32>
    %149 = arith.truncf %148 : vector<16x256xf32> to vector<16x256xbf16>
    %c1 = arith.constant 1 : index
    %c0_60 = arith.constant 0 : index
    %c0_61 = arith.constant 0 : index
    %150 = vector.load %arg3[%c1, %c0_60, %c0_61] : memref<2x256x768xbf16, #tpu.memory_space<vmem>>, vector<1x256x768xbf16>
    %151 = vector.shape_cast %150 : vector<1x256x768xbf16> to vector<256x768xbf16>
    %cst_62 = arith.constant dense<0.000000e+00> : vector<16x768xf32>
    %152 = tpu.matmul %149, %151, %cst_62 {dimension_numbers = #tpu.dot_dimension_numbers<[1], [0], [0], [1], [0, 0, 1, 1], [], []>} : vector<16x256xbf16>, vector<256x768xbf16>, vector<16x768xf32> -> vector<16x768xf32>
    %c1_63 = arith.constant 1 : index
    %c0_64 = arith.constant 0 : index
    %c0_65 = arith.constant 0 : index
    %153 = vector.load %arg4[%c1_63, %c0_64, %c0_65] : memref<2x1x768xf32, #tpu.memory_space<vmem>>, vector<1x1x768xf32>
    %154 = vector.shape_cast %153 : vector<1x1x768xf32> to vector<1x768xf32>
    %155 = vector.broadcast %154 : vector<1x768xf32> to vector<16x768xf32>
    %156 = arith.addf %152, %155 : vector<16x768xf32>
    %157 = arith.truncf %156 : vector<16x768xf32> to vector<16x768xbf16>
    %158 = vector.extract_strided_slice %157 {offsets = [0, 0], sizes = [16, 64], strides = [1, 1]} : vector<16x768xbf16> to vector<16x64xbf16>
    %159 = vector.extract_strided_slice %157 {offsets = [0, 64], sizes = [16, 64], strides = [1, 1]} : vector<16x768xbf16> to vector<16x64xbf16>
    %160 = vector.extract_strided_slice %157 {offsets = [0, 128], sizes = [16, 64], strides = [1, 1]} : vector<16x768xbf16> to vector<16x64xbf16>
    %161 = vector.extract_strided_slice %157 {offsets = [0, 192], sizes = [16, 64], strides = [1, 1]} : vector<16x768xbf16> to vector<16x64xbf16>
    %162 = vector.shape_cast %158 : vector<16x64xbf16> to vector<1x16x64xbf16>
    %163 = vector.shape_cast %159 : vector<16x64xbf16> to vector<1x16x64xbf16>
    %164 = vector.shape_cast %160 : vector<16x64xbf16> to vector<1x16x64xbf16>
    %165 = vector.shape_cast %161 : vector<16x64xbf16> to vector<1x16x64xbf16>
    %166 = tpu.concatenate %162, %163, %164, %165 in 0 : vector<1x16x64xbf16>, vector<1x16x64xbf16>, vector<1x16x64xbf16>, vector<1x16x64xbf16> -> vector<4x16x64xbf16>
    %167 = vector.shape_cast %166 : vector<4x16x64xbf16> to vector<8x8x64xbf16>
    %168 = vector.extract_strided_slice %157 {offsets = [0, 256], sizes = [16, 64], strides = [1, 1]} : vector<16x768xbf16> to vector<16x64xbf16>
    %169 = vector.extract_strided_slice %157 {offsets = [0, 320], sizes = [16, 64], strides = [1, 1]} : vector<16x768xbf16> to vector<16x64xbf16>
    %170 = vector.extract_strided_slice %157 {offsets = [0, 384], sizes = [16, 64], strides = [1, 1]} : vector<16x768xbf16> to vector<16x64xbf16>
    %171 = vector.extract_strided_slice %157 {offsets = [0, 448], sizes = [16, 64], strides = [1, 1]} : vector<16x768xbf16> to vector<16x64xbf16>
    %172 = vector.shape_cast %168 : vector<16x64xbf16> to vector<1x16x64xbf16>
    %173 = vector.shape_cast %169 : vector<16x64xbf16> to vector<1x16x64xbf16>
    %174 = vector.shape_cast %170 : vector<16x64xbf16> to vector<1x16x64xbf16>
    %175 = vector.shape_cast %171 : vector<16x64xbf16> to vector<1x16x64xbf16>
    %176 = tpu.concatenate %172, %173, %174, %175 in 0 : vector<1x16x64xbf16>, vector<1x16x64xbf16>, vector<1x16x64xbf16>, vector<1x16x64xbf16> -> vector<4x16x64xbf16>
    %177 = vector.shape_cast %176 : vector<4x16x64xbf16> to vector<8x8x64xbf16>
    %178 = vector.extract_strided_slice %157 {offsets = [0, 512], sizes = [16, 64], strides = [1, 1]} : vector<16x768xbf16> to vector<16x64xbf16>
    %179 = vector.extract_strided_slice %157 {offsets = [0, 576], sizes = [16, 64], strides = [1, 1]} : vector<16x768xbf16> to vector<16x64xbf16>
    %180 = vector.extract_strided_slice %157 {offsets = [0, 640], sizes = [16, 64], strides = [1, 1]} : vector<16x768xbf16> to vector<16x64xbf16>
    %181 = vector.extract_strided_slice %157 {offsets = [0, 704], sizes = [16, 64], strides = [1, 1]} : vector<16x768xbf16> to vector<16x64xbf16>
    %182 = vector.shape_cast %178 : vector<16x64xbf16> to vector<1x16x64xbf16>
    %183 = vector.shape_cast %179 : vector<16x64xbf16> to vector<1x16x64xbf16>
    %184 = vector.shape_cast %180 : vector<16x64xbf16> to vector<1x16x64xbf16>
    %185 = vector.shape_cast %181 : vector<16x64xbf16> to vector<1x16x64xbf16>
    %186 = tpu.concatenate %182, %183, %184, %185 in 0 : vector<1x16x64xbf16>, vector<1x16x64xbf16>, vector<1x16x64xbf16>, vector<1x16x64xbf16> -> vector<4x16x64xbf16>
    %187 = vector.shape_cast %186 : vector<4x16x64xbf16> to vector<8x8x64xbf16>
    "tpu.trace_start"() <{level = 10 : i32, message = "gqd,gkd->gqk"}> : () -> ()
    %cst_66 = arith.constant dense<0.000000e+00> : vector<8x8x8xf32>
    %188 = tpu.matmul %167, %177, %cst_66 {dimension_numbers = #tpu.dot_dimension_numbers<[2], [2], [1], [1], [0, 0, 0, 1, 1, 1], [0], [0]>} : vector<8x8x64xbf16>, vector<8x8x64xbf16>, vector<8x8x8xf32> -> vector<8x8x8xf32>
    "tpu.trace_stop"() : () -> ()
    %cst_67 = arith.constant dense<0xFF800000> : vector<8x8xf32>
    %189 = vector.multi_reduction <maximumf>, %188, %cst_67 [2] : vector<8x8x8xf32> to vector<8x8xf32>
    %190 = vector.shape_cast %189 : vector<8x8xf32> to vector<8x8x1xf32>
    %191 = vector.broadcast %190 : vector<8x8x1xf32> to vector<8x8x8xf32>
    %192 = arith.subf %188, %191 : vector<8x8x8xf32>
    %193 = math.exp %192 : vector<8x8x8xf32>
    %cst_68 = arith.constant dense<0.000000e+00> : vector<8x8xf32>
    %194 = vector.multi_reduction <add>, %193, %cst_68 [2] : vector<8x8x8xf32> to vector<8x8xf32>
    %195 = vector.shape_cast %194 : vector<8x8xf32> to vector<8x8x1xf32>
    %196 = tpu.reciprocal %195 {approx = true} : vector<8x8x1xf32> -> vector<8x8x1xf32>
    %197 = vector.broadcast %196 : vector<8x8x1xf32> to vector<8x8x8xf32>
    %198 = arith.mulf %193, %197 : vector<8x8x8xf32>
    %199 = arith.truncf %198 : vector<8x8x8xf32> to vector<8x8x8xbf16>
    "tpu.trace_start"() <{level = 10 : i32, message = "gqk,gkd->gqd"}> : () -> ()
    %cst_69 = arith.constant dense<0.000000e+00> : vector<8x8x64xf32>
    %200 = tpu.matmul %199, %187, %cst_69 {dimension_numbers = #tpu.dot_dimension_numbers<[2], [1], [1], [2], [0, 0, 0, 1, 1, 2], [0], [0]>} : vector<8x8x8xbf16>, vector<8x8x64xbf16>, vector<8x8x64xf32> -> vector<8x8x64xf32>
    "tpu.trace_stop"() : () -> ()
    %201 = arith.truncf %200 : vector<8x8x64xf32> to vector<8x8x64xbf16>
    %202 = vector.shape_cast %201 : vector<8x8x64xbf16> to vector<4x16x64xbf16>
    %203 = vector.extract_strided_slice %202 {offsets = [0, 0, 0], sizes = [1, 16, 64], strides = [1, 1, 1]} : vector<4x16x64xbf16> to vector<1x16x64xbf16>
    %204 = vector.shape_cast %203 : vector<1x16x64xbf16> to vector<16x64xbf16>
    %205 = vector.extract_strided_slice %202 {offsets = [1, 0, 0], sizes = [1, 16, 64], strides = [1, 1, 1]} : vector<4x16x64xbf16> to vector<1x16x64xbf16>
    %206 = vector.shape_cast %205 : vector<1x16x64xbf16> to vector<16x64xbf16>
    %207 = vector.extract_strided_slice %202 {offsets = [2, 0, 0], sizes = [1, 16, 64], strides = [1, 1, 1]} : vector<4x16x64xbf16> to vector<1x16x64xbf16>
    %208 = vector.shape_cast %207 : vector<1x16x64xbf16> to vector<16x64xbf16>
    %209 = vector.extract_strided_slice %202 {offsets = [3, 0, 0], sizes = [1, 16, 64], strides = [1, 1, 1]} : vector<4x16x64xbf16> to vector<1x16x64xbf16>
    %210 = vector.shape_cast %209 : vector<1x16x64xbf16> to vector<16x64xbf16>
    %211 = tpu.concatenate %204, %206, %208, %210 in 1 : vector<16x64xbf16>, vector<16x64xbf16>, vector<16x64xbf16>, vector<16x64xbf16> -> vector<16x256xbf16>
    %c1_70 = arith.constant 1 : index
    %c0_71 = arith.constant 0 : index
    %c0_72 = arith.constant 0 : index
    %212 = vector.load %arg5[%c1_70, %c0_71, %c0_72] : memref<2x256x256xbf16, #tpu.memory_space<vmem>>, vector<1x256x256xbf16>
    %213 = vector.shape_cast %212 : vector<1x256x256xbf16> to vector<256x256xbf16>
    %cst_73 = arith.constant dense<0.000000e+00> : vector<16x256xf32>
    %214 = tpu.matmul %211, %213, %cst_73 {dimension_numbers = #tpu.dot_dimension_numbers<[1], [0], [0], [1], [0, 0, 1, 1], [], []>} : vector<16x256xbf16>, vector<256x256xbf16>, vector<16x256xf32> -> vector<16x256xf32>
    %c1_74 = arith.constant 1 : index
    %c0_75 = arith.constant 0 : index
    %c0_76 = arith.constant 0 : index
    %215 = vector.load %arg6[%c1_74, %c0_75, %c0_76] : memref<2x1x256xf32, #tpu.memory_space<vmem>>, vector<1x1x256xf32>
    %216 = vector.shape_cast %215 : vector<1x1x256xf32> to vector<1x256xf32>
    %217 = vector.broadcast %216 : vector<1x256xf32> to vector<16x256xf32>
    %218 = arith.addf %214, %217 : vector<16x256xf32>
    %219 = arith.addf %148, %218 : vector<16x256xf32>
    %c1_77 = arith.constant 1 : index
    %c0_78 = arith.constant 0 : index
    %c0_79 = arith.constant 0 : index
    %220 = vector.load %arg7[%c1_77, %c0_78, %c0_79] : memref<2x1x256xf32, #tpu.memory_space<vmem>>, vector<1x1x256xf32>
    %221 = vector.shape_cast %220 : vector<1x1x256xf32> to vector<1x256xf32>
    %c1_80 = arith.constant 1 : index
    %c0_81 = arith.constant 0 : index
    %c0_82 = arith.constant 0 : index
    %222 = vector.load %arg8[%c1_80, %c0_81, %c0_82] : memref<2x1x256xf32, #tpu.memory_space<vmem>>, vector<1x1x256xf32>
    %223 = vector.shape_cast %222 : vector<1x1x256xf32> to vector<1x256xf32>
    %cst_83 = arith.constant dense<0.000000e+00> : vector<16xf32>
    %224 = vector.multi_reduction <add>, %219, %cst_83 [1] : vector<16x256xf32> to vector<16xf32>
    %225 = vector.shape_cast %224 : vector<16xf32> to vector<16x1xf32>
    %cst_84 = arith.constant 2.560000e+02 : f32
    %226 = vector.broadcast %cst_84 : f32 to vector<16x1xf32>
    %227 = arith.divf %225, %226 : vector<16x1xf32>
    %228 = arith.mulf %219, %219 : vector<16x256xf32>
    %cst_85 = arith.constant dense<0.000000e+00> : vector<16xf32>
    %229 = vector.multi_reduction <add>, %228, %cst_85 [1] : vector<16x256xf32> to vector<16xf32>
    %230 = vector.shape_cast %229 : vector<16xf32> to vector<16x1xf32>
    %cst_86 = arith.constant 2.560000e+02 : f32
    %231 = vector.broadcast %cst_86 : f32 to vector<16x1xf32>
    %232 = arith.divf %230, %231 : vector<16x1xf32>
    %233 = arith.mulf %227, %227 : vector<16x1xf32>
    %234 = arith.subf %232, %233 : vector<16x1xf32>
    %235 = vector.broadcast %227 : vector<16x1xf32> to vector<16x256xf32>
    %236 = arith.subf %219, %235 : vector<16x256xf32>
    %cst_87 = arith.constant 9.99999974E-6 : f32
    %237 = vector.broadcast %cst_87 : f32 to vector<16x1xf32>
    %238 = arith.addf %234, %237 : vector<16x1xf32>
    %239 = math.rsqrt %238 : vector<16x1xf32>
    %240 = vector.broadcast %239 : vector<16x1xf32> to vector<16x256xf32>
    %241 = arith.mulf %236, %240 : vector<16x256xf32>
    %242 = vector.broadcast %221 : vector<1x256xf32> to vector<16x256xf32>
    %243 = arith.mulf %241, %242 : vector<16x256xf32>
    %244 = vector.broadcast %223 : vector<1x256xf32> to vector<16x256xf32>
    %245 = arith.addf %243, %244 : vector<16x256xf32>
    %246 = arith.truncf %245 : vector<16x256xf32> to vector<16x256xbf16>
    %c1_88 = arith.constant 1 : index
    %c0_89 = arith.constant 0 : index
    %c0_90 = arith.constant 0 : index
    %247 = vector.load %arg9[%c1_88, %c0_89, %c0_90] : memref<2x256x128xbf16, #tpu.memory_space<vmem>>, vector<1x256x128xbf16>
    %248 = vector.shape_cast %247 : vector<1x256x128xbf16> to vector<256x128xbf16>
    %cst_91 = arith.constant dense<0.000000e+00> : vector<16x128xf32>
    %249 = tpu.matmul %246, %248, %cst_91 {dimension_numbers = #tpu.dot_dimension_numbers<[1], [0], [0], [1], [0, 0, 1, 1], [], []>} : vector<16x256xbf16>, vector<256x128xbf16>, vector<16x128xf32> -> vector<16x128xf32>
    %c1_92 = arith.constant 1 : index
    %c0_93 = arith.constant 0 : index
    %c0_94 = arith.constant 0 : index
    %250 = vector.load %arg10[%c1_92, %c0_93, %c0_94] : memref<2x1x128xf32, #tpu.memory_space<vmem>>, vector<1x1x128xf32>
    %251 = vector.shape_cast %250 : vector<1x1x128xf32> to vector<1x128xf32>
    %252 = vector.broadcast %251 : vector<1x128xf32> to vector<16x128xf32>
    %253 = arith.addf %249, %252 : vector<16x128xf32>
    %cst_95 = arith.constant 0.000000e+00 : f32
    %254 = vector.broadcast %cst_95 : f32 to vector<16x128xf32>
    %255 = arith.maximumf %253, %254 : vector<16x128xf32>
    %256 = arith.truncf %255 : vector<16x128xf32> to vector<16x128xbf16>
    %c1_96 = arith.constant 1 : index
    %c0_97 = arith.constant 0 : index
    %c0_98 = arith.constant 0 : index
    %257 = vector.load %arg11[%c1_96, %c0_97, %c0_98] : memref<2x128x256xbf16, #tpu.memory_space<vmem>>, vector<1x128x256xbf16>
    %258 = vector.shape_cast %257 : vector<1x128x256xbf16> to vector<128x256xbf16>
    %cst_99 = arith.constant dense<0.000000e+00> : vector<16x256xf32>
    %259 = tpu.matmul %256, %258, %cst_99 {dimension_numbers = #tpu.dot_dimension_numbers<[1], [0], [0], [1], [0, 0, 1, 1], [], []>} : vector<16x128xbf16>, vector<128x256xbf16>, vector<16x256xf32> -> vector<16x256xf32>
    %c1_100 = arith.constant 1 : index
    %c0_101 = arith.constant 0 : index
    %c0_102 = arith.constant 0 : index
    %260 = vector.load %arg12[%c1_100, %c0_101, %c0_102] : memref<2x1x256xf32, #tpu.memory_space<vmem>>, vector<1x1x256xf32>
    %261 = vector.shape_cast %260 : vector<1x1x256xf32> to vector<1x256xf32>
    %262 = vector.broadcast %261 : vector<1x256xf32> to vector<16x256xf32>
    %263 = arith.addf %259, %262 : vector<16x256xf32>
    %264 = arith.addf %245, %263 : vector<16x256xf32>
    %c1_103 = arith.constant 1 : index
    %c0_104 = arith.constant 0 : index
    %c0_105 = arith.constant 0 : index
    %265 = vector.load %arg13[%c1_103, %c0_104, %c0_105] : memref<2x1x256xf32, #tpu.memory_space<vmem>>, vector<1x1x256xf32>
    %266 = vector.shape_cast %265 : vector<1x1x256xf32> to vector<1x256xf32>
    %c1_106 = arith.constant 1 : index
    %c0_107 = arith.constant 0 : index
    %c0_108 = arith.constant 0 : index
    %267 = vector.load %arg14[%c1_106, %c0_107, %c0_108] : memref<2x1x256xf32, #tpu.memory_space<vmem>>, vector<1x1x256xf32>
    %268 = vector.shape_cast %267 : vector<1x1x256xf32> to vector<1x256xf32>
    %cst_109 = arith.constant dense<0.000000e+00> : vector<16xf32>
    %269 = vector.multi_reduction <add>, %264, %cst_109 [1] : vector<16x256xf32> to vector<16xf32>
    %270 = vector.shape_cast %269 : vector<16xf32> to vector<16x1xf32>
    %cst_110 = arith.constant 2.560000e+02 : f32
    %271 = vector.broadcast %cst_110 : f32 to vector<16x1xf32>
    %272 = arith.divf %270, %271 : vector<16x1xf32>
    %273 = arith.mulf %264, %264 : vector<16x256xf32>
    %cst_111 = arith.constant dense<0.000000e+00> : vector<16xf32>
    %274 = vector.multi_reduction <add>, %273, %cst_111 [1] : vector<16x256xf32> to vector<16xf32>
    %275 = vector.shape_cast %274 : vector<16xf32> to vector<16x1xf32>
    %cst_112 = arith.constant 2.560000e+02 : f32
    %276 = vector.broadcast %cst_112 : f32 to vector<16x1xf32>
    %277 = arith.divf %275, %276 : vector<16x1xf32>
    %278 = arith.mulf %272, %272 : vector<16x1xf32>
    %279 = arith.subf %277, %278 : vector<16x1xf32>
    %280 = vector.broadcast %272 : vector<16x1xf32> to vector<16x256xf32>
    %281 = arith.subf %264, %280 : vector<16x256xf32>
    %cst_113 = arith.constant 9.99999974E-6 : f32
    %282 = vector.broadcast %cst_113 : f32 to vector<16x1xf32>
    %283 = arith.addf %279, %282 : vector<16x1xf32>
    %284 = math.rsqrt %283 : vector<16x1xf32>
    %285 = vector.broadcast %284 : vector<16x1xf32> to vector<16x256xf32>
    %286 = arith.mulf %281, %285 : vector<16x256xf32>
    %287 = vector.broadcast %266 : vector<1x256xf32> to vector<16x256xf32>
    %288 = arith.mulf %286, %287 : vector<16x256xf32>
    %289 = vector.broadcast %268 : vector<1x256xf32> to vector<16x256xf32>
    %290 = arith.addf %288, %289 : vector<16x256xf32>
    %291 = arith.truncf %290 : vector<16x256xf32> to vector<16x256xbf16>
    %c0_114 = arith.constant 0 : index
    %c0_115 = arith.constant 0 : index
    %292 = vector.load %arg15[%c0_114, %c0_115] : memref<256x128xbf16, #tpu.memory_space<vmem>>, vector<256x128xbf16>
    %cst_116 = arith.constant dense<0.000000e+00> : vector<16x128xf32>
    %293 = tpu.matmul %291, %292, %cst_116 {dimension_numbers = #tpu.dot_dimension_numbers<[1], [0], [0], [1], [0, 0, 1, 1], [], []>} : vector<16x256xbf16>, vector<256x128xbf16>, vector<16x128xf32> -> vector<16x128xf32>
    %c0_117 = arith.constant 0 : index
    %c0_118 = arith.constant 0 : index
    %294 = vector.load %arg16[%c0_117, %c0_118] : memref<1x128xf32, #tpu.memory_space<vmem>>, vector<1x128xf32>
    %295 = vector.broadcast %294 : vector<1x128xf32> to vector<16x128xf32>
    %296 = arith.addf %293, %295 : vector<16x128xf32>
    %c0_119 = arith.constant 0 : index
    %c0_120 = arith.constant 0 : index
    %297 = vector.load %arg17[%c0_119, %c0_120] : memref<16x128xf32, #tpu.memory_space<vmem>>, vector<16x128xf32>
    tpu.vector_store %arg17[%c0_119, %c0_120], %296 {strides = array<i32>} : memref<16x128xf32, #tpu.memory_space<vmem>>, vector<16x128xf32>,
    return
  }
}

</mosaic_0001>

<bundles_post_ra>
// kernel: tpu_custom_call.1
= control target key start
LH: loop header
LB: loop body
LE: loop exit
PB: predicated region body
PF: predicated region fallthrough
CT: control target
= control target key end

     0   :  { %s7428_s0 = inlined_call_operand.hbm [shape: f32[16,128], index: 0, kind: input, shape index: {}]   ;;  %s7429_s1 = inlined_call_operand.hbm [shape: bf16[128,256], index: 1, kind: input, shape index: {}]   ;;  %s7430_s2 = inlined_call_operand.hbm [shape: f32[1,256], index: 2, kind: input, shape index: {}]   ;;  %s7431_s3 = inlined_call_operand.hbm [shape: bf16[2,256,768], index: 3, kind: input, shape index: {}]   ;;  %s7432_s4 = inlined_call_operand.hbm [shape: f32[2,1,768], index: 4, kind: input, shape index: {}]   ;;  %s7433_s5 = inlined_call_operand.hbm [shape: bf16[2,256,256], index: 5, kind: input, shape index: {}]   ;;  %s7434_s6 = inlined_call_operand.vmem [shape: f32[2,1,256], index: 6, kind: input, shape index: {}]   ;;  %s7435_s7 = inlined_call_operand.hbm [shape: f32[2,1,256], index: 7, kind: input, shape index: {}]   ;;  %s7436_s8 = inlined_call_operand.hbm [shape: f32[2,1,256], index: 8, kind: input, shape index: {}]   ;;  %s7437_s9 = inlined_call_operand.hbm [shape: bf16[2,256,128], index: 9, kind: input, shape index: {}]   ;;  %s7438_s10 = inlined_call_operand.hbm [shape: f32[2,1,128], index: 10, kind: input, shape index: {}]   ;;  %s7439_s11 = inlined_call_operand.hbm [shape: bf16[2,128,256], index: 11, kind: input, shape index: {}]   ;;  %s7440_s12 = inlined_call_operand.vmem [shape: f32[2,1,256], index: 12, kind: input, shape index: {}]   ;;  %s7441_s13 = inlined_call_operand.vmem [shape: f32[2,1,256], index: 13, kind: input, shape index: {}]   ;;  %s7442_s14 = inlined_call_operand.hbm [shape: f32[2,1,256], index: 14, kind: input, shape index: {}]   ;;  %s7443_s15 = inlined_call_operand.hbm [shape: bf16[256,128], index: 15, kind: input, shape index: {}]   ;;  %s7444_s16 = inlined_call_operand.vmem [shape: f32[1,128], index: 16, kind: input, shape index: {}]   ;;  %s7445_s17 = inlined_call_operand.hbm [shape: f32[16,128], index: 17, kind: output, shape index: {}]  }
   0x1   :  { %7448 = sst [smem:[#allocation32_spill]] %s7428_s0 }
   0x2   :  { %7449 = sst [smem:[#allocation33_spill]] %s7429_s1 }
   0x3   :  { %22 = vsyncpa [#allocation3], 0 }
   0x4   :  { %23 = vsyncpa [#allocation6], 0 }
   0x5   :  { %24 = vsyncpa [#allocation9], 0 }
   0x6   :  { %25 = vsyncpa [#allocation12], 0 }
   0x7   :  { %26 = vsyncpa [#allocation15], 0 }
   0x8   :  { %27 = vsyncpa [#allocation18], 0 }
   0x9   :  { %28 = vsyncpa [#allocation21], 0 }
   0xa   :  { %29 = vsyncpa [#allocation4], 0  ;;  %s7450_s26 = sld [smem:[#allocation33_spill]]  ;;  %s6743_s28 = smov [#allocation5]  }
   0xb   :  { %s49_s29 = sshll.u32 %s6743_s28, 4  ;;  %s71_s18 = sshll.u32 %s7431_s3, 4  ;;  %s50_s29 = int_to_ptr.vmem [resolvable:$true] %s49_s29  ;;  %s72_s18 = int_to_ptr.hbm [resolvable:$true] %s71_s18 }
   0xc   :  { %s7446_s19 = smov 128   ;;  %s6745_s1 = smov 8  }
   0xd   :  { %s6746_s20 = smov [#allocation8]   ;;  %s6747_s22 = smov 384  }
   0xe   :  { %s73_s21 = sshll.u32 %s6746_s20, 4  ;;  %s6748_s23 = smov 24   ;;  %s74_s21 = int_to_ptr.vmem [resolvable:$true] %s73_s21 }
   0xf   :  { %79 = dma.hbm_to_vmem [thread:$0]  %s72_s18, 24576, %s74_s21, [#allocation9], %s6747_s22, %s6747_s22, %s6748_s23  }
  0x10   :  { %s47_s27 = sshll.u32 %s7450_s26, 4  ;;  %s97_s26 = sshll.u32 %s7433_s5, 4  ;;  %s48_s27 = int_to_ptr.hbm [resolvable:$true] %s47_s27  ;;  %s98_s26 = int_to_ptr.hbm [resolvable:$true] %s97_s26 }
  0x11   :  { %55 = dma.hbm_to_vmem [thread:$0]  %s48_s27, 2048, %s50_s29, [#allocation6], %s7446_s19, %s7446_s19, %s6745_s1  }
  0x12   :  { %s6749_s28 = smov [#allocation11]   ;;  %s125_s0 = sshll.u32 %s7436_s8, 4  ;;  %s126_s0 = int_to_ptr.hbm [resolvable:$true] %s125_s0 }
  0x13   :  { %s99_s3 = sshll.u32 %s6749_s28, 4  ;;  %s6750_s30 = smov [#allocation14]   ;;  %s100_s3 = int_to_ptr.vmem [resolvable:$true] %s99_s3 }
  0x14   :  { %105 = dma.hbm_to_vmem [thread:$0]  %s98_s26, 8192, %s100_s3, [#allocation12], %s7446_s19, %s7446_s19, %s6745_s1  }
  0x15   :  { %s127_s20 = sshll.u32 %s6750_s30, 4  ;;  %s151_s22 = sshll.u32 %s7438_s10, 4  ;;  %s128_s20 = int_to_ptr.vmem [resolvable:$true] %s127_s20  ;;  %s152_s22 = int_to_ptr.hbm [resolvable:$true] %s151_s22 }
  0x16   :  { %s6751_s5 = smov 32   ;;  %s6752_s23 = smov 2  }
  0x17   :  { %133 = dma.hbm_to_vmem [thread:$0]  %s126_s0, 64, %s128_s20, [#allocation15], %s6751_s5, %s6751_s5, %s6752_s23  }
  0x18   :  { %s6753_s24 = smov [#allocation17]   ;;  %s181_s28 = sshll.u32 %s7442_s14, 4  ;;  %s182_s28 = int_to_ptr.hbm [resolvable:$true] %s181_s28 }
  0x19   :  { %s153_s25 = sshll.u32 %s6753_s24, 4  ;;  %s6754_s3 = smov 16   ;;  %s154_s25 = int_to_ptr.vmem [resolvable:$true] %s153_s25 }
  0x1a   :  { %s6755_s27 = smov 1   ;;  %s6756_s10 = smov [#allocation20]  }
  0x1b   :  { %159 = dma.hbm_to_vmem [thread:$0]  %s152_s22, 32, %s154_s25, [#allocation18], %s6754_s3, %s6754_s3, %s6755_s27  }
  0x1c   :  { %s183_s29 = sshll.u32 %s6756_s10, 4  ;;  %s7451_s21 = sld [smem:[#allocation32_spill]]  ;;  %s184_s29 = int_to_ptr.vmem [resolvable:$true] %s183_s29 }
  0x1d   :  { %189 = dma.hbm_to_vmem [thread:$0]  %s182_s28, 64, %s184_s29, [#allocation21], %s6751_s5, %s6751_s5, %s6752_s23  }
  0x1e   :  { %s61_s14 = sshll.u32 %s7430_s2, 4  ;;  %s6757_s24 = smov [#allocation2]   ;;  %s62_s14 = int_to_ptr.hbm [resolvable:$true] %s61_s14 }
  0x1f   :  { %s36_s26 = sshll.u32 %s6757_s24, 4  ;;  %s7452_s22 = smov 128   ;;  %s37_s26 = int_to_ptr.vmem [resolvable:$true] %s36_s26 }
  0x20   :  { %s6758_s25 = smov [#allocation7]   ;;  %s84_s10 = sshll.u32 %s7432_s4, 4  ;;  %s85_s10 = int_to_ptr.hbm [resolvable:$true] %s84_s10 }
  0x21   :  { %s63_s8 = sshll.u32 %s6758_s25, 4  ;;  %s6759_s28 = smov [#allocation10]   ;;  %s64_s8 = int_to_ptr.vmem [resolvable:$true] %s63_s8 }
  0x22   :  { %s34_s19 = sshll.u32 %s7451_s21, 4  ;;  %s86_s29 = sshll.u32 %s6759_s28, 4  ;;  %s35_s19 = int_to_ptr.hbm [resolvable:$true] %s34_s19  ;;  %s87_s29 = int_to_ptr.vmem [resolvable:$true] %s86_s29 }
  0x23   :  { %42 = dma.hbm_to_vmem [thread:$0]  %s35_s19, 256, %s37_s26, [#allocation3], %s7452_s22, %s7452_s22, %s6745_s1  }
  0x24   :  { %66 = dma.hbm_to_vmem [thread:$0]  %s62_s14, 32, %s64_s8, [#allocation6]  }
  0x25   :  { %s112_s18 = sshll.u32 %s7435_s7, 4  ;;  %s6760_s21 = smov 96   ;;  %s113_s18 = int_to_ptr.hbm [resolvable:$true] %s112_s18 }
  0x26   :  { %s6761_s0 = smov 6   ;;  %s6762_s19 = smov [#allocation13]  }
  0x27   :  { %92 = dma.hbm_to_vmem [thread:$0]  %s85_s10, 192, %s87_s29, [#allocation9], %s6760_s21, %s6760_s21, %s6761_s0  }
  0x28   :  { %s114_s20 = sshll.u32 %s6762_s19, 4  ;;  %s138_s4 = sshll.u32 %s7437_s9, 4  ;;  %s115_s20 = int_to_ptr.vmem [resolvable:$true] %s114_s20  ;;  %s139_s4 = int_to_ptr.hbm [resolvable:$true] %s138_s4 }
  0x29   :  { %120 = dma.hbm_to_vmem [thread:$0]  %s113_s18, 64, %s115_s20, [#allocation12], %s6751_s5, %s6751_s5, %s6752_s23  }
  0x2a   :  { %s6763_s14 = smov [#allocation16]   ;;  %s164_s3 = sshll.u32 %s7439_s11, 4  ;;  %s165_s3 = int_to_ptr.hbm [resolvable:$true] %s164_s3 }
  0x2b   :  { %s140_s25 = sshll.u32 %s6763_s14, 4  ;;  %s6764_s27 = smov 64   ;;  %s141_s25 = int_to_ptr.vmem [resolvable:$true] %s140_s25 }
  0x2c   :  { %s6765_s10 = smov 4   ;;  %s6766_s9 = smov [#allocation19]  }
  0x2d   :  { %146 = dma.hbm_to_vmem [thread:$0]  %s139_s4, 4096, %s141_s25, [#allocation15], %s6764_s27, %s6764_s27, %s6765_s10  }
  0x2e   :  { %s166_s28 = sshll.u32 %s6766_s9, 4  ;;  %s194_s30 = sshll.u32 %s7443_s15, 4  ;;  %s167_s28 = int_to_ptr.vmem [resolvable:$true] %s166_s28  ;;  %s195_s30 = int_to_ptr.hbm [resolvable:$true] %s194_s30 }
  0x2f   :  { %172 = dma.hbm_to_vmem [thread:$0]  %s165_s3, 4096, %s167_s28, [#allocation18], %s7452_s22, %s7452_s22, %s6745_s1  }
  0x30   :  { %s6767_s5 = smov [#allocation22]  }
  0x31   :  { %s196_s11 = sshll.u32 %s6767_s5, 4  ;;  %s197_s11 = int_to_ptr.vmem [resolvable:$true] %s196_s11 }
  0x32   :  { %202 = dma.hbm_to_vmem [thread:$0]  %s195_s30, 2048, %s197_s11, [#allocation21], %s6764_s27, %s6764_s27, %s6765_s10  }
  0x33   :  { %6727 = dma.done.wait [#allocation3], 256  }
  0x34   :  { %6728 = vsyncadd [#allocation3], 4294967040 }
  0x35   :  { %6729 = dma.done.wait [#allocation6], 2080  }
  0x36   :  { %6730 = vsyncadd [#allocation6], 4294965216 }
  0x37   :  { %6731 = dma.done.wait [#allocation9], 24768  }
  0x38   :  { %6732 = vsyncadd [#allocation9], 4294942528 }
  0x39   :  { %6733 = dma.done.wait [#allocation12], 8256  }
  0x3a   :  { %6734 = vsyncadd [#allocation12], 4294959040 }
  0x3b   :  { %6735 = dma.done.wait [#allocation15], 4160  }
  0x3c   :  { %6736 = vsyncadd [#allocation15], 4294963136 }
  0x3d   :  { %6737 = dma.done.wait [#allocation18], 4128  }
  0x3e   :  { %6738 = vsyncadd [#allocation18], 4294963168 }
  0x3f   :  { %6739 = dma.done.wait [#allocation21], 2112  }
  0x40   :  { %6740 = vsyncadd [#allocation21], 4294965184  ;;  %v4542_v0 = vld [vmem:[#allocation5 + $0x70] sm:$0xf]  ;;  %v5942_v1 = vld [vmem:[#allocation5 + $0x74] sm:$0xf0] }
  0x41   :  { %v5941_v2 = vld [vmem:[#allocation5 + $0x74] sm:$0xf]  ;;  %v4543_v3 = vor.u32 %v5942_v1, %v4542_v0  ;;  %v4544_v4 = vld [vmem:[#allocation5 + $0x78] sm:$0xf0]  ;;  %v4534_v5 = vld [vmem:[#allocation5 + $0x60] sm:$0xf] }
  0x42   :  { %v5940_v6 = vld [vmem:[#allocation5 + $0x64] sm:$0xf0]  ;;  %v4547_v7 = vor.u32 %v5941_v2, %v4544_v4  ;;  %v5939_v8 = vld [vmem:[#allocation5 + $0x64] sm:$0xf]  ;;  %v4536_v9 = vld [vmem:[#allocation5 + $0x68] sm:$0xf0] }
  0x43   :  { %363 = vmatpush.bf16.msra.mxu0 %v4543_v3  ;;  %v4535_v10 = vor.u32 %v5940_v6, %v4534_v5  ;;  %v4539_v11 = vor.u32 %v5939_v8, %v4536_v9  ;;  %v4526_v12 = vld [vmem:[#allocation5 + $0x50] sm:$0xf]  ;;  %v5938_v13 = vld [vmem:[#allocation5 + $0x54] sm:$0xf0]  ;;  %v5937_v14 = vld [vmem:[#allocation5 + $0x54] sm:$0xf] }
  0x44   :  { %377 = vmatpush.bf16.msra.mxu1 %v4547_v7  ;;  %v4528_v15 = vld [vmem:[#allocation5 + $0x58] sm:$0xf0]  ;;  %v4527_v16 = vor.u32 %v5938_v13, %v4526_v12  ;;  %v4518_v18 = vld [vmem:[#allocation5 + $0x40] sm:$0xf]  ;;  %v5936_v19 = vld [vmem:[#allocation5 + $0x44] sm:$0xf0] }
  0x45   :  { %v4531_v17 = vor.u32 %v5937_v14, %v4528_v15  ;;  %v5935_v20 = vld [vmem:[#allocation5 + $0x44] sm:$0xf]  ;;  %v4520_v21 = vld [vmem:[#allocation5 + $0x48] sm:$0xf0]  ;;  %v4519_v22 = vor.u32 %v5936_v19, %v4518_v18  ;;  %v4510_v23 = vld [vmem:[#allocation5 + $0x30] sm:$0xf] }
  0x46   :  { %v4718_v24 = vld [vmem:[#allocation8 + $0x150] sm:$0xf]  ;;  %v5988_v25 = vld [vmem:[#allocation8 + $0x164] sm:$0xf0]  ;;  %v4523_v26 = vor.u32 %v5935_v20, %v4520_v21  ;;  %v5934_v27 = vld [vmem:[#allocation5 + $0x34] sm:$0xf0] }
  0x47   :  { %364 = vmatpush.bf16.msra.mxu0 %v4535_v10  ;;  %v4719_v28 = vor.u32 %v5988_v25, %v4718_v24  ;;  %v4910_v29 = vld [vmem:[#allocation8 + $0x2d0] sm:$0xf]  ;;  %v6036_v30 = vld [vmem:[#allocation8 + $0x2e4] sm:$0xf0]  ;;  %v4512_v32 = vld [vmem:[#allocation5 + $0x38] sm:$0xf0]  ;;  %v4511_v37 = vor.u32 %v5934_v27, %v4510_v23 }
  0x48   :  { %378 = vmatpush.bf16.msra.mxu1 %v4539_v11  ;;  %v5933_v31 = vld [vmem:[#allocation5 + $0x34] sm:$0xf]  ;;  %v4911_v33 = vor.u32 %v6036_v30, %v4910_v29  ;;  %v4694_v34 = vld [vmem:[#allocation8 + $0x120] sm:$0xf]  ;;  %v5982_v35 = vld [vmem:[#allocation8 + $0x134] sm:$0xf0] }
  0x49   :  { %983 = vmatpush.bf16.msra.mxu2 %v4719_v28  ;;  %v4886_v36 = vld [vmem:[#allocation8 + $0x2a0] sm:$0xf]  ;;  %v5932_v39 = vld [vmem:[#allocation5 + $0x24] sm:$0xf0]  ;;  %v4695_v40 = vor.u32 %v5982_v35, %v4694_v34  ;;  %v6030_v41 = vld [vmem:[#allocation8 + $0x2b4] sm:$0xf0]  ;;  %v4515_v42 = vor.u32 %v5933_v31, %v4512_v32 }
  0x4a   :  { %v4502_v38 = vld [vmem:[#allocation5 + $0x20] sm:$0xf]  ;;  %997 = vmatpush.bf16.msra.mxu3 %v4911_v33  ;;  %v5931_v43 = vld [vmem:[#allocation5 + $0x24] sm:$0xf]  ;;  %v4504_v44 = vld [vmem:[#allocation5 + $0x28] sm:$0xf0]  ;;  %v4887_v45 = vor.u32 %v6030_v41, %v4886_v36 }
  0x4b   :  { %365 = vmatpush.bf16.msra.mxu0 %v4527_v16  ;;  %v4670_v46 = vld [vmem:[#allocation8 + $0xf0] sm:$0xf]  ;;  %v5976_v47 = vld [vmem:[#allocation8 + $0x104] sm:$0xf0]  ;;  %v4503_v51 = vor.u32 %v5932_v39, %v4502_v38  ;;  %v4646_v54 = vld [vmem:[#allocation8 + $0xc0] sm:$0xf]  ;;  %v4507_v56 = vor.u32 %v5931_v43, %v4504_v44 }
  0x4c   :  { %379 = vmatpush.bf16.msra.mxu1 %v4531_v17  ;;  %v4862_v48 = vld [vmem:[#allocation8 + $0x270] sm:$0xf]  ;;  %v6024_v49 = vld [vmem:[#allocation8 + $0x284] sm:$0xf0]  ;;  %v4671_v50 = vor.u32 %v5976_v47, %v4670_v46  ;;  %v5970_v55 = vld [vmem:[#allocation8 + $0xd4] sm:$0xf0] }
  0x4d   :  { %984 = vmatpush.bf16.msra.mxu2 %v4695_v40  ;;  %v4494_v52 = vld [vmem:[#allocation5 + $0x10] sm:$0xf]  ;;  %v4863_v53 = vor.u32 %v6024_v49, %v4862_v48  ;;  %v5930_v57 = vld [vmem:[#allocation5 + $0x14] sm:$0xf0]  ;;  %v4838_v58 = vld [vmem:[#allocation8 + $0x240] sm:$0xf]  ;;  %v4647_v63 = vor.u32 %v5970_v55, %v4646_v54 }
  0x4e   :  { %998 = vmatpush.bf16.msra.mxu3 %v4887_v45  ;;  %v6018_v59 = vld [vmem:[#allocation8 + $0x254] sm:$0xf0]  ;;  %v5929_v60 = vld [vmem:[#allocation5 + $0x14] sm:$0xf]  ;;  %v4486_v62 = vld [vmem:[#allocation5] sm:$0xf]  ;;  %v4495_v0 = vor.u32 %v5930_v57, %v4494_v52 }
  0x4f   :  { %366 = vmatpush.bf16.msra.mxu0 %v4519_v22  ;;  %v4496_v61 = vld [vmem:[#allocation5 + $0x18] sm:$0xf0]  ;;  %v5928_v1 = vld [vmem:[#allocation5 + $0x4] sm:$0xf0]  ;;  %v4839_v2 = vor.u32 %v6018_v59, %v4838_v58  ;;  %v4622_v3 = vld [vmem:[#allocation8 + $0x90] sm:$0xf] }
  0x50   :  { %380 = vmatpush.bf16.msra.mxu1 %v4523_v26  ;;  %v5964_v4 = vld [vmem:[#allocation8 + $0xa4] sm:$0xf0]  ;;  %v4499_v5 = vor.u32 %v5929_v60, %v4496_v61  ;;  %v5927_v6 = vld [vmem:[#allocation5 + $0x4] sm:$0xf]  ;;  %v4814_v7 = vld [vmem:[#allocation8 + $0x210] sm:$0xf]  ;;  %v4487_v16 = vor.u32 %v5928_v1, %v4486_v62 }
  0x51   :  { %985 = vmatpush.bf16.msra.mxu2 %v4671_v50  ;;  %v6012_v8 = vld [vmem:[#allocation8 + $0x224] sm:$0xf0]  ;;  %v5985_v10 = vld [vmem:[#allocation8 + $0x154] sm:$0xf]  ;;  %v4720_v11 = vld [vmem:[#allocation8 + $0x168] sm:$0xf0]  ;;  %v4623_v15 = vor.u32 %v5964_v4, %v4622_v3 }
  0x52   :  { %999 = vmatpush.bf16.msra.mxu3 %v4863_v53  ;;  %v4488_v9 = vld [vmem:[#allocation5 + $0x8] sm:$0xf0]  ;;  %v258_v12 = vld [vmem:[#allocation2] sm:$0xff]  ;;  %v259_v17 = vld [vmem:[#allocation2 + $0x8] sm:$0xff]  ;;  %v4815_v18 = vor.u32 %v6012_v8, %v4814_v7  ;;  %v4723_v22 = vor.u32 %v5985_v10, %v4720_v11  ;;  %vm1187_vm0 = vcmask 523264   ;;  %vm1440_vm1 = vcmask 1043456  }
  0x53   :  { %367 = vmatpush.bf16.msra.mxu0 %v4511_v37  ;;  %v6033_v13 = vld [vmem:[#allocation8 + $0x2d4] sm:$0xf]  ;;  %v4912_v14 = vld [vmem:[#allocation8 + $0x2e8] sm:$0xf0]  ;;  %v4598_v19 = vld [vmem:[#allocation8 + $0x60] sm:$0xf]  ;;  %v4491_v21 = vor.u32 %v5927_v6, %v4488_v9  ;;  %v260_v28 = vpack.c.bf16 %v259_v17, %v258_v12 }
  0x54   :  { %381 = vmatpush.bf16.msra.mxu1 %v4515_v42  ;;  %v5958_v20 = vld [vmem:[#allocation8 + $0x74] sm:$0xf0]  ;;  %v4790_v23 = vld [vmem:[#allocation8 + $0x1e0] sm:$0xf]  ;;  %v4915_v25 = vor.u32 %v6033_v13, %v4912_v14  ;;  %v5979_v26 = vld [vmem:[#allocation8 + $0x124] sm:$0xf] }
  0x55   :  { %986 = vmatpush.bf16.msra.mxu2 %v4647_v63  ;;  %v6006_v24 = vld [vmem:[#allocation8 + $0x1f4] sm:$0xf0]  ;;  %v4696_v27 = vld [vmem:[#allocation8 + $0x138] sm:$0xf0]  ;;  %v6027_v29 = vld [vmem:[#allocation8 + $0x2a4] sm:$0xf]  ;;  %v4599_v31 = vor.u32 %v5958_v20, %v4598_v19 }
  0x56   :  { %1000 = vmatpush.bf16.msra.mxu3 %v4839_v2  ;;  %v4888_v30 = vld [vmem:[#allocation8 + $0x2b8] sm:$0xf0]  ;;  %v4791_v32 = vor.u32 %v6006_v24, %v4790_v23  ;;  %v4574_v33 = vld [vmem:[#allocation8 + $0x30] sm:$0xf]  ;;  %v5952_v34 = vld [vmem:[#allocation8 + $0x44] sm:$0xf0]  ;;  %v4699_v35 = vor.u32 %v5979_v26, %v4696_v27 }
  0x57   :  { %368 = vmatpush.bf16.msra.mxu0 %v4503_v51  ;;  %v4766_v36 = vld [vmem:[#allocation8 + $0x1b0] sm:$0xf]  ;;  %v6000_v37 = vld [vmem:[#allocation8 + $0x1c4] sm:$0xf0]  ;;  %v4891_v38 = vor.u32 %v6027_v29, %v4888_v30  ;;  %v5973_v39 = vld [vmem:[#allocation8 + $0xf4] sm:$0xf]  ;;  %v4575_v43 = vor.u32 %v5952_v34, %v4574_v33 }
  0x58   :  { %382 = vmatpush.bf16.msra.mxu1 %v4507_v56  ;;  %v4672_v40 = vld [vmem:[#allocation8 + $0x108] sm:$0xf0]  ;;  %v6021_v41 = vld [vmem:[#allocation8 + $0x274] sm:$0xf]  ;;  %v5967_v44 = vld [vmem:[#allocation8 + $0xc4] sm:$0xf]  ;;  %v4767_v45 = vor.u32 %v6000_v37, %v4766_v36 }
  0x59   :  { %987 = vmatpush.bf16.msra.mxu2 %v4623_v15  ;;  %v4864_v42 = vld [vmem:[#allocation8 + $0x288] sm:$0xf0]  ;;  %v4550_v46 = vld [vmem:[#allocation8] sm:$0xf]  ;;  %v5946_v47 = vld [vmem:[#allocation8 + $0x14] sm:$0xf0]  ;;  %v4675_v49 = vor.u32 %v5973_v39, %v4672_v40 }
  0x5a   :  { %1001 = vmatpush.bf16.msra.mxu3 %v4815_v18  ;;  %v4742_v48 = vld [vmem:[#allocation8 + $0x180] sm:$0xf]  ;;  %v5994_v50 = vld [vmem:[#allocation8 + $0x194] sm:$0xf0]  ;;  %v5989_v52 = vld [vmem:[#allocation8 + $0x16c] sm:$0xf0]  ;;  %v4867_v53 = vor.u32 %v6021_v41, %v4864_v42  ;;  %v4551_v59 = vor.u32 %v5946_v47, %v4550_v46 }
  0x5b   :  { %369 = vmatpush.bf16.msra.mxu0 %v4495_v0  ;;  %v4726_v51 = vld [vmem:[#allocation8 + $0x158] sm:$0xf]  ;;  %v4648_v54 = vld [vmem:[#allocation8 + $0xd8] sm:$0xf0]  ;;  %v6037_v56 = vld [vmem:[#allocation8 + $0x2ec] sm:$0xf0]  ;;  %v4743_v60 = vor.u32 %v5994_v50, %v4742_v48 }
  0x5c   :  { %383 = vmatpush.bf16.msra.mxu1 %v4499_v5  ;;  %v4918_v55 = vld [vmem:[#allocation8 + $0x2d8] sm:$0xf]  ;;  %v6015_v57 = vld [vmem:[#allocation8 + $0x244] sm:$0xf]  ;;  %v4840_v58 = vld [vmem:[#allocation8 + $0x258] sm:$0xf0]  ;;  %v4727_v61 = vor.u32 %v5989_v52, %v4726_v51  ;;  %v4651_v62 = vor.u32 %v5967_v44, %v4648_v54 }
  0x5d   :  { %988 = vmatpush.bf16.msra.mxu2 %v4599_v31  ;;  %v5961_v63 = vld [vmem:[#allocation8 + $0x94] sm:$0xf]  ;;  %v4919_v0 = vor.u32 %v6037_v56, %v4918_v55  ;;  %v4702_v1 = vld [vmem:[#allocation8 + $0x128] sm:$0xf]  ;;  %v5983_v2 = vld [vmem:[#allocation8 + $0x13c] sm:$0xf0]  ;;  %v4843_v3 = vor.u32 %v6015_v57, %v4840_v58 }
  0x5e   :  { %1002 = vmatpush.bf16.msra.mxu3 %v4791_v32  ;;  %v4624_v4 = vld [vmem:[#allocation8 + $0xa8] sm:$0xf0]  ;;  %v4894_v5 = vld [vmem:[#allocation8 + $0x2a8] sm:$0xf]  ;;  %v6031_v6 = vld [vmem:[#allocation8 + $0x2bc] sm:$0xf0]  ;;  %v4703_v10 = vor.u32 %v5983_v2, %v4702_v1 }
  0x5f   :  { %370 = vmatpush.bf16.msra.mxu0 %v4487_v16  ;;  %v6009_v7 = vld [vmem:[#allocation8 + $0x214] sm:$0xf]  ;;  %v4816_v8 = vld [vmem:[#allocation8 + $0x228] sm:$0xf0]  ;;  %v5955_v9 = vld [vmem:[#allocation8 + $0x64] sm:$0xf]  ;;  %v4627_v12 = vor.u32 %v5961_v63, %v4624_v4  ;;  %v4895_v13 = vor.u32 %v6031_v6, %v4894_v5 }
  0x60   :  { %384 = vmatpush.bf16.msra.mxu1 %v4491_v21  ;;  %v4678_v11 = vld [vmem:[#allocation8 + $0xf8] sm:$0xf]  ;;  %v5977_v14 = vld [vmem:[#allocation8 + $0x10c] sm:$0xf0]  ;;  %v4819_v15 = vor.u32 %v6009_v7, %v4816_v8  ;;  %v4600_v16 = vld [vmem:[#allocation8 + $0x78] sm:$0xf0] }
  0x61   :  { %989 = vmatpush.bf16.msra.mxu2 %v4575_v43  ;;  %v4870_v17 = vld [vmem:[#allocation8 + $0x278] sm:$0xf]  ;;  %v6025_v18 = vld [vmem:[#allocation8 + $0x28c] sm:$0xf0]  ;;  %v6003_v19 = vld [vmem:[#allocation8 + $0x1e4] sm:$0xf]  ;;  %v4679_v21 = vor.u32 %v5977_v14, %v4678_v11 }
  0x62   :  { %371 = vmatmul.bf16.vlgmr.msra.gmra.mxu0 %v260_v28  ;;  %1003 = vmatpush.bf16.msra.mxu3 %v4767_v45  ;;  %v4792_v20 = vld [vmem:[#allocation8 + $0x1f8] sm:$0xf0]  ;;  %v5949_v23 = vld [vmem:[#allocation8 + $0x34] sm:$0xf]  ;;  %v4871_v24 = vor.u32 %v6025_v18, %v4870_v17  ;;  %v5971_v26 = vld [vmem:[#allocation8 + $0xdc] sm:$0xf0] }
  0x63   :  { %1011 = vmatpush.bf16.msrb.mxu0 %v4723_v22  ;;  %385 = vmatmul.bf16.vlgmr.msra.gmra.mxu1 %v260_v28  ;;  %v4603_v22 = vor.u32 %v5955_v9, %v4600_v16  ;;  %v4795_v27 = vor.u32 %v6003_v19, %v4792_v20  ;;  %v4576_v28 = vld [vmem:[#allocation8 + $0x48] sm:$0xf0]  ;;  %v4846_v29 = vld [vmem:[#allocation8 + $0x248] sm:$0xf]  ;;  %v6019_v30 = vld [vmem:[#allocation8 + $0x25c] sm:$0xf0] }
  0x64   :  { %1025 = vmatpush.bf16.msrb.mxu1 %v4915_v25  ;;  %v4654_v25 = vld [vmem:[#allocation8 + $0xc8] sm:$0xf]  ;;  %v5997_v31 = vld [vmem:[#allocation8 + $0x1b4] sm:$0xf]  ;;  %v4768_v32 = vld [vmem:[#allocation8 + $0x1c8] sm:$0xf0]  ;;  %v4579_v34 = vor.u32 %v5949_v23, %v4576_v28 }
  0x65   :  { %990 = vmatpush.bf16.msra.mxu2 %v4551_v59  ;;  %v4655_v33 = vor.u32 %v5971_v26, %v4654_v25  ;;  %v4771_v36 = vor.u32 %v5997_v31, %v4768_v32  ;;  %v5943_v37 = vld [vmem:[#allocation8 + $0x4] sm:$0xf]  ;;  %v4744_v40 = vld [vmem:[#allocation8 + $0x198] sm:$0xf0]  ;;  %v4728_v42 = vld [vmem:[#allocation8 + $0x170] sm:$0xf0] }
  0x66   :  { %1004 = vmatpush.bf16.msra.mxu3 %v4743_v60  ;;  %v5991_v39 = vld [vmem:[#allocation8 + $0x184] sm:$0xf]  ;;  %v5986_v41 = vld [vmem:[#allocation8 + $0x15c] sm:$0xf]  ;;  %v4920_v44 = vld [vmem:[#allocation8 + $0x2f0] sm:$0xf0] }
  0x67   :  { %1012 = vmatpush.bf16.msrb.mxu0 %v4699_v35  ;;  %v4847_v35 = vor.u32 %v6019_v30, %v4846_v29  ;;  %v6034_v43 = vld [vmem:[#allocation8 + $0x2dc] sm:$0xf]  ;;  %v4747_v46 = vor.u32 %v5991_v39, %v4744_v40  ;;  %v4731_v47 = vor.u32 %v5986_v41, %v4728_v42  ;;  %v4704_v50 = vld [vmem:[#allocation8 + $0x140] sm:$0xf0]  ;;  %v6028_v51 = vld [vmem:[#allocation8 + $0x2ac] sm:$0xf] }
  0x68   :  { %1026 = vmatpush.bf16.msrb.mxu1 %v4891_v38  ;;  %v4552_v38 = vld [vmem:[#allocation8 + $0x18] sm:$0xf0]  ;;  %v4923_v48 = vor.u32 %v6034_v43, %v4920_v44  ;;  %v4896_v52 = vld [vmem:[#allocation8 + $0x2c0] sm:$0xf0]  ;;  %v4680_v56 = vld [vmem:[#allocation8 + $0x110] sm:$0xf0] }
  0x69   :  { %1039 = vmatpush.bf16.msrb.mxu2 %v4727_v61  ;;  %v4555_v45 = vor.u32 %v5943_v37, %v4552_v38  ;;  %v4899_v54 = vor.u32 %v6028_v51, %v4896_v52  ;;  %v5974_v55 = vld [vmem:[#allocation8 + $0xfc] sm:$0xf]  ;;  %v4872_v58 = vld [vmem:[#allocation8 + $0x290] sm:$0xf0]  ;;  %v5968_v61 = vld [vmem:[#allocation8 + $0xcc] sm:$0xf] }
  0x6a   :  { %1053 = vmatpush.bf16.msrb.mxu3 %v4919_v0  ;;  %v6022_v57 = vld [vmem:[#allocation8 + $0x27c] sm:$0xf]  ;;  %v4683_v59 = vor.u32 %v5974_v55, %v4680_v56  ;;  %v6016_v63 = vld [vmem:[#allocation8 + $0x24c] sm:$0xf]  ;;  %v4848_v0 = vld [vmem:[#allocation8 + $0x260] sm:$0xf0] }
  0x6b   :  { %1013 = vmatpush.bf16.msrb.mxu0 %v4675_v49  ;;  %v5980_v49 = vld [vmem:[#allocation8 + $0x12c] sm:$0xf]  ;;  %v4875_v60 = vor.u32 %v6022_v57, %v4872_v58  ;;  %v4851_v2 = vor.u32 %v6016_v63, %v4848_v0  ;;  %v5965_v4 = vld [vmem:[#allocation8 + $0xac] sm:$0xf0]  ;;  %v4822_v5 = vld [vmem:[#allocation8 + $0x218] sm:$0xf] }
  0x6c   :  { %1027 = vmatpush.bf16.msrb.mxu1 %v4867_v53  ;;  %v4707_v53 = vor.u32 %v5980_v49, %v4704_v50  ;;  %v6013_v7 = vld [vmem:[#allocation8 + $0x22c] sm:$0xf0]  ;;  %v5962_v8 = vld [vmem:[#allocation8 + $0x9c] sm:$0xf]  ;;  %v4632_v9 = vld [vmem:[#allocation8 + $0xb0] sm:$0xf0] }
  0x6d   :  { %1040 = vmatpush.bf16.msrb.mxu2 %v4703_v10  ;;  %v4823_v10 = vor.u32 %v6013_v7, %v4822_v5  ;;  %v4635_v11 = vor.u32 %v5962_v8, %v4632_v9  ;;  %v5959_v16 = vld [vmem:[#allocation8 + $0x7c] sm:$0xf0]  ;;  %v4798_v17 = vld [vmem:[#allocation8 + $0x1e8] sm:$0xf]  ;;  %v5956_v20 = vld [vmem:[#allocation8 + $0x6c] sm:$0xf] }
  0x6e   :  { %1054 = vmatpush.bf16.msrb.mxu3 %v4895_v13  ;;  %v4824_v13 = vld [vmem:[#allocation8 + $0x230] sm:$0xf0]  ;;  %v6007_v19 = vld [vmem:[#allocation8 + $0x1fc] sm:$0xf0]  ;;  %v4800_v25 = vld [vmem:[#allocation8 + $0x200] sm:$0xf0] }
  0x6f   :  { %1014 = vmatpush.bf16.msrb.mxu0 %v4651_v62  ;;  %v4656_v62 = vld [vmem:[#allocation8 + $0xe0] sm:$0xf0]  ;;  %v5953_v28 = vld [vmem:[#allocation8 + $0x4c] sm:$0xf0]  ;;  %v4774_v29 = vld [vmem:[#allocation8 + $0x1b8] sm:$0xf] }
  0x70   :  { %1028 = vmatpush.bf16.msrb.mxu1 %v4843_v3  ;;  %v4659_v1 = vor.u32 %v5968_v61, %v4656_v62  ;;  %v4630_v3 = vld [vmem:[#allocation8 + $0x98] sm:$0xf]  ;;  %v6001_v31 = vld [vmem:[#allocation8 + $0x1cc] sm:$0xf0]  ;;  %v5950_v32 = vld [vmem:[#allocation8 + $0x3c] sm:$0xf] }
  0x71   :  { %1041 = vmatpush.bf16.msrb.mxu2 %v4679_v21  ;;  %v4631_v6 = vor.u32 %v5965_v4, %v4630_v3  ;;  %v4608_v21 = vld [vmem:[#allocation8 + $0x80] sm:$0xf0]  ;;  %v4776_v37 = vld [vmem:[#allocation8 + $0x1d0] sm:$0xf0]  ;;  %v4558_v39 = vld [vmem:[#allocation8 + $0x8] sm:$0xf] }
  0x72   :  { %1055 = vmatpush.bf16.msrb.mxu3 %v4871_v24  ;;  %v4611_v23 = vor.u32 %v5956_v20, %v4608_v21  ;;  %v6004_v24 = vld [vmem:[#allocation8 + $0x1ec] sm:$0xf]  ;;  %v5947_v40 = vld [vmem:[#allocation8 + $0x1c] sm:$0xf0]  ;;  %v4750_v41 = vld [vmem:[#allocation8 + $0x188] sm:$0xf] }
  0x73   :  { %1015 = vmatpush.bf16.msrb.mxu0 %v4627_v12  ;;  %v6010_v12 = vld [vmem:[#allocation8 + $0x21c] sm:$0xf]  ;;  %v4803_v26 = vor.u32 %v6004_v24, %v4800_v25  ;;  %v4559_v42 = vor.u32 %v5947_v40, %v4558_v39  ;;  %v5995_v43 = vld [vmem:[#allocation8 + $0x19c] sm:$0xf0]  ;;  %v5944_v44 = vld [vmem:[#allocation8 + $0xc] sm:$0xf] }
  0x74   :  { %1029 = vmatpush.bf16.msrb.mxu1 %v4819_v15  ;;  %v4827_v14 = vor.u32 %v6010_v12, %v4824_v13  ;;  %v4606_v15 = vld [vmem:[#allocation8 + $0x68] sm:$0xf]  ;;  %v4752_v49 = vld [vmem:[#allocation8 + $0x1a0] sm:$0xf0]  ;;  %v4734_v56 = vld [vmem:[#allocation8 + $0x160] sm:$0xf] }
  0x75   :  { %1042 = vmatpush.bf16.msrb.mxu2 %v4655_v33  ;;  %v4607_v18 = vor.u32 %v5959_v16, %v4606_v15  ;;  %v4584_v33 = vld [vmem:[#allocation8 + $0x50] sm:$0xf0]  ;;  %v5990_v57 = vld [vmem:[#allocation8 + $0x174] sm:$0xf0]  ;;  %v5987_v61 = vld [vmem:[#allocation8 + $0x164] sm:$0xf] }
  0x76   :  { %1056 = vmatpush.bf16.msrb.mxu3 %v4847_v35  ;;  %v4587_v35 = vor.u32 %v5950_v32, %v4584_v33  ;;  %v4928_v3 = vld [vmem:[#allocation8 + $0x2f8] sm:$0xf0]  ;;  %v4735_v7 = vor.u32 %v5990_v57, %v4734_v56  ;;  %v4710_v9 = vld [vmem:[#allocation8 + $0x130] sm:$0xf]  ;;  %v6032_v15 = vld [vmem:[#allocation8 + $0x2c4] sm:$0xf0] }
  0x77   :  { %1016 = vmatpush.bf16.msrb.mxu0 %v4603_v22  ;;  %v4799_v22 = vor.u32 %v6007_v19, %v4798_v17  ;;  %v5981_v16 = vld [vmem:[#allocation8 + $0x134] sm:$0xf]  ;;  %v4712_v17 = vld [vmem:[#allocation8 + $0x148] sm:$0xf0]  ;;  %v6020_v39 = vld [vmem:[#allocation8 + $0x264] sm:$0xf0] }
  0x78   :  { %1030 = vmatpush.bf16.msrb.mxu1 %v4795_v27  ;;  %v4582_v27 = vld [vmem:[#allocation8 + $0x38] sm:$0xf]  ;;  %v4904_v19 = vld [vmem:[#allocation8 + $0x2c8] sm:$0xf0]  ;;  %v4715_v24 = vor.u32 %v5981_v16, %v4712_v17  ;;  %v5969_v40 = vld [vmem:[#allocation8 + $0xd4] sm:$0xf] }
  0x79   :  { %1043 = vmatpush.bf16.msrb.mxu2 %v4631_v6  ;;  %v4583_v30 = vor.u32 %v5953_v28, %v4582_v27  ;;  %v6026_v27 = vld [vmem:[#allocation8 + $0x294] sm:$0xf0]  ;;  %v5975_v28 = vld [vmem:[#allocation8 + $0x104] sm:$0xf]  ;;  %v4782_v16 = vld [vmem:[#allocation8 + $0x1c0] sm:$0xf] }
  0x7a   :  { %1057 = vmatpush.bf16.msrb.mxu3 %v4823_v10  ;;  %v5984_v10 = vld [vmem:[#allocation8 + $0x144] sm:$0xf0]  ;;  %v6002_v17 = vld [vmem:[#allocation8 + $0x1d4] sm:$0xf0]  ;;  %vm1340_vm2 = vcmask 64512   ;;  %s6769_s25 = smov [#allocation23]  }
  0x7b   :  { %1017 = vmatpush.bf16.msrb.mxu0 %v4579_v34  ;;  %v4775_v34 = vor.u32 %v6001_v31, %v4774_v29  ;;  %v4711_v20 = vor.u32 %v5984_v10, %v4710_v9  ;;  %v4688_v29 = vld [vmem:[#allocation8 + $0x118] sm:$0xf0]  ;;  %s4463_s7 = sshll.u32 %s6769_s25, 4  ;;  %s4464_s7 = int_to_ptr.vmem [resolvable:$true] %s4463_s7 }
  0x7c   :  { %1031 = vmatpush.bf16.msrb.mxu1 %v4771_v36  ;;  %v5998_v36 = vld [vmem:[#allocation8 + $0x1bc] sm:$0xf] }
  0x7d   :  { %1044 = vmatpush.bf16.msrb.mxu2 %v4607_v18  ;;  %v4779_v38 = vor.u32 %v5998_v36, %v4776_v37  ;;  %v6029_v18 = vld [vmem:[#allocation8 + $0x2b4] sm:$0xf]  ;;  %v4880_v31 = vld [vmem:[#allocation8 + $0x298] sm:$0xf0]  ;;  %v4691_v36 = vor.u32 %v5975_v28, %v4688_v29  ;;  %v4758_v28 = vld [vmem:[#allocation8 + $0x190] sm:$0xf] }
  0x7e   :  { %1058 = vmatpush.bf16.msrb.mxu3 %v4799_v22  ;;  %v4686_v22 = vld [vmem:[#allocation8 + $0x100] sm:$0xf]  ;;  %v4907_v25 = vor.u32 %v6029_v18, %v4904_v19  ;;  %v5951_v18 = vld [vmem:[#allocation8 + $0x44] sm:$0xf]  ;;  %v4592_v19 = vld [vmem:[#allocation8 + $0x58] sm:$0xf0] }
  0x7f   :  { %1018 = vmatpush.bf16.msrb.mxu0 %v4555_v45  ;;  %v4560_v45 = vld [vmem:[#allocation8 + $0x20] sm:$0xf0]  ;;  %v5996_v29 = vld [vmem:[#allocation8 + $0x1a4] sm:$0xf0] }
  0x80   :  { %1032 = vmatpush.bf16.msrb.mxu1 %v4747_v46  ;;  %v4751_v46 = vor.u32 %v5995_v43, %v4750_v41  ;;  %v4664_v41 = vld [vmem:[#allocation8 + $0xe8] sm:$0xf0] }
  0x81   :  { %1045 = vmatpush.bf16.msrb.mxu2 %v4583_v30  ;;  %v6023_v30 = vld [vmem:[#allocation8 + $0x284] sm:$0xf]  ;;  %v4856_v43 = vld [vmem:[#allocation8 + $0x268] sm:$0xf0] }
  0x82   :  { %1059 = vmatpush.bf16.msrb.mxu3 %v4775_v34  ;;  %v4662_v34 = vld [vmem:[#allocation8 + $0xd0] sm:$0xf]  ;;  %v4883_v37 = vor.u32 %v6023_v30, %v4880_v31  ;;  %v5945_v30 = vld [vmem:[#allocation8 + $0x14] sm:$0xf]  ;;  %v4568_v31 = vld [vmem:[#allocation8 + $0x28] sm:$0xf0] }
  0x83   :  { %1067 = vmatpush.bf16.msra.mxu0 %v4731_v47  ;;  %v4563_v47 = vor.u32 %v5944_v44, %v4560_v45 }
  0x84   :  { %1081 = vmatpush.bf16.msra.mxu1 %v4923_v48  ;;  %v5992_v48 = vld [vmem:[#allocation8 + $0x18c] sm:$0xf] }
  0x85   :  { %1046 = vmatpush.bf16.msrb.mxu2 %v4559_v42  ;;  %v4755_v50 = vor.u32 %v5992_v48, %v4752_v49  ;;  %v6017_v42 = vld [vmem:[#allocation8 + $0x254] sm:$0xf]  ;;  %v4667_v48 = vor.u32 %v5969_v40, %v4664_v41 }
  0x86   :  { %1060 = vmatpush.bf16.msrb.mxu3 %v4751_v46  ;;  %v4638_v46 = vld [vmem:[#allocation8 + $0xa0] sm:$0xf]  ;;  %v4859_v49 = vor.u32 %v6017_v42, %v4856_v43 }
  0x87   :  { %1068 = vmatpush.bf16.msra.mxu0 %v4707_v53  ;;  %v277_v53 = vld [vmem:[#allocation7] sm:$0x3] }
  0x88   :  { %1082 = vmatpush.bf16.msra.mxu1 %v4899_v54  ;;  %v279_v54 = vperm.slane %v277_v53, 0  ;;  %v280_v55 = vperm.slane %v277_v53, 1  ;;  %v4640_v53 = vld [vmem:[#allocation8 + $0xb8] sm:$0xf0] }
  0x8b   :  { %1069 = vmatpush.bf16.msra.mxu0 %v4683_v59  ;;  %v4926_v59 = vld [vmem:[#allocation8 + $0x2e0] sm:$0xf] }
  0x8c   :  { %1083 = vmatpush.bf16.msra.mxu1 %v4875_v60  ;;  %v6038_v60 = vld [vmem:[#allocation8 + $0x2f4] sm:$0xf0] }
  0x8d   :  { %v4927_v8 = vor.u32 %v6038_v60, %v4926_v59  ;;  %v5960_v59 = vld [vmem:[#allocation8 + $0x84] sm:$0xf0] }
  0x8f   :  { %1070 = vmatpush.bf16.msra.mxu0 %v4659_v1  ;;  %v4736_v1 = vld [vmem:[#allocation8 + $0x178] sm:$0xf0] }
  0x90   :  { %1084 = vmatpush.bf16.msra.mxu1 %v4851_v2  ;;  %v6035_v2 = vld [vmem:[#allocation8 + $0x2e4] sm:$0xf]  ;;  %v4739_v12 = vor.u32 %v5987_v61, %v4736_v1  ;;  %v6008_v1 = vld [vmem:[#allocation8 + $0x204] sm:$0xf0] }
  0x91   :  { %v4931_v13 = vor.u32 %v6035_v2, %v4928_v3  ;;  %v5957_v2 = vld [vmem:[#allocation8 + $0x74] sm:$0xf]  ;;  %v4616_v3 = vld [vmem:[#allocation8 + $0x88] sm:$0xf0] }
  0x93   :  { %1071 = vmatpush.bf16.msra.mxu0 %v4635_v11 }
  0x94   :  { %1085 = vmatpush.bf16.msra.mxu1 %v4827_v14  ;;  %v4902_v14 = vld [vmem:[#allocation8 + $0x2b0] sm:$0xf] }
  0x95   :  { %v4903_v21 = vor.u32 %v6032_v15, %v4902_v14  ;;  %v4619_v14 = vor.u32 %v5957_v2, %v4616_v3 }
  0x97   :  { %1072 = vmatpush.bf16.msra.mxu0 %v4611_v23  ;;  %v5978_v23 = vld [vmem:[#allocation8 + $0x114] sm:$0xf0] }
  0x98   :  { %1086 = vmatpush.bf16.msra.mxu1 %v4803_v26  ;;  %v4878_v26 = vld [vmem:[#allocation8 + $0x280] sm:$0xf]  ;;  %v4687_v32 = vor.u32 %v5978_v23, %v4686_v22  ;;  %v4783_v23 = vor.u32 %v6002_v17, %v4782_v16 }
  0x99   :  { %v4879_v33 = vor.u32 %v6026_v27, %v4878_v26  ;;  %v4595_v26 = vor.u32 %v5951_v18, %v4592_v19 }
  0x9b   :  { %1073 = vmatpush.bf16.msra.mxu0 %v4587_v35  ;;  %v5972_v35 = vld [vmem:[#allocation8 + $0xe4] sm:$0xf0] }
  0x9c   :  { %1087 = vmatpush.bf16.msra.mxu1 %v4779_v38  ;;  %v4854_v38 = vld [vmem:[#allocation8 + $0x250] sm:$0xf]  ;;  %v4663_v44 = vor.u32 %v5972_v35, %v4662_v34  ;;  %v4759_v35 = vor.u32 %v5996_v29, %v4758_v28 }
  0x9d   :  { %v4855_v45 = vor.u32 %v6020_v39, %v4854_v38  ;;  %v6952_v38 = vld [vmem:[#allocation10] sm:$0x3f] }
  0x9e   :  { %v492_v40 = vperm.slane %v6952_v38, 1  ;;  %v491_v42 = vperm.slane %v6952_v38, 0  ;;  %v496_v19 = vperm.slane %v6952_v38, 5 }
  0x9f   :  { %1074 = vmatpush.bf16.msra.mxu0 %v4563_v47  ;;  %v5966_v47 = vld [vmem:[#allocation8 + $0xb4] sm:$0xf0] }
  0xa0   :  { %1088 = vmatpush.bf16.msra.mxu1 %v4755_v50  ;;  %v4830_v50 = vld [vmem:[#allocation8 + $0x220] sm:$0xf]  ;;  %v4639_v56 = vor.u32 %v5966_v47, %v4638_v46 }
  0xdf   :  { %v372_v51 = vpop.f32.mrf.mxu0 }
  0xe0   :  { %v386_v52 = vpop.f32.mrf.mxu1  ;;  %v6924_v62 = vadd.f32 %v372_v51, %v279_v54  ;;  %v6014_v51 = vld [vmem:[#allocation8 + $0x234] sm:$0xf0] }
  0xe1   :  { %v6928_v4 = vadd.f32 %v386_v52, %v280_v55  ;;  %v5963_v52 = vld [vmem:[#allocation8 + $0xa4] sm:$0xf]  ;;  %v4831_v57 = vor.u32 %v6014_v51, %v4830_v50 }
  0xe2   :  { %v4643_v60 = vor.u32 %v5963_v52, %v4640_v53 }
  0xe7   :  { %v374_v58 = vpop.f32.mrf.mxu0 }
  0xe8   :  { %v6926_v63 = vadd.f32 %v374_v58, %v279_v54  ;;  %v388_v0 = vpop.f32.mrf.mxu1  ;;  %v6011_v54 = vld [vmem:[#allocation8 + $0x224] sm:$0xf]  ;;  %v4614_v58 = vld [vmem:[#allocation8 + $0x70] sm:$0xf] }
  0xe9   :  { %v6930_v5 = vadd.f32 %v388_v0, %v280_v55  ;;  %v4832_v55 = vld [vmem:[#allocation8 + $0x238] sm:$0xf0]  ;;  %v4806_v0 = vld [vmem:[#allocation8 + $0x1f0] sm:$0xf]  ;;  %v4615_v9 = vor.u32 %v5960_v59, %v4614_v58 }
  0xea   :  { %v6934_v6 = vpack.c.bf16 %v6926_v63, %v6924_v62  ;;  %v4835_v61 = vor.u32 %v6011_v54, %v4832_v55  ;;  %v4807_v10 = vor.u32 %v6008_v1, %v4806_v0 }
  0xeb   :  { %v6938_v11 = vpack.c.bf16 %v6930_v5, %v6928_v4 }
  0xec   :  { %991 = vmatmul.bf16.vlgmr.msra.gmra.mxu2 %v6934_v6  ;;  %1019 = vmatmul.bf16.vlgmr.msrb.gmra.mxu0 %v6934_v6 }
  0xed   :  { %1005 = vmatmul.bf16.vlgmr.msra.gmra.mxu3 %v6938_v11  ;;  %1033 = vmatmul.bf16.vlgmr.msrb.gmra.mxu1 %v6938_v11 }
  0xee   :  { %1095 = vmatpush.bf16.msra.mxu2 %v4735_v7  ;;  %1109 = vmatpush.bf16.msra.mxu3 %v4927_v8  ;;  %v6005_v7 = vld [vmem:[#allocation8 + $0x1f4] sm:$0xf]  ;;  %v4808_v8 = vld [vmem:[#allocation8 + $0x208] sm:$0xf0] }
  0xef   :  { %1123 = vmatpush.bf16.msrb.mxu0 %v4739_v12  ;;  %1137 = vmatpush.bf16.msrb.mxu1 %v4931_v13  ;;  %v4590_v12 = vld [vmem:[#allocation8 + $0x40] sm:$0xf]  ;;  %v5954_v13 = vld [vmem:[#allocation8 + $0x54] sm:$0xf0]  ;;  %v4811_v15 = vor.u32 %v6005_v7, %v4808_v8 }
  0xf0   :  { %v4591_v22 = vor.u32 %v5954_v13, %v4590_v12 }
  0xf2   :  { %1096 = vmatpush.bf16.msra.mxu2 %v4711_v20  ;;  %1110 = vmatpush.bf16.msra.mxu3 %v4903_v21  ;;  %v5999_v20 = vld [vmem:[#allocation8 + $0x1c4] sm:$0xf]  ;;  %v4784_v21 = vld [vmem:[#allocation8 + $0x1d8] sm:$0xf0] }
  0xf3   :  { %1124 = vmatpush.bf16.msrb.mxu0 %v4715_v24  ;;  %1138 = vmatpush.bf16.msrb.mxu1 %v4907_v25  ;;  %v4566_v24 = vld [vmem:[#allocation8 + $0x10] sm:$0xf]  ;;  %v5948_v25 = vld [vmem:[#allocation8 + $0x24] sm:$0xf0]  ;;  %v4787_v27 = vor.u32 %v5999_v20, %v4784_v21 }
  0xf4   :  { %v4567_v34 = vor.u32 %v5948_v25, %v4566_v24 }
  0xf6   :  { %1097 = vmatpush.bf16.msra.mxu2 %v4687_v32  ;;  %1111 = vmatpush.bf16.msra.mxu3 %v4879_v33  ;;  %v5993_v32 = vld [vmem:[#allocation8 + $0x194] sm:$0xf]  ;;  %v4760_v33 = vld [vmem:[#allocation8 + $0x1a8] sm:$0xf0] }
  0xf7   :  { %1125 = vmatpush.bf16.msrb.mxu0 %v4691_v36  ;;  %1139 = vmatpush.bf16.msrb.mxu1 %v4883_v37  ;;  %v4571_v36 = vor.u32 %v5945_v30, %v4568_v31  ;;  %v4763_v37 = vor.u32 %v5993_v32, %v4760_v33 }
  0xfa   :  { %1098 = vmatpush.bf16.msra.mxu2 %v4663_v44  ;;  %1112 = vmatpush.bf16.msra.mxu3 %v4855_v45 }
  0xfb   :  { %1126 = vmatpush.bf16.msrb.mxu0 %v4667_v48  ;;  %1140 = vmatpush.bf16.msrb.mxu1 %v4859_v49 }
  0xfc   :  { %1047 = vmatmul.bf16.vlgmr.msrb.gmra.mxu2 %v6934_v6  ;;  %1075 = vmatmul.bf16.vlgmr.msra.gmra.mxu0 %v6934_v6 }
  0xfd   :  { %1061 = vmatmul.bf16.vlgmr.msrb.gmra.mxu3 %v6938_v11  ;;  %1089 = vmatmul.bf16.vlgmr.msra.gmra.mxu1 %v6938_v11 }
  0xfe   :  { %1099 = vmatpush.bf16.msra.mxu2 %v4639_v56  ;;  %1113 = vmatpush.bf16.msra.mxu3 %v4831_v57  ;;  %v494_v57 = vperm.slane %v6952_v38, 3 }
  0xff   :  { %1127 = vmatpush.bf16.msrb.mxu0 %v4643_v60  ;;  %1141 = vmatpush.bf16.msrb.mxu1 %v4835_v61  ;;  %v493_v60 = vperm.slane %v6952_v38, 2 }
 0x102   :  { %1100 = vmatpush.bf16.msra.mxu2 %v4615_v9  ;;  %1114 = vmatpush.bf16.msra.mxu3 %v4807_v10 }
 0x103   :  { %1128 = vmatpush.bf16.msrb.mxu0 %v4619_v14  ;;  %1142 = vmatpush.bf16.msrb.mxu1 %v4811_v15 }
 0x106   :  { %1101 = vmatpush.bf16.msra.mxu2 %v4591_v22  ;;  %1115 = vmatpush.bf16.msra.mxu3 %v4783_v23  ;;  %v495_v22 = vperm.slane %v6952_v38, 4 }
 0x107   :  { %1129 = vmatpush.bf16.msrb.mxu0 %v4595_v26  ;;  %1143 = vmatpush.bf16.msrb.mxu1 %v4787_v27 }
 0x10a   :  { %1102 = vmatpush.bf16.msra.mxu2 %v4567_v34  ;;  %1116 = vmatpush.bf16.msra.mxu3 %v4759_v35 }
 0x10b   :  { %1130 = vmatpush.bf16.msrb.mxu0 %v4571_v36  ;;  %1144 = vmatpush.bf16.msrb.mxu1 %v4763_v37 }
 0x10d   :  { %1103 = vmatmul.bf16.vlgmr.msra.gmra.mxu2 %v6934_v6  ;;  %1117 = vmatmul.bf16.vlgmr.msra.gmra.mxu3 %v6938_v11 }
 0x10e   :  { %1131 = vmatmul.bf16.vlgmr.msrb.gmra.mxu0 %v6934_v6  ;;  %1145 = vmatmul.bf16.vlgmr.msrb.gmra.mxu1 %v6938_v11 }
 0x169   :  { %v1020_v39 = vpop.f32.mrf.mxu0 }
 0x16a   :  { %v1034_v41 = vpop.f32.mrf.mxu1  ;;  %v1021_v43 = vadd.f32 %v1020_v39, %v492_v40 }
 0x16c   :  { %v1035_v48 = vadd.f32 %v1034_v41, %v1021_v43 }
 0x16f   :  { %v992_v44 = vpop.f32.mrf.mxu2 }
 0x170   :  { %v993_v45 = vadd.f32 %v992_v44, %v491_v42  ;;  %v1006_v46 = vpop.f32.mrf.mxu3 }
 0x171   :  { %v1022_v47 = vpop.f32.mrf.mxu0 }
 0x172   :  { %v1007_v49 = vadd.f32 %v1006_v46, %v993_v45  ;;  %v1036_v50 = vpop.f32.mrf.mxu1  ;;  %v1023_v6 = vadd.f32 %v1022_v47, %v492_v40 }
 0x174   :  { %v6956_v51 = vpack.c.bf16 %v1035_v48, %v1007_v49  ;;  %v1037_v55 = vadd.f32 %v1036_v50, %v1023_v6 }
 0x176   :  { %1161 = vrot.lane.b32.xlu1 %v6956_v51, %s6764_s27 }
 0x177   :  { %v994_v11 = vpop.f32.mrf.mxu2 }
 0x178   :  { %v995_v52 = vadd.f32 %v994_v11, %v491_v42  ;;  %v1008_v53 = vpop.f32.mrf.mxu3 }
 0x179   :  { %v1076_v54 = vpop.f32.mrf.mxu0 }
 0x17a   :  { %v1009_v56 = vadd.f32 %v1008_v53, %v995_v52  ;;  %v1090_v58 = vpop.f32.mrf.mxu1  ;;  %v1077_v61 = vadd.f32 %v1076_v54, %v494_v57 }
 0x17c   :  { %v6961_v59 = vpack.c.bf16 %v1037_v55, %v1009_v56  ;;  %v1091_v7 = vadd.f32 %v1090_v58, %v1077_v61  ;;  %v1159_v61 = vrot.slane %v6956_v51, 4 }
 0x17e   :  { %1163 = vrot.lane.b32.xlu1 %v6961_v59, %s6764_s27 }
 0x17f   :  { %v1048_v0 = vpop.f32.mrf.mxu2 }
 0x180   :  { %v1049_v1 = vadd.f32 %v1048_v0, %v493_v60  ;;  %v1062_v2 = vpop.f32.mrf.mxu3 }
 0x181   :  { %v1078_v3 = vpop.f32.mrf.mxu0 }
 0x182   :  { %v1063_v8 = vadd.f32 %v1062_v2, %v1049_v1  ;;  %v1092_v10 = vpop.f32.mrf.mxu1  ;;  %v1079_v12 = vadd.f32 %v1078_v3, %v494_v57  ;;  %v1160_v1 = vrot.slane %v6961_v59, 4 }
 0x184   :  { %v1152_v9 = vpack.c.bf16 %v1091_v7, %v1063_v8  ;;  %v1093_v17 = vadd.f32 %v1092_v10, %v1079_v12 }
 0x186   :  { %1171 = vrot.lane.b32.xlu0 %v1152_v9, %s6764_s27  ;;  %v1192_v13 = vsel %vm1187_vm0, %v1152_v9, 0  ;;  %v1169_v47 = vrot.slane %v1152_v9, 4 }
 0x187   :  { %v1050_v14 = vpop.f32.mrf.mxu2  ;;  %1201 = vmatpush.bf16.xpose.msrb.mxu2 %v1192_v13 }
 0x188   :  { %v1051_v15 = vadd.f32 %v1050_v14, %v493_v60  ;;  %v1064_v16 = vpop.f32.mrf.mxu3  ;;  %v1268_v50 = vsel %vm1187_vm0, %v1169_v47, 0 }
 0x18a   :  { %v1065_v18 = vadd.f32 %v1064_v16, %v1051_v15 }
 0x18b   :  { %v1132_v20 = vpop.f32.mrf.mxu0  ;;  %v1146_v25 = vpop.f32.mrf.mxu1 }
 0x18c   :  { %v1155_v21 = vpack.c.bf16 %v1093_v17, %v1065_v18  ;;  %v1133_v24 = vadd.f32 %v1132_v20, %v496_v19 }
 0x18e   :  { %1173 = vrot.lane.b32.xlu0 %v1155_v21, %s6764_s27  ;;  %4932 = vmatmul.msk.bf16.vlgmr.msrb.gmra.mxu2 %vm1187_vm0, %v6956_v51  ;;  %v1211_v23 = vsel %vm1187_vm0, %v1155_v21, 0  ;;  %v1147_v29 = vadd.f32 %v1146_v25, %v1133_v24  ;;  %v1170_v52 = vrot.slane %v1155_v21, 4 }
 0x18f   :  { %1220 = vmatpush.bf16.xpose.msrb.mxu3 %v1211_v23 }
 0x190   :  { %v1104_v26 = vpop.f32.mrf.mxu2  ;;  %v1118_v27 = vpop.f32.mrf.mxu3  ;;  %v1287_v56 = vsel %vm1187_vm0, %v1170_v52, 0 }
 0x191   :  { %v1105_v28 = vadd.f32 %v1104_v26, %v495_v22 }
 0x193   :  { %v1119_v30 = vadd.f32 %v1118_v27, %v1105_v28  ;;  %v1134_v31 = vpop.f32.mrf.mxu0  ;;  %v1148_v39 = vpop.f32.mrf.mxu1 }
 0x194   :  { %v1135_v33 = vadd.f32 %v1134_v31, %v496_v19 }
 0x195   :  { %v6974_v32 = vpack.c.bf16 %v1147_v29, %v1119_v30 }
 0x196   :  { %4933 = vmatmul.msk.bf16.vlgmr.msrb.gmra.mxu3 %vm1187_vm0, %v6961_v59  ;;  %v1149_v41 = vadd.f32 %v1148_v39, %v1135_v33 }
 0x197   :  { %v1442_v34 = vsel %vm1440_vm1, %v6974_v32, 0  ;;  %v1179_v35 = vrot.slane %v6974_v32, 4 }
 0x198   :  { %v1106_v36 = vpop.f32.mrf.mxu2  ;;  %1451 = vmatpush.bf16.msra.mxu0 %v1442_v34  ;;  %v1120_v40 = vpop.f32.mrf.mxu3 }
 0x199   :  { %v1107_v37 = vadd.f32 %v1106_v36, %v495_v22  ;;  %v1518_v38 = vsel %vm1440_vm1, %v1179_v35, 0 }
 0x19b   :  { %v1121_v42 = vadd.f32 %v1120_v40, %v1107_v37 }
 0x19c   :  { %1527 = vmatpush.bf16.msrb.mxu0 %v1518_v38 }
 0x19d   :  { %v6982_v43 = vpack.c.bf16 %v1149_v41, %v1121_v42 }
 0x19f   :  { %v1461_v44 = vsel %vm1440_vm1, %v6982_v43, 0  ;;  %v1180_v45 = vrot.slane %v6982_v43, 4 }
 0x1a0   :  { %1470 = vmatpush.bf16.msra.mxu1 %v1461_v44 }
 0x1a1   :  { %v1537_v46 = vsel %vm1440_vm1, %v1180_v45, 0 }
 0x1a4   :  { %1546 = vmatpush.bf16.msrb.mxu1 %v1537_v46 }
 0x1e8   :  { %v1162_v11 = vpop.permute.xlu1 %1161 }
 0x1e9   :  { %v1165_v7 = vrot.slane %v1162_v11, 4 }
 0x1f0   :  { %v1164_v58 = vpop.permute.xlu1 %1163 }
 0x1f1   :  { %v1166_v9 = vrot.slane %v1164_v58, 4 }
 0x1f8   :  { %v1172_v48 = vpop.permute.xlu0 %1171 }
 0x1f9   :  { %v1230_v49 = vsel %vm1187_vm0, %v1172_v48, 0  ;;  %v1175_v6 = vrot.slane %v1172_v48, 4 }
 0x1fa   :  { %1239 = vmatpush.bf16.xpose.msra.mxu2 %v1230_v49 }
 0x1fb   :  { %v1306_v55 = vsel %vm1187_vm0, %v1175_v6, 0 }
 0x200   :  { %v1174_v53 = vpop.permute.xlu0 %1173 }
 0x201   :  { %v1249_v54 = vsel %vm1187_vm0, %v1174_v53, 0  ;;  %4934 = vmatmul.msk.bf16.vlgmr.msra.gmra.mxu2 %vm1187_vm0, %v1162_v11  ;;  %v1176_v57 = vrot.slane %v1174_v53, 4 }
 0x202   :  { %1277 = vmatpush.bf16.xpose.msrb.mxu2 %v1268_v50  ;;  %1258 = vmatpush.bf16.xpose.msra.mxu3 %v1249_v54 }
 0x203   :  { %v1325_v60 = vsel %vm1187_vm0, %v1176_v57, 0 }
 0x209   :  { %4935 = vmatmul.msk.bf16.vlgmr.msra.gmra.mxu3 %vm1187_vm0, %v1164_v58 }
 0x20a   :  { %1315 = vmatpush.bf16.xpose.msra.mxu2 %v1306_v55  ;;  %1296 = vmatpush.bf16.xpose.msrb.mxu3 %v1287_v56 }
 0x211   :  { %v1203_v0 = vpop.f32.mrf.mxu2  ;;  %4936 = vmatmul.msk.bf16.vlgmr.msrb.gmra.mxu2 %vm1187_vm0, %v1159_v61 }
 0x212   :  { %1334 = vmatpush.bf16.xpose.msra.mxu3 %v1325_v60  ;;  %v1341_v16 = vsel %vm1340_vm2, %v1203_v0, -inf }
 0x219   :  { %v1205_v2 = vpop.f32.mrf.mxu2  ;;  %v6999_v3 = vpop.f32.mrf.mxu3  ;;  %4937 = vmatmul.msk.bf16.vlgmr.msrb.gmra.mxu3 %vm1187_vm0, %v1160_v1 }
 0x21a   :  { %v1344_v19 = vsel %vm1340_vm2, %v6999_v3, -inf }
 0x221   :  { %v1224_v8 = vpop.f32.mrf.mxu3  ;;  %4938 = vmatmul.msk.bf16.vlgmr.msra.gmra.mxu2 %vm1187_vm0, %v1165_v7 }
 0x229   :  { %4939 = vmatmul.msk.bf16.vlgmr.msra.gmra.mxu3 %vm1187_vm0, %v1166_v9 }
 0x284   :  { %v1241_v10 = vpop.f32.mrf.mxu2 }
 0x285   :  { %v1347_v51 = vsel %vm1340_vm2, %v1241_v10, -inf }
 0x286   :  { %1348 = vmax.xlane.f32.xlu2 %v1347_v51 }
 0x28c   :  { %v1243_v12 = vpop.f32.mrf.mxu2  ;;  %v1260_v13 = vpop.f32.mrf.mxu3 }
 0x28d   :  { %v1350_v59 = vsel %vm1340_vm2, %v1260_v13, -inf }
 0x28e   :  { %1351 = vmax.xlane.f32.xlu2 %v1350_v59 }
 0x294   :  { %v1262_v14 = vpop.f32.mrf.mxu3  ;;  %v1279_v15 = vpop.f32.mrf.mxu2 }
 0x295   :  { %v1353_v27 = vsel %vm1340_vm2, %v1279_v15, -inf }
 0x296   :  { %1342 = vmax.xlane.f32.xlu2 %v1341_v16 }
 0x29c   :  { %v1281_v17 = vpop.f32.mrf.mxu2  ;;  %v7007_v18 = vpop.f32.mrf.mxu3 }
 0x29d   :  { %v1356_v28 = vsel %vm1340_vm2, %v7007_v18, -inf }
 0x29e   :  { %1345 = vmax.xlane.f32.xlu2 %v1344_v19 }
 0x2a4   :  { %v1300_v20 = vpop.f32.mrf.mxu3  ;;  %v7011_v21 = vpop.f32.mrf.mxu2 }
 0x2a5   :  { %v1359_v22 = vsel %vm1340_vm2, %v7011_v21, -inf }
 0x2a6   :  { %1360 = vmax.xlane.f32.xlu0 %v1359_v22 }
 0x2ac   :  { %v1319_v23 = vpop.f32.mrf.mxu2  ;;  %v1336_v24 = vpop.f32.mrf.mxu3 }
 0x2ad   :  { %v1362_v25 = vsel %vm1340_vm2, %v1336_v24, -inf }
 0x2ae   :  { %1363 = vmax.xlane.f32.xlu1 %v1362_v25 }
 0x2b4   :  { %v1338_v26 = vpop.f32.mrf.mxu3 }
 0x2b6   :  { %1354 = vmax.xlane.f32.xlu1 %v1353_v27 }
 0x2ba   :  { %1183 = vrot.lane.b32.xlu0 %v6982_v43, %s6764_s27 }
 0x2be   :  { %1357 = vmax.xlane.f32.xlu1 %v1356_v28 }
 0x2f9   :  { %v1349_v29 = vpop.xlane.xlu2 %1348 }
 0x2fa   :  { %v1367_v30 = vsub.f32 %v1241_v10, %v1349_v29 }
 0x2fc   :  { %v1377_v31 = vmul.f32 1.442695, %v1367_v30 }
 0x2fe   :  { %6309 = vpow2.f32 %v1377_v31 }
 0x301   :  { %v1352_v33 = vpop.xlane.xlu2 %1351 }
 0x302   :  { %v1368_v34 = vsub.f32 %v1260_v13, %v1352_v33 }
 0x304   :  { %v7021_v35 = vpop.eup %6309  ;;  %v1379_v36 = vmul.f32 1.442695, %v1368_v34 }
 0x305   :  { %v1395_v37 = vsel %vm1340_vm2, %v7021_v35, 0.0 }
 0x306   :  { %6311 = vpow2.f32 %v1379_v36  ;;  %1396 = vadd.xlane.f32.xlu2 %v1395_v37 }
 0x309   :  { %v1343_v38 = vpop.xlane.xlu2 %1342 }
 0x30a   :  { %v1365_v39 = vsub.f32 %v1203_v0, %v1343_v38 }
 0x30c   :  { %v6312_v40 = vpop.eup %6311  ;;  %v1373_v41 = vmul.f32 1.442695, %v1365_v39 }
 0x30d   :  { %v1398_v42 = vsel %vm1340_vm2, %v6312_v40, 0.0 }
 0x30e   :  { %6313 = vpow2.f32 %v1373_v41  ;;  %1399 = vadd.xlane.f32.xlu2 %v1398_v42 }
 0x311   :  { %v1346_v45 = vpop.xlane.xlu2 %1345 }
 0x312   :  { %v1366_v48 = vsub.f32 %v6999_v3, %v1346_v45 }
 0x314   :  { %v7026_v43 = vpop.eup %6313  ;;  %v1375_v6 = vmul.f32 1.442695, %v1366_v48 }
 0x315   :  { %v1389_v44 = vsel %vm1340_vm2, %v7026_v43, 0.0 }
 0x316   :  { %1390 = vadd.xlane.f32.xlu0 %v1389_v44 }
 0x319   :  { %v1361_v49 = vpop.xlane.xlu0 %1360 }
 0x31a   :  { %v1371_v7 = vsub.f32 %v7011_v21, %v1361_v49 }
 0x31c   :  { %v1385_v9 = vmul.f32 1.442695, %v1371_v7 }
 0x321   :  { %v1364_v46 = vpop.xlane.xlu1 %1363 }
 0x322   :  { %v1372_v47 = vsub.f32 %v1336_v24, %v1364_v46 }
 0x324   :  { %v1387_v50 = vmul.f32 1.442695, %v1372_v47 }
 0x326   :  { %6315 = vpow2.f32 %v1387_v50  ;;  %1181 = vrot.lane.b32.xlu2 %v6974_v32, %s6764_s27 }
 0x327   :  { %6317 = vpow2.f32 %v1375_v6 }
 0x329   :  { %v1355_v11 = vpop.xlane.xlu1 %1354 }
 0x32a   :  { %v1369_v53 = vsub.f32 %v1279_v15, %v1355_v11 }
 0x32c   :  { %v6316_v52 = vpop.eup %6315  ;;  %v1184_v54 = vpop.permute.xlu0 %1183  ;;  %v1381_v60 = vmul.f32 1.442695, %v1369_v53 }
 0x32d   :  { %v1186_v55 = vrot.slane %v1184_v54, 4  ;;  %v1499_v56 = vsel %vm1440_vm1, %v1184_v54, 0  ;;  %v1410_v57 = vsel %vm1340_vm2, %v6316_v52, 0.0  ;;  %v6318_v0 = vpop.eup %6317 }
 0x32e   :  { %1411 = vadd.xlane.f32.xlu1 %v1410_v57  ;;  %1508 = vmatpush.bf16.msrb.mxu3 %v1499_v56  ;;  %6319 = vpow2.f32 %v1381_v60  ;;  %v1392_v1 = vsel %vm1340_vm2, %v6318_v0, 0.0 }
 0x32f   :  { %v1575_v58 = vsel %vm1440_vm1, %v1186_v55, 0 }
 0x331   :  { %v1358_v61 = vpop.xlane.xlu1 %1357 }
 0x332   :  { %1584 = vmatpush.bf16.msra.mxu3 %v1575_v58  ;;  %v1370_v32 = vsub.f32 %v7007_v18, %v1358_v61 }
 0x334   :  { %v1383_v2 = vmul.f32 1.442695, %v1370_v32  ;;  %v6320_v3 = vpop.eup %6319 }
 0x335   :  { %v1401_v8 = vsel %vm1340_vm2, %v6320_v3, 0.0 }
 0x336   :  { %1393 = vadd.xlane.f32.xlu1 %v1392_v1  ;;  %6321 = vpow2.f32 %v1383_v2 }
 0x337   :  { %6323 = vpow2.f32 %v1385_v9  ;;  %v5006_v9 = vld [vmem:[#allocation11 + $0x70] sm:$0xf] }
 0x33c   :  { %v6322_v10 = vpop.eup %6321 }
 0x33d   :  { %v1404_v51 = vsel %vm1340_vm2, %v6322_v10, 0.0  ;;  %v6324_v12 = vpop.eup %6323 }
 0x33e   :  { %1402 = vadd.xlane.f32.xlu1 %v1401_v8  ;;  %v1407_v13 = vsel %vm1340_vm2, %v6324_v12, 0.0 }
 0x346   :  { %1405 = vadd.xlane.f32.xlu1 %v1404_v51  ;;  %v6053_v51 = vld [vmem:[#allocation11 + $0x74] sm:$0xf] }
 0x34f   :  { %1408 = vadd.xlane.f32.xlu2 %v1407_v13 }
 0x379   :  { %v1397_v59 = vpop.xlane.xlu2 %1396 }
 0x37a   :  { %6325 = vrcp.f32 %v1397_v59 }
 0x380   :  { %v6326_v15 = vpop.eup %6325 }
 0x381   :  { %v1400_v14 = vpop.xlane.xlu2 %1399  ;;  %v1423_v17 = vmul.f32 %v6326_v15, %v7021_v35  ;;  %v4998_v15 = vld [vmem:[#allocation11 + $0x60] sm:$0xf] }
 0x382   :  { %6327 = vrcp.f32 %v1400_v14  ;;  %v5008_v14 = vld [vmem:[#allocation11 + $0x78] sm:$0xf0] }
 0x383   :  { %v1431_v24 = vpack.c.bf16 %v1423_v17, %v1423_v17  ;;  %v5011_v17 = vor.u32 %v6053_v51, %v5008_v14  ;;  %v4952_v51 = vld [vmem:[#allocation11 + $0x8] sm:$0xf0] }
 0x388   :  { %v6328_v16 = vpop.eup %6327 }
 0x389   :  { %v1424_v18 = vmul.f32 %v6328_v16, %v6312_v40  ;;  %v1182_v19 = vpop.permute.xlu2 %1181  ;;  %v1391_v20 = vpop.xlane.xlu0 %1390  ;;  %v6052_v16 = vld [vmem:[#allocation11 + $0x64] sm:$0xf0] }
 0x38a   :  { %v1185_v21 = vrot.slane %v1182_v19, 4  ;;  %v1480_v22 = vsel %vm1440_vm1, %v1182_v19, 0  ;;  %6329 = vrcp.f32 %v1391_v20  ;;  %v5000_v19 = vld [vmem:[#allocation11 + $0x68] sm:$0xf0]  ;;  %v4999_v20 = vor.u32 %v6052_v16, %v4998_v15  ;;  %v5070_v16 = vld [vmem:[#allocation11 + $0xf0] sm:$0xf] }
 0x38b   :  { %v1432_v23 = vpack.c.bf16 %v1424_v18, %v1424_v18  ;;  %1489 = vmatpush.bf16.msrb.mxu2 %v1480_v22  ;;  %v6051_v18 = vld [vmem:[#allocation11 + $0x64] sm:$0xf]  ;;  %v4990_v22 = vld [vmem:[#allocation11 + $0x50] sm:$0xf] }
 0x38c   :  { %v1556_v25 = vsel %vm1440_vm1, %v1185_v21, 0  ;;  %v5003_v21 = vor.u32 %v6051_v18, %v5000_v19  ;;  %v6069_v18 = vld [vmem:[#allocation11 + $0xf4] sm:$0xf] }
 0x38d   :  { %4943 = vmatmul.msk.bf16.vlgmr.msrb.gmra.mxu3 %vm1340_vm2, %v1432_v23  ;;  %v6050_v23 = vld [vmem:[#allocation11 + $0x54] sm:$0xf0] }
 0x38e   :  { %4942 = vmatmul.msk.bf16.vlgmr.msrb.gmra.mxu2 %vm1340_vm2, %v1431_v24  ;;  %v6049_v24 = vld [vmem:[#allocation11 + $0x54] sm:$0xf] }
 0x38f   :  { %1565 = vmatpush.bf16.msra.mxu2 %v1556_v25  ;;  %v4992_v25 = vld [vmem:[#allocation11 + $0x58] sm:$0xf0] }
 0x390   :  { %v6330_v26 = vpop.eup %6329 }
 0x391   :  { %v1421_v27 = vmul.f32 %v6330_v26, %v7026_v43  ;;  %v4991_v26 = vor.u32 %v6050_v23, %v4990_v22  ;;  %v6068_v22 = vld [vmem:[#allocation11 + $0xe4] sm:$0xf0] }
 0x393   :  { %v1429_v28 = vpack.c.bf16 %v1421_v27, %v1421_v27  ;;  %1856 = vmatpush.bf16.msrb.mxu2 %v5011_v17  ;;  %v6070_v17 = vld [vmem:[#allocation11 + $0xf4] sm:$0xf0] }
 0x394   :  { %v5071_v19 = vor.u32 %v6070_v17, %v5070_v16 }
 0x395   :  { %4940 = vmatmul.msk.bf16.vlgmr.msra.gmra.mxu0 %vm1340_vm2, %v1429_v28  ;;  %v4995_v28 = vor.u32 %v6049_v24, %v4992_v25  ;;  %v6067_v24 = vld [vmem:[#allocation11 + $0xe4] sm:$0xf]  ;;  %v5064_v25 = vld [vmem:[#allocation11 + $0xe8] sm:$0xf0] }
 0x397   :  { %1857 = vmatpush.bf16.msrb.mxu2 %v5003_v21  ;;  %v5062_v21 = vld [vmem:[#allocation11 + $0xe0] sm:$0xf] }
 0x39b   :  { %1858 = vmatpush.bf16.msrb.mxu2 %v4995_v28  ;;  %v5054_v28 = vld [vmem:[#allocation11 + $0xd0] sm:$0xf] }
 0x3a1   :  { %v1412_v29 = vpop.xlane.xlu1 %1411 }
 0x3a2   :  { %6331 = vrcp.f32 %v1412_v29  ;;  %v4982_v29 = vld [vmem:[#allocation11 + $0x40] sm:$0xf] }
 0x3a8   :  { %v6332_v30 = vpop.eup %6331 }
 0x3a9   :  { %v1428_v31 = vmul.f32 %v6332_v30, %v6316_v52  ;;  %v1394_v33 = vpop.xlane.xlu1 %1393  ;;  %v6048_v30 = vld [vmem:[#allocation11 + $0x44] sm:$0xf0] }
 0x3aa   :  { %6333 = vrcp.f32 %v1394_v33 }
 0x3ab   :  { %v1436_v34 = vpack.c.bf16 %v1428_v31, %v1428_v31 }
 0x3ad   :  { %4947 = vmatmul.msk.bf16.vlgmr.msra.gmra.mxu3 %vm1340_vm2, %v1436_v34  ;;  %v6047_v34 = vld [vmem:[#allocation11 + $0x44] sm:$0xf] }
 0x3b0   :  { %v6334_v35 = vpop.eup %6333 }
 0x3b1   :  { %v1422_v36 = vmul.f32 %v6334_v35, %v6318_v0  ;;  %v1403_v37 = vpop.xlane.xlu1 %1402  ;;  %v4984_v35 = vld [vmem:[#allocation11 + $0x48] sm:$0xf0] }
 0x3b2   :  { %6335 = vrcp.f32 %v1403_v37  ;;  %v4983_v37 = vor.u32 %v6048_v30, %v4982_v29  ;;  %v6066_v29 = vld [vmem:[#allocation11 + $0xd4] sm:$0xf0]  ;;  %v6065_v30 = vld [vmem:[#allocation11 + $0xd4] sm:$0xf] }
 0x3b3   :  { %v1430_v38 = vpack.c.bf16 %v1422_v36, %v1422_v36 }
 0x3b5   :  { %4941 = vmatmul.msk.bf16.vlgmr.msra.gmra.mxu1 %vm1340_vm2, %v1430_v38 }
 0x3b6   :  { %1842 = vmatpush.bf16.msra.mxu1 %v5071_v19 }
 0x3b8   :  { %v6336_v39 = vpop.eup %6335 }
 0x3b9   :  { %v1425_v40 = vmul.f32 %v6336_v39, %v6320_v3  ;;  %v1406_v41 = vpop.xlane.xlu1 %1405 }
 0x3ba   :  { %6337 = vrcp.f32 %v1406_v41  ;;  %v4974_v41 = vld [vmem:[#allocation11 + $0x30] sm:$0xf] }
 0x3bb   :  { %v1433_v42 = vpack.c.bf16 %v1425_v40, %v1425_v40  ;;  %v4987_v40 = vor.u32 %v6047_v34, %v4984_v35  ;;  %v5046_v35 = vld [vmem:[#allocation11 + $0xc0] sm:$0xf] }
 0x3bd   :  { %4944 = vmatmul.msk.bf16.vlgmr.msrb.gmra.mxu0 %vm1340_vm2, %v1433_v42  ;;  %v6046_v42 = vld [vmem:[#allocation11 + $0x34] sm:$0xf0]  ;;  %1859 = vmatpush.bf16.msrb.mxu2 %v4987_v40  ;;  %v5048_v40 = vld [vmem:[#allocation11 + $0xc8] sm:$0xf0] }
 0x3c0   :  { %v6338_v43 = vpop.eup %6337 }
 0x3c1   :  { %v1426_v44 = vmul.f32 %v6338_v43, %v6322_v10  ;;  %v6054_v10 = vld [vmem:[#allocation11 + $0x74] sm:$0xf0]  ;;  %v6045_v43 = vld [vmem:[#allocation11 + $0x34] sm:$0xf] }
 0x3c2   :  { %v1409_v45 = vpop.xlane.xlu2 %1408  ;;  %v5007_v59 = vor.u32 %v6054_v10, %v5006_v9  ;;  %v6039_v10 = vld [vmem:[#allocation11 + $0x4] sm:$0xf] }
 0x3c3   :  { %v1434_v46 = vpack.c.bf16 %v1426_v44, %v1426_v44  ;;  %6339 = vrcp.f32 %v1409_v45  ;;  %v4976_v44 = vld [vmem:[#allocation11 + $0x38] sm:$0xf0]  ;;  %v4955_v14 = vor.u32 %v6039_v10, %v4952_v51 }
 0x3c4   :  { %1828 = vmatpush.bf16.msra.mxu0 %v5007_v59 }
 0x3c5   :  { %4945 = vmatmul.msk.bf16.vlgmr.msrb.gmra.mxu1 %vm1340_vm2, %v1434_v46  ;;  %v4975_v46 = vor.u32 %v6046_v42, %v4974_v41 }
 0x3c8   :  { %1829 = vmatpush.bf16.msra.mxu0 %v4999_v20  ;;  %v5072_v20 = vld [vmem:[#allocation11 + $0xf8] sm:$0xf0] }
 0x3c9   :  { %v6340_v47 = vpop.eup %6339  ;;  %v5075_v23 = vor.u32 %v6069_v18, %v5072_v20 }
 0x3ca   :  { %v1427_v48 = vmul.f32 %v6340_v47, %v6324_v12  ;;  %v4979_v47 = vor.u32 %v6045_v43, %v4976_v44  ;;  %v5038_v43 = vld [vmem:[#allocation11 + $0xb0] sm:$0xf]  ;;  %v6062_v44 = vld [vmem:[#allocation11 + $0xb4] sm:$0xf0] }
 0x3cb   :  { %1870 = vmatpush.bf16.msrb.mxu3 %v5075_v23 }
 0x3cc   :  { %v1435_v49 = vpack.c.bf16 %v1427_v48, %v1427_v48  ;;  %1830 = vmatpush.bf16.msra.mxu0 %v4991_v26  ;;  %v4966_v48 = vld [vmem:[#allocation11 + $0x20] sm:$0xf]  ;;  %1860 = vmatpush.bf16.msrb.mxu2 %v4979_v47  ;;  %v5063_v26 = vor.u32 %v6068_v22, %v5062_v21  ;;  %v5040_v47 = vld [vmem:[#allocation11 + $0xb8] sm:$0xf0] }
 0x3ce   :  { %4946 = vmatmul.msk.bf16.vlgmr.msra.gmra.mxu2 %vm1340_vm2, %v1435_v49  ;;  %v6044_v49 = vld [vmem:[#allocation11 + $0x24] sm:$0xf0]  ;;  %1843 = vmatpush.bf16.msra.mxu1 %v5063_v26 }
 0x3d0   :  { %1831 = vmatpush.bf16.msra.mxu0 %v4983_v37  ;;  %v6063_v37 = vld [vmem:[#allocation11 + $0xc4] sm:$0xf] }
 0x3d1   :  { %v5051_v42 = vor.u32 %v6063_v37, %v5048_v40  ;;  %v6768_v40 = vmov 256.0  }
 0x3d2   :  { %6341 = vrcp.f32 %v6768_v40  ;;  %v6096_v40 = vld [vmem:[#allocation19 + $0x44] sm:$0xf0] }
 0x3d4   :  { %1832 = vmatpush.bf16.msra.mxu0 %v4975_v46  ;;  %v6061_v46 = vld [vmem:[#allocation11 + $0xb4] sm:$0xf] }
 0x410   :  { %v1510_v50 = vpop.f32.mrf.mxu3 }
 0x411   :  { %v1593_v6 = vpack.c.bf16 %v1510_v50, %v1510_v50  ;;  %v1491_v11 = vpop.f32.mrf.mxu2 }
 0x412   :  { %v1592_v52 = vpack.c.bf16 %v1491_v11, %v1491_v11  ;;  %v1453_v53 = vpop.f32.mrf.mxu0  ;;  %v4968_v11 = vld [vmem:[#allocation11 + $0x28] sm:$0xf0] }
 0x413   :  { %v1606_v54 = vunpack.c.l.b16 %v1593_v6  ;;  %v1590_v0 = vpack.c.bf16 %v1453_v53, %v1453_v53  ;;  %v6043_v6 = vld [vmem:[#allocation11 + $0x24] sm:$0xf] }
 0x414   :  { %v1605_v55 = vunpack.c.l.b16 %v1592_v52  ;;  %v4967_v52 = vor.u32 %v6044_v49, %v4966_v48  ;;  %v4971_v53 = vor.u32 %v6043_v6, %v4968_v11  ;;  %v5039_v48 = vor.u32 %v6062_v44, %v5038_v43  ;;  %v6060_v6 = vld [vmem:[#allocation11 + $0xa4] sm:$0xf0]  ;;  %v6059_v11 = vld [vmem:[#allocation11 + $0xa4] sm:$0xf] }
 0x415   :  { %v7057_v2 = vunpack.c.l.b16 %v1590_v0  ;;  %v5043_v49 = vor.u32 %v6061_v46, %v5040_v47  ;;  %v6078_v43 = vld [vmem:[#allocation16 + $0x38] sm:$0xff]  ;;  %v6077_v46 = vld [vmem:[#allocation16 + $0x30] sm:$0xff] }
 0x416   :  { %v1607_v56 = vpack.c.b16 %v1606_v54, %v1605_v55  ;;  %v4958_v54 = vld [vmem:[#allocation11 + $0x10] sm:$0xf]  ;;  %v6042_v55 = vld [vmem:[#allocation11 + $0x14] sm:$0xf0]  ;;  %1833 = vmatpush.bf16.msra.mxu0 %v4967_v52  ;;  %1861 = vmatpush.bf16.msrb.mxu2 %v4971_v53  ;;  %v5032_v52 = vld [vmem:[#allocation11 + $0xa8] sm:$0xf0] }
 0x417   :  { %v6085_v47 = vld [vmem:[#allocation16 + $0x70] sm:$0xff] }
 0x418   :  { %v1512_v57 = vpop.f32.mrf.mxu3  ;;  %1608 = vrot.lane.b32.xlu1 %v1607_v56, %s6764_s27  ;;  %v6041_v56 = vld [vmem:[#allocation11 + $0x14] sm:$0xf] }
 0x419   :  { %v1493_v58 = vpop.f32.mrf.mxu2  ;;  %v4960_v57 = vld [vmem:[#allocation11 + $0x18] sm:$0xf0] }
 0x41a   :  { %v1455_v60 = vpop.f32.mrf.mxu0 }
 0x41b   :  { %v4959_v60 = vor.u32 %v6042_v55, %v4958_v54  ;;  %v5035_v54 = vor.u32 %v6059_v11, %v5032_v52  ;;  %v5022_v55 = vld [vmem:[#allocation11 + $0x90] sm:$0xf]  ;;  %v6075_v11 = vld [vmem:[#allocation16 + $0x20] sm:$0xff] }
 0x41c   :  { %v6083_v52 = vld [vmem:[#allocation16 + $0x60] sm:$0xff] }
 0x41d   :  { %1834 = vmatpush.bf16.msra.mxu0 %v4959_v60 }
 0x430   :  { %v7055_v61 = vpop.f32.mrf.mxu3 }
 0x431   :  { %v1597_v58 = vpack.c.bf16 %v7055_v61, %v7055_v61 }
 0x432   :  { %v1472_v32 = vpop.f32.mrf.mxu1 }
 0x433   :  { %v1591_v1 = vpack.c.bf16 %v1472_v32, %v1472_v32  ;;  %v4963_v32 = vor.u32 %v6041_v56, %v4960_v57  ;;  %v6058_v56 = vld [vmem:[#allocation11 + $0x94] sm:$0xf0]  ;;  %v6057_v57 = vld [vmem:[#allocation11 + $0x94] sm:$0xf] }
 0x434   :  { %v5023_v60 = vor.u32 %v6058_v56, %v5022_v55  ;;  %v6074_v56 = vld [vmem:[#allocation16 + $0x18] sm:$0xff] }
 0x435   :  { %v7059_v3 = vunpack.c.l.b16 %v1591_v1  ;;  %v4950_v1 = vld [vmem:[#allocation11] sm:$0xf]  ;;  %1862 = vmatpush.bf16.msrb.mxu2 %v4963_v32 }
 0x436   :  { %v5014_v32 = vld [vmem:[#allocation11 + $0x80] sm:$0xf] }
 0x437   :  { %v1602_v7 = vpack.c.b16 %v7059_v3, %v7057_v2 }
 0x438   :  { %v1588_v8 = vpop.f32.mrf.mxu3 }
 0x439   :  { %v6040_v8 = vld [vmem:[#allocation11 + $0x4] sm:$0xf0]  ;;  %1863 = vmatpush.bf16.msrb.mxu2 %v4955_v14 }
 0x43a   :  { %v1474_v12 = vpop.f32.mrf.mxu1  ;;  %v1529_v13 = vpop.f32.mrf.mxu0  ;;  %v4951_v59 = vor.u32 %v6040_v8, %v4950_v1  ;;  %v6056_v1 = vld [vmem:[#allocation11 + $0x84] sm:$0xf0]  ;;  %v6055_v8 = vld [vmem:[#allocation11 + $0x84] sm:$0xf] }
 0x43b   :  { %v1594_v27 = vpack.c.bf16 %v1529_v13, %v1529_v13  ;;  %v1618_v12 = vunpack.c.l.b16 %v1597_v58  ;;  %v5024_v58 = vld [vmem:[#allocation11 + $0x98] sm:$0xf0]  ;;  %v5015_v10 = vor.u32 %v6056_v1, %v5014_v32 }
 0x43c   :  { %1835 = vmatpush.bf16.msra.mxu0 %v4951_v59  ;;  %v6073_v32 = vld [vmem:[#allocation16 + $0x10] sm:$0xff] }
 0x43d   :  { %v7063_v38 = vunpack.c.l.b16 %v1594_v27  ;;  %v5067_v27 = vor.u32 %v6067_v24, %v5064_v25  ;;  %v6081_v1 = vld [vmem:[#allocation16 + $0x50] sm:$0xff] }
 0x43f   :  { %1871 = vmatpush.bf16.msrb.mxu3 %v5067_v27 }
 0x440   :  { %2103 = vmatpush.bf16.msrb.mxu0 %v6078_v43 }
 0x442   :  { %v1531_v31 = vpop.f32.mrf.mxu0  ;;  %v1548_v33 = vpop.f32.mrf.mxu1 }
 0x443   :  { %v1595_v36 = vpack.c.bf16 %v1548_v33, %v1548_v33  ;;  %v5056_v31 = vld [vmem:[#allocation11 + $0xd8] sm:$0xf0]  ;;  %v5055_v33 = vor.u32 %v6066_v29, %v5054_v28 }
 0x444   :  { %v5059_v34 = vor.u32 %v6065_v30, %v5056_v31  ;;  %2104 = vmatpush.bf16.msrb.mxu0 %v6077_v46 }
 0x445   :  { %v7065_v39 = vunpack.c.l.b16 %v1595_v36  ;;  %v6064_v36 = vld [vmem:[#allocation11 + $0xc4] sm:$0xf0]  ;;  %1844 = vmatpush.bf16.msra.mxu1 %v5055_v33 }
 0x446   :  { %v5047_v41 = vor.u32 %v6064_v36, %v5046_v35  ;;  %1872 = vmatpush.bf16.msrb.mxu3 %v5059_v34 }
 0x447   :  { %v1614_v45 = vpack.c.b16 %v7065_v39, %v7063_v38 }
 0x449   :  { %1845 = vmatpush.bf16.msra.mxu1 %v5047_v41  ;;  %v6342_v41 = vpop.eup %6341 }
 0x44a   :  { %v1550_v50 = vpop.f32.mrf.mxu1  ;;  %1873 = vmatpush.bf16.msrb.mxu3 %v5051_v42  ;;  %vm1901_vm3 = vweird.f32 %v6342_v41 }
 0x44b   :  { %v5030_v50 = vld [vmem:[#allocation11 + $0xa0] sm:$0xf] }
 0x44c   :  { %v5031_v53 = vor.u32 %v6060_v6, %v5030_v50  ;;  %v6084_v50 = vld [vmem:[#allocation16 + $0x68] sm:$0xff] }
 0x44d   :  { %1846 = vmatpush.bf16.msra.mxu1 %v5039_v48 }
 0x44e   :  { %1874 = vmatpush.bf16.msrb.mxu3 %v5043_v49  ;;  %v6076_v49 = vld [vmem:[#allocation16 + $0x28] sm:$0xff] }
 0x44f   :  { %2105 = vmatpush.bf16.msrb.mxu0 %v6076_v49 }
 0x451   :  { %v1567_v0 = vpop.f32.mrf.mxu2  ;;  %1847 = vmatpush.bf16.msra.mxu1 %v5031_v53 }
 0x452   :  { %v1596_v9 = vpack.c.bf16 %v1567_v0, %v1567_v0  ;;  %1875 = vmatpush.bf16.msrb.mxu3 %v5035_v54  ;;  %v5027_v0 = vor.u32 %v6057_v57, %v5024_v58  ;;  %v6082_v57 = vld [vmem:[#allocation16 + $0x58] sm:$0xff] }
 0x453   :  { %2106 = vmatpush.bf16.msrb.mxu0 %v6075_v11  ;;  %v1888_v11 = vld [vmem:[#allocation13] sm:$0x3] }
 0x454   :  { %v1617_v13 = vunpack.c.l.b16 %v1596_v9  ;;  %v5016_v9 = vld [vmem:[#allocation11 + $0x88] sm:$0xf0] }
 0x455   :  { %1848 = vmatpush.bf16.msra.mxu1 %v5023_v60  ;;  %v5019_v51 = vor.u32 %v6055_v8, %v5016_v9 }
 0x456   :  { %v1619_v15 = vpack.c.b16 %v1618_v12, %v1617_v13  ;;  %1876 = vmatpush.bf16.msrb.mxu3 %v5027_v0 }
 0x457   :  { %2107 = vmatpush.bf16.msrb.mxu0 %v6074_v56 }
 0x458   :  { %1620 = vrot.lane.b32.xlu2 %v1619_v15, %s6764_s27  ;;  %v1662_v15 = vld [vmem:[%s7434_s6] sm:$0x3] }
 0x459   :  { %v1569_v61 = vpop.f32.mrf.mxu2  ;;  %1849 = vmatpush.bf16.msra.mxu1 %v5015_v10  ;;  %v1665_v17 = vperm.slane %v1662_v15, 1  ;;  %v6072_v10 = vld [vmem:[#allocation16 + $0x8] sm:$0xff] }
 0x45a   :  { %1877 = vmatpush.bf16.msrb.mxu3 %v5019_v51  ;;  %v1664_v61 = vperm.slane %v1662_v15, 0  ;;  %v6080_v51 = vld [vmem:[#allocation16 + $0x48] sm:$0xff] }
 0x45b   :  { %2108 = vmatpush.bf16.msrb.mxu0 %v6073_v32 }
 0x45f   :  { %2109 = vmatpush.bf16.msrb.mxu0 %v6072_v10 }
 0x48a   :  { %v1609_v12 = vpop.permute.xlu1 %1608 }
 0x48b   :  { %v1624_v13 = vsel %vm1187_vm0, %v1602_v7, %v1609_v12  ;;  %v6071_v12 = vld [vmem:[#allocation16] sm:$0xff] }
 0x48c   :  { %1836 = vmatmul.bf16.vlgmr.msra.gmra.mxu0 %v1624_v13  ;;  %1864 = vmatmul.bf16.vlgmr.msrb.gmra.mxu2 %v1624_v13  ;;  %v6079_v13 = vld [vmem:[#allocation16 + $0x40] sm:$0xff] }
 0x48d   :  { %2110 = vmatpush.bf16.msrb.mxu0 %v6071_v12 }
 0x4b2   :  { %v1621_v59 = vpop.permute.xlu2 %1620 }
 0x4b3   :  { %v1628_v14 = vsel %vm1187_vm0, %v1614_v45, %v1621_v59 }
 0x4b4   :  { %1850 = vmatmul.bf16.vlgmr.msra.gmra.mxu1 %v1628_v14  ;;  %1878 = vmatmul.bf16.vlgmr.msrb.gmra.mxu3 %v1628_v14 }
 0x509   :  { %v1837_v2 = vpop.f32.mrf.mxu0 }
 0x50a   :  { %v1838_v16 = vadd.f32 %v1837_v2, %v1664_v61 }
 0x50f   :  { %v1865_v3 = vpop.f32.mrf.mxu2 }
 0x510   :  { %v1866_v19 = vadd.f32 %v1865_v3, %v1665_v17 }
 0x511   :  { %v1839_v39 = vpop.f32.mrf.mxu0 }
 0x512   :  { %v1840_v24 = vadd.f32 %v1839_v39, %v1664_v61 }
 0x517   :  { %v1867_v22 = vpop.f32.mrf.mxu2 }
 0x518   :  { %v1868_v28 = vadd.f32 %v1867_v22, %v1665_v17 }
 0x531   :  { %v1851_v7 = vpop.f32.mrf.mxu1 }
 0x532   :  { %v1852_v18 = vadd.f32 %v1851_v7, %v1838_v16  ;;  %v5198_v7 = vld [vmem:[#allocation19 + $0x70] sm:$0xf]  ;;  %v6102_v16 = vld [vmem:[#allocation19 + $0x74] sm:$0xf0] }
 0x534   :  { %v7084_v21 = vadd.f32 %v1852_v18, %v6924_v62  ;;  %v5199_v18 = vor.u32 %v6102_v16, %v5198_v7  ;;  %v6094_v7 = vld [vmem:[#allocation19 + $0x34] sm:$0xf0]  ;;  %v6093_v16 = vld [vmem:[#allocation19 + $0x34] sm:$0xf] }
 0x536   :  { %v1905_v26 = vmul.f32 %v7084_v21, %v7084_v21  ;;  %2236 = vmatpush.bf16.msra.mxu2 %v5199_v18  ;;  %v5168_v18 = vld [vmem:[#allocation19 + $0x38] sm:$0xf0] }
 0x537   :  { %v1879_v20 = vpop.f32.mrf.mxu3 }
 0x538   :  { %v1880_v38 = vadd.f32 %v1879_v20, %v1866_v19  ;;  %v6101_v19 = vld [vmem:[#allocation19 + $0x74] sm:$0xf]  ;;  %v5200_v20 = vld [vmem:[#allocation19 + $0x78] sm:$0xf0] }
 0x539   :  { %v1853_v23 = vpop.f32.mrf.mxu1  ;;  %v5203_v22 = vor.u32 %v6101_v19, %v5200_v20  ;;  %v5171_v19 = vor.u32 %v6093_v16, %v5168_v18  ;;  %v5158_v20 = vld [vmem:[#allocation19 + $0x20] sm:$0xf]  ;;  %v5544_v16 = vld [vmem:[#allocation8 + $0x5b8] sm:$0xf0] }
 0x53a   :  { %v7087_v45 = vadd.f32 %v1880_v38, %v6928_v4  ;;  %v1854_v62 = vadd.f32 %v1853_v23, %v1840_v24  ;;  %v5190_v38 = vld [vmem:[#allocation19 + $0x60] sm:$0xf]  ;;  %v6100_v23 = vld [vmem:[#allocation19 + $0x64] sm:$0xf0]  ;;  %v6099_v24 = vld [vmem:[#allocation19 + $0x64] sm:$0xf] }
 0x53b   :  { %2250 = vmatpush.bf16.msra.mxu3 %v5203_v22 }
 0x53c   :  { %v1890_v25 = vadd.f32 %v7087_v45, %v7084_v21  ;;  %v1906_v27 = vmul.f32 %v7087_v45, %v7087_v45  ;;  %v7096_v4 = vadd.f32 %v1854_v62, %v6926_v63  ;;  %v1897_v63 = vmul.f32 256.0, %v6342_v41  ;;  %v5182_v62 = vld [vmem:[#allocation19 + $0x50] sm:$0xf] }
 0x53e   :  { %1891 = vadd.xlane.f32.xlu0 %v1890_v25  ;;  %v1909_v29 = vadd.f32 %v1906_v27, %v1905_v26  ;;  %v1907_v36 = vmul.f32 %v7096_v4, %v7096_v4  ;;  %v1898_v42 = vsub.f32 1.0, %v1897_v63  ;;  %v5192_v25 = vld [vmem:[#allocation19 + $0x68] sm:$0xf0]  ;;  %v5191_v26 = vor.u32 %v6100_v23, %v5190_v38  ;;  %v6095_v63 = vld [vmem:[#allocation19 + $0x44] sm:$0xf] }
 0x53f   :  { %v1881_v30 = vpop.f32.mrf.mxu3  ;;  %v6092_v38 = vld [vmem:[#allocation19 + $0x24] sm:$0xf0]  ;;  %v5160_v23 = vld [vmem:[#allocation19 + $0x28] sm:$0xf0] }
 0x540   :  { %v1882_v31 = vadd.f32 %v1881_v30, %v1868_v28  ;;  %1910 = vadd.xlane.f32.xlu1 %v1909_v29  ;;  %v1899_v44 = vmul.f32 %v6342_v41, %v1898_v42  ;;  %v5195_v28 = vor.u32 %v6099_v24, %v5192_v25  ;;  %v6098_v29 = vld [vmem:[#allocation19 + $0x54] sm:$0xf0]  ;;  %2237 = vmatpush.bf16.msra.mxu2 %v5191_v26  ;;  %v5176_v42 = vld [vmem:[#allocation19 + $0x48] sm:$0xf0]  ;;  %v5150_v25 = vld [vmem:[#allocation19 + $0x10] sm:$0xf] }
 0x541   :  { %v5159_v22 = vor.u32 %v6092_v38, %v5158_v20  ;;  %v6090_v26 = vld [vmem:[#allocation19 + $0x14] sm:$0xf0] }
 0x542   :  { %v7099_v33 = vadd.f32 %v1882_v31, %v6930_v5  ;;  %v6086_v5 = vld [vmem:[#allocation16 + $0x78] sm:$0xff]  ;;  %v1900_v48 = vadd.f32 %v6342_v41, %v1899_v44  ;;  %2251 = vmatpush.bf16.msra.mxu3 %v5195_v28  ;;  %v5179_v44 = vor.u32 %v6095_v63, %v5176_v42  ;;  %v5151_v28 = vor.u32 %v6090_v26, %v5150_v25  ;;  %v6306_v63 = vld [vmem:[#allocation17] ss:$0 sm:$0xff] }
 0x543   :  { %2117 = vmatpush.bf16.msrb.mxu1 %v6086_v5  ;;  %v6097_v31 = vld [vmem:[#allocation19 + $0x54] sm:$0xf] }
 0x544   :  { %v1893_v34 = vadd.f32 %v7099_v33, %v7096_v4  ;;  %v1908_v35 = vmul.f32 %v7099_v33, %v7099_v33  ;;  %v7107_v6 = vsel %vm1901_vm3, %v6342_v41, %v1900_v48 }
 0x546   :  { %1894 = vadd.xlane.f32.xlu0 %v1893_v34  ;;  %v1912_v37 = vadd.f32 %v1908_v35, %v1907_v36  ;;  %v5184_v34 = vld [vmem:[#allocation19 + $0x58] sm:$0xf0]  ;;  %v5183_v35 = vor.u32 %v6098_v29, %v5182_v62 }
 0x547   :  { %2118 = vmatpush.bf16.msrb.mxu1 %v6085_v47  ;;  %v5187_v36 = vor.u32 %v6097_v31, %v5184_v34  ;;  %v5152_v62 = vld [vmem:[#allocation19 + $0x18] sm:$0xf0]  ;;  %v6088_v31 = vld [vmem:[#allocation19 + $0x4] sm:$0xf0]  ;;  %v6087_v34 = vld [vmem:[#allocation19 + $0x4] sm:$0xf] }
 0x548   :  { %2238 = vmatpush.bf16.msra.mxu2 %v5183_v35 }
 0x549   :  { %2252 = vmatpush.bf16.msra.mxu3 %v5187_v36  ;;  %v5144_v36 = vld [vmem:[#allocation19 + $0x8] sm:$0xf0] }
 0x54b   :  { %2119 = vmatpush.bf16.msrb.mxu1 %v6084_v50 }
 0x54d   :  { %2253 = vmatpush.bf16.msra.mxu3 %v5179_v44 }
 0x54e   :  { %1913 = vadd.xlane.f32.xlu0 %v1912_v37  ;;  %v5174_v37 = vld [vmem:[#allocation19 + $0x40] sm:$0xf] }
 0x54f   :  { %2120 = vmatpush.bf16.msrb.mxu1 %v6083_v52  ;;  %v5175_v43 = vor.u32 %v6096_v40, %v5174_v37  ;;  %v5147_v37 = vor.u32 %v6087_v34, %v5144_v36  ;;  %v5326_v36 = vld [vmem:[#allocation8 + $0x3f0] sm:$0xf] }
 0x551   :  { %2239 = vmatpush.bf16.msra.mxu2 %v5175_v43  ;;  %2254 = vmatpush.bf16.msra.mxu3 %v5171_v19 }
 0x553   :  { %2121 = vmatpush.bf16.msrb.mxu1 %v6082_v57 }
 0x557   :  { %2122 = vmatpush.bf16.msrb.mxu1 %v6081_v1 }
 0x55b   :  { %2123 = vmatpush.bf16.msrb.mxu1 %v6080_v51 }
 0x55f   :  { %2124 = vmatpush.bf16.msrb.mxu1 %v6079_v13 }
 0x5b1   :  { %v1892_v53 = vpop.xlane.xlu0 %1891 }
 0x5b2   :  { %v7110_v54 = vmul.f32 %v7107_v6, %v1892_v53 }
 0x5b3   :  { %v1911_v55 = vpop.xlane.xlu1 %1910 }
 0x5b4   :  { %v1915_v58 = vmul.f32 %v1911_v55, %v7107_v6  ;;  %v1917_v60 = vmul.f32 %v7110_v54, %v7110_v54  ;;  %v1921_v52 = vsub.f32 %v7084_v21, %v7110_v54  ;;  %v1922_v53 = vsub.f32 %v7087_v45, %v7110_v54 }
 0x5b6   :  { %v1919_v0 = vsub.f32 %v1915_v58, %v1917_v60  ;;  %v1889_v58 = vld [vmem:[#allocation14] sm:$0x3]  ;;  %v1952_v60 = vperm.slane %v1888_v11, 0 }
 0x5b7   :  { %v1962_v10 = vperm.slane %v1889_v58, 1 }
 0x5b8   :  { %v1925_v8 = vadd.f32 1e-05, %v1919_v0  ;;  %v1953_v0 = vperm.slane %v1888_v11, 1  ;;  %v2150_v11 = vld [vmem:[%s7440_s12] sm:$0x3] }
 0x5b9   :  { %v1895_v9 = vpop.xlane.xlu0 %1894 }
 0x5ba   :  { %6343 = vrsqrt.f32 %v1925_v8  ;;  %v7116_v59 = vmul.f32 %v7107_v6, %v1895_v9  ;;  %vm1933_vm5 = vweird.f32 %v1925_v8  ;;  %v1961_v9 = vperm.slane %v1889_v58, 0 }
 0x5bc   :  { %v1918_v2 = vmul.f32 %v7116_v59, %v7116_v59  ;;  %v1923_v1 = vsub.f32 %v7096_v4, %v7116_v59 }
 0x5c0   :  { %v6344_v14 = vpop.eup %6343 }
 0x5c1   :  { %v1928_v15 = vmul.f32 %v6344_v14, %v1925_v8  ;;  %v1914_v61 = vpop.xlane.xlu0 %1913  ;;  %vm1934_vm4 = vweird.f32 %v6344_v14  ;;  %v1924_v8 = vsub.f32 %v7099_v33, %v7116_v59 }
 0x5c2   :  { %v1916_v3 = vmul.f32 %v1914_v61, %v7107_v6  ;;  %vm1935_vm6 = vmor %vm1933_vm5, %vm1934_vm4 }
 0x5c3   :  { %v1929_v17 = vmul.f32 %v6344_v14, %v1928_v15 }
 0x5c4   :  { %v1920_v39 = vsub.f32 %v1916_v3, %v1918_v2  ;;  %v5166_v3 = vld [vmem:[#allocation19 + $0x30] sm:$0xf] }
 0x5c5   :  { %v1930_v30 = vmul.f32 0.5, %v1929_v17  ;;  %v5167_v17 = vor.u32 %v6094_v7, %v5166_v3  ;;  %v6187_v3 = vld [vmem:[#allocation8 + $0x5a4] sm:$0xf] }
 0x5c6   :  { %v1926_v27 = vadd.f32 1e-05, %v1920_v39  ;;  %v6091_v39 = vld [vmem:[#allocation19 + $0x24] sm:$0xf] }
 0x5c7   :  { %v1931_v41 = vsub.f32 1.5, %v1930_v30  ;;  %2240 = vmatpush.bf16.msra.mxu2 %v5167_v17  ;;  %v5163_v24 = vor.u32 %v6091_v39, %v5160_v23  ;;  %v5142_v30 = vld [vmem:[#allocation19] sm:$0xf]  ;;  %v5547_v17 = vor.u32 %v6187_v3, %v5544_v16  ;;  %v6115_v16 = vld [vmem:[#allocation8 + $0x364] sm:$0xf] }
 0x5c8   :  { %6345 = vrsqrt.f32 %v1926_v27  ;;  %vm1943_vm8 = vweird.f32 %v1926_v27  ;;  %v5143_v35 = vor.u32 %v6088_v31, %v5142_v30 }
 0x5c9   :  { %v1932_v46 = vmul.f32 %v6344_v14, %v1931_v41  ;;  %2255 = vmatpush.bf16.msra.mxu3 %v5163_v24 }
 0x5cb   :  { %v1936_v49 = vsel %vm1935_vm6, %v6344_v14, %v1932_v46  ;;  %2241 = vmatpush.bf16.msra.mxu2 %v5159_v22 }
 0x5cc   :  { %v1947_v56 = vmul.f32 %v1936_v49, %v1921_v52  ;;  %v1948_v57 = vmul.f32 %v1936_v49, %v1922_v53  ;;  %v2152_v52 = vperm.slane %v2150_v11, 0  ;;  %v2153_v53 = vperm.slane %v2150_v11, 1  ;;  %v6178_v11 = vld [vmem:[#allocation8 + $0x554] sm:$0xf0] }
 0x5ce   :  { %v6346_v5 = vpop.eup %6345  ;;  %v1956_v51 = vmul.f32 %v1952_v60, %v1947_v56  ;;  %v1957_v12 = vmul.f32 %v1953_v0, %v1948_v57  ;;  %v6148_v56 = vld [vmem:[#allocation8 + $0x464] sm:$0xf0]  ;;  %v5566_v57 = vld [vmem:[#allocation8 + $0x5d0] sm:$0xf] }
 0x5cf   :  { %v1938_v47 = vmul.f32 %v6346_v5, %v1926_v27  ;;  %vm1944_vm7 = vweird.f32 %v6346_v5  ;;  %v6089_v27 = vld [vmem:[#allocation19 + $0x14] sm:$0xf]  ;;  %2242 = vmatpush.bf16.msra.mxu2 %v5151_v28 }
 0x5d0   :  { %vm1945_vm9 = vmor %vm1943_vm8, %vm1944_vm7  ;;  %v7129_v15 = vadd.f32 %v1961_v9, %v1956_v51  ;;  %v7133_v2 = vadd.f32 %v1962_v10, %v1957_v12  ;;  %v5155_v29 = vor.u32 %v6089_v27, %v5152_v62  ;;  %v5542_v51 = vld [vmem:[#allocation8 + $0x5a0] sm:$0xf]  ;;  %v6190_v12 = vld [vmem:[#allocation8 + $0x5b4] sm:$0xf0] }
 0x5d1   :  { %v1939_v48 = vmul.f32 %v6346_v5, %v1938_v47 }
 0x5d2   :  { %2256 = vmatpush.bf16.msra.mxu3 %v5155_v29 }
 0x5d3   :  { %v1940_v50 = vmul.f32 0.5, %v1939_v48  ;;  %2243 = vmatpush.bf16.msra.mxu2 %v5143_v35 }
 0x5d5   :  { %v1941_v55 = vsub.f32 1.5, %v1940_v50 }
 0x5d6   :  { %2257 = vmatpush.bf16.msra.mxu3 %v5147_v37  ;;  %v6136_v37 = vld [vmem:[#allocation8 + $0x404] sm:$0xf0] }
 0x5d7   :  { %v1942_v32 = vmul.f32 %v6346_v5, %v1941_v55  ;;  %v5374_v55 = vld [vmem:[#allocation8 + $0x450] sm:$0xf] }
 0x5d8   :  { %v5375_v58 = vor.u32 %v6148_v56, %v5374_v55  ;;  %v5304_v55 = vld [vmem:[#allocation8 + $0x3d8] sm:$0xf0]  ;;  %v6175_v56 = vld [vmem:[#allocation8 + $0x544] sm:$0xf] }
 0x5d9   :  { %v1946_v21 = vsel %vm1945_vm9, %v6346_v5, %v1942_v32  ;;  %v5376_v32 = vld [vmem:[#allocation8 + $0x468] sm:$0xf0] }
 0x5da   :  { %v1949_v45 = vmul.f32 %v1946_v21, %v1923_v1  ;;  %v1950_v54 = vmul.f32 %v1946_v21, %v1924_v8  ;;  %v6193_v21 = vld [vmem:[#allocation8 + $0x5d4] sm:$0xf]  ;;  %2936 = vmatpush.bf16.msra.mxu0 %v5375_v58 }
 0x5dc   :  { %v1958_v13 = vmul.f32 %v1952_v60, %v1949_v45  ;;  %v1959_v14 = vmul.f32 %v1953_v0, %v1950_v54  ;;  %v6196_v60 = vld [vmem:[#allocation8 + $0x5e4] sm:$0xf0]  ;;  %v6145_v0 = vld [vmem:[#allocation8 + $0x454] sm:$0xf]  ;;  %v6142_v54 = vld [vmem:[#allocation8 + $0x434] sm:$0xf0] }
 0x5dd   :  { %v5567_v1 = vor.u32 %v6196_v60, %v5566_v57  ;;  %v5379_v8 = vor.u32 %v6145_v0, %v5376_v32  ;;  %v5496_v57 = vld [vmem:[#allocation8 + $0x558] sm:$0xf0]  ;;  %v5278_v0 = vld [vmem:[#allocation8 + $0x390] sm:$0xf]  ;;  %v6124_v32 = vld [vmem:[#allocation8 + $0x3a4] sm:$0xf0] }
 0x5de   :  { %v7131_v61 = vadd.f32 %v1961_v9, %v1958_v13  ;;  %v7135_v4 = vadd.f32 %v1962_v10, %v1959_v14  ;;  %v5568_v9 = vld [vmem:[#allocation8 + $0x5e8] sm:$0xf0]  ;;  %v5350_v10 = vld [vmem:[#allocation8 + $0x420] sm:$0xf]  ;;  %v5543_v14 = vor.u32 %v6190_v12, %v5542_v51  ;;  %v5499_v60 = vor.u32 %v6175_v56, %v5496_v57  ;;  %v6169_v51 = vld [vmem:[#allocation8 + $0x514] sm:$0xf] }
 0x5df   :  { %v5571_v45 = vor.u32 %v6193_v21, %v5568_v9  ;;  %2950 = vmatpush.bf16.msra.mxu1 %v5567_v1  ;;  %2964 = vmatpush.bf16.msrb.mxu2 %v5379_v8  ;;  %v5351_v13 = vor.u32 %v6142_v54, %v5350_v10  ;;  %v5470_v1 = vld [vmem:[#allocation8 + $0x510] sm:$0xf]  ;;  %v5279_v8 = vor.u32 %v6124_v32, %v5278_v0  ;;  %v6172_v21 = vld [vmem:[#allocation8 + $0x524] sm:$0xf0]  ;;  %v6121_v9 = vld [vmem:[#allocation8 + $0x394] sm:$0xf] }
 0x5e0   :  { %v1969_v33 = vpack.c.bf16 %v7131_v61, %v7129_v15  ;;  %v1970_v59 = vpack.c.bf16 %v7135_v4, %v7133_v2  ;;  %v5280_v10 = vld [vmem:[#allocation8 + $0x3a8] sm:$0xf0]  ;;  %v5384_v56 = vld [vmem:[#allocation8 + $0x470] sm:$0xf0]  ;;  %v6194_v57 = vld [vmem:[#allocation8 + $0x5dc] sm:$0xf] }
 0x5e1   :  { %2978 = vmatpush.bf16.msrb.mxu3 %v5571_v45  ;;  %2937 = vmatpush.bf16.msra.mxu0 %v5351_v13  ;;  %v5471_v45 = vor.u32 %v6172_v21, %v5470_v1  ;;  %v5283_v54 = vor.u32 %v6121_v9, %v5280_v10  ;;  %v5472_v12 = vld [vmem:[#allocation8 + $0x528] sm:$0xf0]  ;;  %v5358_v0 = vld [vmem:[#allocation8 + $0x428] sm:$0xf]  ;;  %v6143_v32 = vld [vmem:[#allocation8 + $0x43c] sm:$0xf0] }
 0x5e2   :  { %2111 = vmatmul.bf16.vlgmr.msrb.gmra.mxu0 %v1969_v33  ;;  %2125 = vmatmul.bf16.vlgmr.msrb.gmra.mxu1 %v1970_v59  ;;  %v6139_v33 = vld [vmem:[#allocation8 + $0x424] sm:$0xf]  ;;  %v5352_v59 = vld [vmem:[#allocation8 + $0x438] sm:$0xf0]  ;;  %v5475_v13 = vor.u32 %v6169_v51, %v5472_v12  ;;  %v5550_v21 = vld [vmem:[#allocation8 + $0x5a8] sm:$0xf] }
 0x5e3   :  { %v5355_v7 = vor.u32 %v6139_v33, %v5352_v59  ;;  %2951 = vmatpush.bf16.msra.mxu1 %v5543_v14  ;;  %v5254_v14 = vld [vmem:[#allocation8 + $0x360] sm:$0xf]  ;;  %v6118_v33 = vld [vmem:[#allocation8 + $0x374] sm:$0xf0]  ;;  %v6140_v10 = vld [vmem:[#allocation8 + $0x42c] sm:$0xf] }
 0x5e4   :  { %v5446_v59 = vld [vmem:[#allocation8 + $0x4e0] sm:$0xf]  ;;  %v5255_v3 = vor.u32 %v6118_v33, %v5254_v14  ;;  %v6188_v51 = vld [vmem:[#allocation8 + $0x5ac] sm:$0xf]  ;;  %v5552_v12 = vld [vmem:[#allocation8 + $0x5c0] sm:$0xf0] }
 0x5e5   :  { %2965 = vmatpush.bf16.msrb.mxu2 %v5355_v7  ;;  %2979 = vmatpush.bf16.msrb.mxu3 %v5547_v17  ;;  %v6166_v7 = vld [vmem:[#allocation8 + $0x4f4] sm:$0xf0]  ;;  %v5256_v17 = vld [vmem:[#allocation8 + $0x378] sm:$0xf0]  ;;  %v6191_v9 = vld [vmem:[#allocation8 + $0x5bc] sm:$0xf0]  ;;  %v5555_v14 = vor.u32 %v6188_v51, %v5552_v12 }
 0x5e6   :  { %v5334_v33 = vld [vmem:[#allocation8 + $0x3f8] sm:$0xf] }
 0x5e7   :  { %v5238_v12 = vld [vmem:[#allocation8 + $0x338] sm:$0xf] }
 0x65f   :  { %v2112_v40 = vpop.f32.mrf.mxu0  ;;  %v2126_v41 = vpop.f32.mrf.mxu1 }
 0x660   :  { %v2113_v42 = vadd.f32 %v6306_v63, %v2112_v40  ;;  %v5518_v40 = vld [vmem:[#allocation8 + $0x570] sm:$0xf] }
 0x662   :  { %v2127_v5 = vadd.f32 %v2126_v41, %v2113_v42  ;;  %v6184_v41 = vld [vmem:[#allocation8 + $0x584] sm:$0xf0] }
 0x663   :  { %v5519_v42 = vor.u32 %v6184_v41, %v5518_v40  ;;  %v6106_v40 = vld [vmem:[#allocation8 + $0x314] sm:$0xf0] }
 0x664   :  { %v2131_v48 = vmax.f32 %v2127_v5, 0.0  ;;  %v6181_v5 = vld [vmem:[#allocation8 + $0x574] sm:$0xf] }
 0x665   :  { %2952 = vmatpush.bf16.msra.mxu1 %v5519_v42  ;;  %v5208_v42 = vld [vmem:[#allocation8 + $0x318] sm:$0xf0] }
 0x667   :  { %v2114_v43 = vpop.f32.mrf.mxu0  ;;  %v2128_v46 = vpop.f32.mrf.mxu1 }
 0x668   :  { %v2115_v44 = vadd.f32 %v6306_v63, %v2114_v43  ;;  %v6133_v63 = vld [vmem:[#allocation8 + $0x3f4] sm:$0xf] }
 0x66a   :  { %v2129_v47 = vadd.f32 %v2128_v46, %v2115_v44  ;;  %v5520_v44 = vld [vmem:[#allocation8 + $0x588] sm:$0xf0] }
 0x66b   :  { %v5523_v46 = vor.u32 %v6181_v5, %v5520_v44  ;;  %v6151_v44 = vld [vmem:[#allocation8 + $0x484] sm:$0xf] }
 0x66c   :  { %v2132_v49 = vmax.f32 %v2129_v47, 0.0  ;;  %v5302_v47 = vld [vmem:[#allocation8 + $0x3c0] sm:$0xf] }
 0x66d   :  { %2980 = vmatpush.bf16.msrb.mxu3 %v5523_v46  ;;  %v5400_v46 = vld [vmem:[#allocation8 + $0x498] sm:$0xf0] }
 0x66e   :  { %v2133_v50 = vpack.c.bf16 %v2132_v49, %v2131_v48  ;;  %v6130_v48 = vld [vmem:[#allocation8 + $0x3d4] sm:$0xf0] }
 0x66f   :  { %v5303_v49 = vor.u32 %v6130_v48, %v5302_v47  ;;  %v5382_v47 = vld [vmem:[#allocation8 + $0x458] sm:$0xf]  ;;  %v5403_v48 = vor.u32 %v6151_v44, %v5400_v46 }
 0x670   :  { %2244 = vmatmul.bf16.vlgmr.msra.gmra.mxu2 %v2133_v50  ;;  %2258 = vmatmul.bf16.vlgmr.msra.gmra.mxu3 %v2133_v50  ;;  %v5494_v50 = vld [vmem:[#allocation8 + $0x540] sm:$0xf]  ;;  %v5478_v44 = vld [vmem:[#allocation8 + $0x518] sm:$0xf] }
 0x671   :  { %2981 = vmatpush.bf16.msrb.mxu3 %v5499_v60  ;;  %v5576_v60 = vld [vmem:[#allocation8 + $0x5f0] sm:$0xf0] }
 0x672   :  { %v5579_v1 = vor.u32 %v6194_v57, %v5576_v60  ;;  %v6119_v60 = vld [vmem:[#allocation8 + $0x37c] sm:$0xf0] }
 0x675   :  { %2982 = vmatpush.bf16.msrb.mxu3 %v5475_v13 }
 0x6f3   :  { %v2245_v18 = vpop.f32.mrf.mxu2  ;;  %v2259_v19 = vpop.f32.mrf.mxu3 }
 0x6f4   :  { %v2246_v20 = vadd.f32 %v2245_v18, %v2152_v52  ;;  %v2260_v38 = vadd.f32 %v2259_v19, %v2153_v53  ;;  %v5447_v18 = vor.u32 %v6166_v7, %v5446_v59  ;;  %v5259_v19 = vor.u32 %v6115_v16, %v5256_v17  ;;  %v6137_v59 = vld [vmem:[#allocation8 + $0x40c] sm:$0xf0]  ;;  %v6134_v17 = vld [vmem:[#allocation8 + $0x3fc] sm:$0xf] }
 0x6f5   :  { %v5335_v7 = vor.u32 %v6137_v59, %v5334_v33  ;;  %v6185_v16 = vld [vmem:[#allocation8 + $0x58c] sm:$0xf0] }
 0x6f6   :  { %v7145_v39 = vadd.f32 %v2246_v20, %v7129_v15  ;;  %v7148_v22 = vadd.f32 %v2260_v38, %v7133_v2  ;;  %v6163_v20 = vld [vmem:[#allocation8 + $0x4e4] sm:$0xf]  ;;  %v5448_v38 = vld [vmem:[#allocation8 + $0x4f8] sm:$0xf0] }
 0x6f8   :  { %v2270_v23 = vadd.f32 %v7148_v22, %v7145_v39  ;;  %v2278_v24 = vmul.f32 %v7145_v39, %v7145_v39  ;;  %v2279_v25 = vmul.f32 %v7148_v22, %v7148_v22 }
 0x6fa   :  { %2271 = vadd.xlane.f32.xlu2 %v2270_v23  ;;  %v2282_v26 = vadd.f32 %v2279_v25, %v2278_v24  ;;  %v5451_v23 = vor.u32 %v6163_v20, %v5448_v38  ;;  %v5230_v24 = vld [vmem:[#allocation8 + $0x330] sm:$0xf]  ;;  %v6112_v25 = vld [vmem:[#allocation8 + $0x344] sm:$0xf0] }
 0x6fb   :  { %v2247_v27 = vpop.f32.mrf.mxu2  ;;  %v2261_v28 = vpop.f32.mrf.mxu3 }
 0x6fc   :  { %v2248_v62 = vadd.f32 %v2247_v27, %v2152_v52  ;;  %v2262_v29 = vadd.f32 %v2261_v28, %v2153_v53  ;;  %2283 = vadd.xlane.f32.xlu0 %v2282_v26  ;;  %v6127_v52 = vld [vmem:[#allocation8 + $0x3c4] sm:$0xf]  ;;  %v5495_v53 = vor.u32 %v6178_v11, %v5494_v50  ;;  %v5422_v26 = vld [vmem:[#allocation8 + $0x4b0] sm:$0xf]  ;;  %2983 = vmatpush.bf16.msrb.mxu3 %v5451_v23  ;;  %v6160_v28 = vld [vmem:[#allocation8 + $0x4c4] sm:$0xf0] }
 0x6fd   :  { %v5307_v58 = vor.u32 %v6127_v52, %v5304_v55  ;;  %v5231_v27 = vor.u32 %v6112_v25, %v5230_v24  ;;  %v5574_v50 = vld [vmem:[#allocation8 + $0x5d8] sm:$0xf]  ;;  %v6197_v11 = vld [vmem:[#allocation8 + $0x5ec] sm:$0xf0]  ;;  %v6146_v55 = vld [vmem:[#allocation8 + $0x45c] sm:$0xf] }
 0x6fe   :  { %v7157_v15 = vadd.f32 %v2248_v62, %v7131_v61  ;;  %v7160_v2 = vadd.f32 %v2262_v29, %v7135_v4  ;;  %v5327_v61 = vor.u32 %v6136_v37, %v5326_v36  ;;  %v5328_v4 = vld [vmem:[#allocation8 + $0x408] sm:$0xf0]  ;;  %2953 = vmatpush.bf16.msra.mxu1 %v5495_v53  ;;  %v6109_v62 = vld [vmem:[#allocation8 + $0x334] sm:$0xf]  ;;  %v5206_v37 = vld [vmem:[#allocation8 + $0x300] sm:$0xf]  ;;  %v5575_v53 = vor.u32 %v6197_v11, %v5574_v50 }
 0x6ff   :  { %v5331_v43 = vor.u32 %v6133_v63, %v5328_v4  ;;  %v5232_v29 = vld [vmem:[#allocation8 + $0x348] sm:$0xf0]  ;;  %v5207_v41 = vor.u32 %v6106_v40, %v5206_v37  ;;  %v6154_v63 = vld [vmem:[#allocation8 + $0x494] sm:$0xf0]  ;;  %v6103_v4 = vld [vmem:[#allocation8 + $0x304] sm:$0xf] }
 0x700   :  { %v2273_v30 = vadd.f32 %v7160_v2, %v7157_v15  ;;  %v2280_v31 = vmul.f32 %v7157_v15, %v7157_v15  ;;  %v2281_v34 = vmul.f32 %v7160_v2, %v7160_v2  ;;  %2938 = vmatpush.bf16.msra.mxu0 %v5327_v61  ;;  %v5398_v61 = vld [vmem:[#allocation8 + $0x480] sm:$0xf]  ;;  %v5211_v5 = vor.u32 %v6103_v4, %v5208_v42  ;;  %v6182_v23 = vld [vmem:[#allocation8 + $0x57c] sm:$0xf]  ;;  %v5528_v24 = vld [vmem:[#allocation8 + $0x590] sm:$0xf0] }
 0x701   :  { %2966 = vmatpush.bf16.msrb.mxu2 %v5331_v43  ;;  %v5399_v43 = vor.u32 %v6154_v63, %v5398_v61  ;;  %v5504_v63 = vld [vmem:[#allocation8 + $0x560] sm:$0xf0]  ;;  %v5288_v11 = vld [vmem:[#allocation8 + $0x3b0] sm:$0xf0] }
 0x702   :  { %v2285_v35 = vadd.f32 %v2281_v34, %v2280_v31  ;;  %2954 = vmatpush.bf16.msra.mxu1 %v5471_v45  ;;  %v5235_v31 = vor.u32 %v6109_v62, %v5232_v29  ;;  %v6157_v34 = vld [vmem:[#allocation8 + $0x4b4] sm:$0xf]  ;;  %v5551_v45 = vor.u32 %v6191_v9, %v5550_v21  ;;  %v6131_v62 = vld [vmem:[#allocation8 + $0x3dc] sm:$0xf0]  ;;  %v5502_v29 = vld [vmem:[#allocation8 + $0x548] sm:$0xf] }
 0x703   :  { %v5264_v21 = vld [vmem:[#allocation8 + $0x380] sm:$0xf0] }
 0x704   :  { %2274 = vadd.xlane.f32.xlu0 %v2273_v30  ;;  %2939 = vmatpush.bf16.msra.mxu0 %v5303_v49  ;;  %v5423_v30 = vor.u32 %v6160_v28, %v5422_v26  ;;  %v6149_v49 = vld [vmem:[#allocation8 + $0x46c] sm:$0xf0]  ;;  %v5531_v26 = vor.u32 %v6182_v23, %v5528_v24  ;;  %v5310_v28 = vld [vmem:[#allocation8 + $0x3c8] sm:$0xf]  ;;  %v5432_v23 = vld [vmem:[#allocation8 + $0x4d0] sm:$0xf0] }
 0x705   :  { %2967 = vmatpush.bf16.msrb.mxu2 %v5307_v58  ;;  %v5383_v52 = vor.u32 %v6149_v49, %v5382_v47  ;;  %v5387_v58 = vor.u32 %v6146_v55, %v5384_v56  ;;  %v5311_v37 = vor.u32 %v6131_v62, %v5310_v28  ;;  %v6122_v49 = vld [vmem:[#allocation8 + $0x39c] sm:$0xf]  ;;  %v6107_v28 = vld [vmem:[#allocation8 + $0x31c] sm:$0xf0]  ;;  %v5406_v62 = vld [vmem:[#allocation8 + $0x488] sm:$0xf] }
 0x706   :  { %2955 = vmatpush.bf16.msra.mxu1 %v5447_v18  ;;  %v5336_v18 = vld [vmem:[#allocation8 + $0x410] sm:$0xf0]  ;;  %v5291_v55 = vor.u32 %v6122_v49, %v5288_v11  ;;  %v2268_v11 = vld [vmem:[%s7441_s13] sm:$0x3] }
 0x707   :  { %v5339_v38 = vor.u32 %v6134_v17, %v5336_v18  ;;  %v5240_v17 = vld [vmem:[#allocation8 + $0x350] sm:$0xf0] }
 0x708   :  { %2940 = vmatpush.bf16.msra.mxu0 %v5279_v8  ;;  %v5359_v8 = vor.u32 %v6143_v32, %v5358_v0  ;;  %v5454_v0 = vld [vmem:[#allocation8 + $0x4e8] sm:$0xf] }
 0x709   :  { %2968 = vmatpush.bf16.msrb.mxu2 %v5283_v54  ;;  %v5360_v54 = vld [vmem:[#allocation8 + $0x440] sm:$0xf0] }
 0x70a   :  { %2956 = vmatpush.bf16.msra.mxu1 %v5423_v30  ;;  %v5363_v13 = vor.u32 %v6140_v10, %v5360_v54  ;;  %v5456_v54 = vld [vmem:[#allocation8 + $0x500] sm:$0xf0] }
 0x70c   :  { %2286 = vadd.xlane.f32.xlu0 %v2285_v35  ;;  %2941 = vmatpush.bf16.msra.mxu0 %v5255_v3  ;;  %v5424_v35 = vld [vmem:[#allocation8 + $0x4c8] sm:$0xf0]  ;;  %v5526_v3 = vld [vmem:[#allocation8 + $0x578] sm:$0xf] }
 0x70d   :  { %2969 = vmatpush.bf16.msrb.mxu2 %v5259_v19  ;;  %v5427_v36 = vor.u32 %v6157_v34, %v5424_v35  ;;  %v5527_v20 = vor.u32 %v6185_v16, %v5526_v3  ;;  %v6179_v34 = vld [vmem:[#allocation8 + $0x55c] sm:$0xf0]  ;;  %v6128_v35 = vld [vmem:[#allocation8 + $0x3cc] sm:$0xf]  ;;  %v6110_v16 = vld [vmem:[#allocation8 + $0x33c] sm:$0xf] }
 0x70e   :  { %2957 = vmatpush.bf16.msra.mxu1 %v5399_v43  ;;  %v5503_v40 = vor.u32 %v6179_v34, %v5502_v29  ;;  %v5286_v43 = vld [vmem:[#allocation8 + $0x398] sm:$0xf]  ;;  %v6155_v34 = vld [vmem:[#allocation8 + $0x49c] sm:$0xf0] }
 0x70f   :  { %2984 = vmatpush.bf16.msrb.mxu3 %v5427_v36  ;;  %v5312_v36 = vld [vmem:[#allocation8 + $0x3e0] sm:$0xf0] }
 0x710   :  { %2942 = vmatpush.bf16.msra.mxu0 %v5231_v27  ;;  %v5315_v61 = vor.u32 %v6128_v35, %v5312_v36  ;;  %v6104_v35 = vld [vmem:[#allocation8 + $0x30c] sm:$0xf]  ;;  %v5216_v36 = vld [vmem:[#allocation8 + $0x320] sm:$0xf0] }
 0x711   :  { %2970 = vmatpush.bf16.msrb.mxu2 %v5235_v31 }
 0x712   :  { %3006 = vmatpush.bf16.msrb.mxu1 %v5575_v53  ;;  %v5480_v53 = vld [vmem:[#allocation8 + $0x530] sm:$0xf0] }
 0x713   :  { %2985 = vmatpush.bf16.msrb.mxu3 %v5403_v48  ;;  %v6173_v48 = vld [vmem:[#allocation8 + $0x52c] sm:$0xf0] }
 0x714   :  { %2943 = vmatpush.bf16.msra.mxu0 %v5207_v41  ;;  %v6176_v41 = vld [vmem:[#allocation8 + $0x54c] sm:$0xf]  ;;  %v5479_v50 = vor.u32 %v6173_v48, %v5478_v44 }
 0x715   :  { %2971 = vmatpush.bf16.msrb.mxu2 %v5211_v5  ;;  %v5507_v42 = vor.u32 %v6176_v41, %v5504_v63  ;;  %v6125_v5 = vld [vmem:[#allocation8 + $0x3ac] sm:$0xf0]  ;;  %v6152_v41 = vld [vmem:[#allocation8 + $0x48c] sm:$0xf]  ;;  %v5408_v63 = vld [vmem:[#allocation8 + $0x4a0] sm:$0xf0] }
 0x716   :  { %3007 = vmatpush.bf16.msrb.mxu1 %v5551_v45  ;;  %v5287_v47 = vor.u32 %v6125_v5, %v5286_v43  ;;  %v6164_v45 = vld [vmem:[#allocation8 + $0x4ec] sm:$0xf] }
 0x717   :  { %3034 = vmatpush.bf16.msra.mxu3 %v5579_v1  ;;  %v6167_v1 = vld [vmem:[#allocation8 + $0x4fc] sm:$0xf0]  ;;  %v5459_v51 = vor.u32 %v6164_v45, %v5456_v54 }
 0x718   :  { %2992 = vmatpush.bf16.msrb.mxu0 %v5383_v52  ;;  %v6170_v52 = vld [vmem:[#allocation8 + $0x51c] sm:$0xf]  ;;  %v5455_v9 = vor.u32 %v6167_v1, %v5454_v0  ;;  %v2326_v0 = vperm.slane %v2268_v11, 1 }
 0x719   :  { %3020 = vmatpush.bf16.msra.mxu2 %v5387_v58  ;;  %v5483_v56 = vor.u32 %v6170_v52, %v5480_v53  ;;  %v5262_v58 = vld [vmem:[#allocation8 + $0x368] sm:$0xf] }
 0x71a   :  { %3008 = vmatpush.bf16.msrb.mxu1 %v5527_v20  ;;  %v5263_v32 = vor.u32 %v6119_v60, %v5262_v58  ;;  %v5243_v20 = vor.u32 %v6110_v16, %v5240_v17  ;;  %v2269_v58 = vld [vmem:[#allocation20] sm:$0x3]  ;;  %v2325_v60 = vperm.slane %v2268_v11, 0  ;;  %v5392_v17 = vld [vmem:[#allocation8 + $0x478] sm:$0xf0] }
 0x71b   :  { %3035 = vmatpush.bf16.msra.mxu3 %v5555_v14  ;;  %v5430_v14 = vld [vmem:[#allocation8 + $0x4b8] sm:$0xf]  ;;  %v5318_v11 = vld [vmem:[#allocation8 + $0x3d0] sm:$0xf] }
 0x71c   :  { %2993 = vmatpush.bf16.msrb.mxu0 %v5359_v8  ;;  %v6116_v8 = vld [vmem:[#allocation8 + $0x36c] sm:$0xf] }
 0x71d   :  { %3021 = vmatpush.bf16.msra.mxu2 %v5363_v13  ;;  %v5267_v10 = vor.u32 %v6116_v8, %v5264_v21  ;;  %v6113_v13 = vld [vmem:[#allocation8 + $0x34c] sm:$0xf0] }
 0x71e   :  { %3009 = vmatpush.bf16.msrb.mxu1 %v5503_v40  ;;  %v5239_v3 = vor.u32 %v6113_v13, %v5238_v12  ;;  %v5407_v40 = vor.u32 %v6155_v34, %v5406_v62  ;;  %v5390_v13 = vld [vmem:[#allocation8 + $0x460] sm:$0xf]  ;;  %v5368_v34 = vld [vmem:[#allocation8 + $0x448] sm:$0xf0] }
 0x71f   :  { %3036 = vmatpush.bf16.msra.mxu3 %v5531_v26 }
 0x720   :  { %2994 = vmatpush.bf16.msrb.mxu0 %v5335_v7  ;;  %v6161_v7 = vld [vmem:[#allocation8 + $0x4cc] sm:$0xf0] }
 0x721   :  { %3022 = vmatpush.bf16.msra.mxu2 %v5339_v38  ;;  %v6158_v38 = vld [vmem:[#allocation8 + $0x4bc] sm:$0xf] }
 0x722   :  { %3010 = vmatpush.bf16.msrb.mxu1 %v5479_v50  ;;  %v5435_v24 = vor.u32 %v6158_v38, %v5432_v23 }
 0x723   :  { %3037 = vmatpush.bf16.msra.mxu3 %v5507_v42  ;;  %v5411_v42 = vor.u32 %v6152_v41, %v5408_v63  ;;  %v6138_v41 = vld [vmem:[#allocation8 + $0x414] sm:$0xf0] }
 0x724   :  { %2995 = vmatpush.bf16.msrb.mxu0 %v5311_v37 }
 0x725   :  { %3023 = vmatpush.bf16.msra.mxu2 %v5315_v61  ;;  %v5219_v61 = vor.u32 %v6104_v35, %v5216_v36  ;;  %v6189_v35 = vld [vmem:[#allocation8 + $0x5b4] sm:$0xf]  ;;  %v5560_v36 = vld [vmem:[#allocation8 + $0x5c8] sm:$0xf0] }
 0x726   :  { %3011 = vmatpush.bf16.msrb.mxu1 %v5455_v9  ;;  %v2335_v9 = vperm.slane %v2269_v58, 1 }
 0x727   :  { %3038 = vmatpush.bf16.msra.mxu3 %v5483_v56 }
 0x728   :  { %2996 = vmatpush.bf16.msrb.mxu0 %v5287_v47 }
 0x729   :  { %3024 = vmatpush.bf16.msra.mxu2 %v5291_v55 }
 0x72b   :  { %3039 = vmatpush.bf16.msra.mxu3 %v5459_v51 }
 0x72c   :  { %2997 = vmatpush.bf16.msrb.mxu0 %v5263_v32 }
 0x72d   :  { %3025 = vmatpush.bf16.msra.mxu2 %v5267_v10 }
 0x72f   :  { %3040 = vmatpush.bf16.msra.mxu3 %v5435_v24 }
 0x730   :  { %2998 = vmatpush.bf16.msrb.mxu0 %v5239_v3  ;;  %v6198_v3 = vld [vmem:[#allocation8 + $0x5f4] sm:$0xf0] }
 0x731   :  { %3026 = vmatpush.bf16.msra.mxu2 %v5243_v20 }
 0x733   :  { %3041 = vmatpush.bf16.msra.mxu3 %v5411_v42  ;;  %v5534_v42 = vld [vmem:[#allocation8 + $0x580] sm:$0xf] }
 0x735   :  { %3027 = vmatpush.bf16.msra.mxu2 %v5219_v61  ;;  %v5342_v61 = vld [vmem:[#allocation8 + $0x400] sm:$0xf] }
 0x76d   :  { %v2272_v19 = vpop.xlane.xlu2 %2271 }
 0x76e   :  { %v7169_v25 = vmul.f32 %v2272_v19, %v7107_v6  ;;  %v5431_v19 = vor.u32 %v6161_v7, %v5430_v14  ;;  %v6150_v14 = vld [vmem:[#allocation8 + $0x474] sm:$0xf0]  ;;  %v6147_v7 = vld [vmem:[#allocation8 + $0x464] sm:$0xf] }
 0x76f   :  { %v2284_v27 = vpop.xlane.xlu0 %2283  ;;  %v5391_v23 = vor.u32 %v6150_v14, %v5390_v13  ;;  %v5270_v14 = vld [vmem:[#allocation8 + $0x370] sm:$0xf] }
 0x770   :  { %v2288_v30 = vmul.f32 %v2284_v27, %v7107_v6  ;;  %v2290_v31 = vmul.f32 %v7169_v25, %v7169_v25  ;;  %v5214_v27 = vld [vmem:[#allocation8 + $0x308] sm:$0xf]  ;;  %3012 = vmatpush.bf16.msrb.mxu1 %v5431_v19  ;;  %v2294_v55 = vsub.f32 %v7145_v39, %v7169_v25  ;;  %v2295_v56 = vsub.f32 %v7148_v22, %v7169_v25  ;;  %v5584_v19 = vld [vmem:[#allocation8 + $0x5f8] sm:$0xf0] }
 0x771   :  { %v2334_v39 = vperm.slane %v2269_v58, 0  ;;  %v6129_v58 = vld [vmem:[#allocation8 + $0x3d4] sm:$0xf] }
 0x772   :  { %v2292_v4 = vsub.f32 %v2288_v30, %v2290_v31  ;;  %v5215_v31 = vor.u32 %v6107_v28, %v5214_v27  ;;  %v6144_v27 = vld [vmem:[#allocation8 + $0x444] sm:$0xf0]  ;;  %v5395_v28 = vor.u32 %v6147_v7, %v5392_v17  ;;  %v5462_v17 = vld [vmem:[#allocation8 + $0x4f0] sm:$0xf] }
 0x774   :  { %v7174_v46 = vadd.f32 1e-05, %v2292_v4  ;;  %2999 = vmatpush.bf16.msrb.mxu0 %v5215_v31  ;;  %3013 = vmatpush.bf16.msrb.mxu1 %v5407_v40  ;;  %v6141_v31 = vld [vmem:[#allocation8 + $0x434] sm:$0xf] }
 0x775   :  { %v5371_v63 = vor.u32 %v6141_v31, %v5368_v34  ;;  %v5438_v34 = vld [vmem:[#allocation8 + $0x4c0] sm:$0xf] }
 0x776   :  { %6347 = vrsqrt.f32 %v7174_v46  ;;  %vm2306_vm11 = vweird.f32 %v7174_v46 }
 0x777   :  { %v2275_v57 = vpop.xlane.xlu0 %2274 }
 0x778   :  { %v7178_v59 = vmul.f32 %v2275_v57, %v7107_v6 }
 0x77a   :  { %v2291_v29 = vmul.f32 %v7178_v59, %v7178_v59  ;;  %v2296_v8 = vsub.f32 %v7157_v15, %v7178_v59  ;;  %v2297_v21 = vsub.f32 %v7160_v2, %v7178_v59 }
 0x77c   :  { %v6348_v33 = vpop.eup %6347 }
 0x77d   :  { %v2301_v18 = vmul.f32 %v6348_v33, %v7174_v46  ;;  %vm2307_vm10 = vweird.f32 %v6348_v33 }
 0x77e   :  { %vm2308_vm12 = vmor %vm2306_vm11, %vm2307_vm10 }
 0x77f   :  { %v2287_v26 = vpop.xlane.xlu0 %2286  ;;  %v2302_v37 = vmul.f32 %v6348_v33, %v2301_v18  ;;  %v6195_v18 = vld [vmem:[#allocation8 + $0x5e4] sm:$0xf] }
 0x780   :  { %v2289_v30 = vmul.f32 %v2287_v26, %v7107_v6  ;;  %v5366_v26 = vld [vmem:[#allocation8 + $0x430] sm:$0xf]  ;;  %v5587_v62 = vor.u32 %v6195_v18, %v5584_v19  ;;  %v6168_v18 = vld [vmem:[#allocation8 + $0x504] sm:$0xf0]  ;;  %v6117_v19 = vld [vmem:[#allocation8 + $0x374] sm:$0xf] }
 0x781   :  { %v2303_v5 = vmul.f32 0.5, %v2302_v37  ;;  %v5367_v37 = vor.u32 %v6144_v27, %v5366_v26  ;;  %v5464_v26 = vld [vmem:[#allocation8 + $0x508] sm:$0xf0] }
 0x782   :  { %v2293_v4 = vsub.f32 %v2289_v30, %v2291_v29  ;;  %v5558_v29 = vld [vmem:[#allocation8 + $0x5b0] sm:$0xf]  ;;  %v6192_v30 = vld [vmem:[#allocation8 + $0x5c4] sm:$0xf0] }
 0x783   :  { %v2304_v44 = vsub.f32 1.5, %v2303_v5  ;;  %v5559_v40 = vor.u32 %v6192_v30, %v5558_v29  ;;  %v6135_v5 = vld [vmem:[#allocation8 + $0x404] sm:$0xf]  ;;  %v6114_v29 = vld [vmem:[#allocation8 + $0x354] sm:$0xf0] }
 0x784   :  { %v2299_v43 = vadd.f32 1e-05, %v2293_v4  ;;  %v5563_v4 = vor.u32 %v6189_v35, %v5560_v36  ;;  %v6162_v35 = vld [vmem:[#allocation8 + $0x4d4] sm:$0xf0]  ;;  %v6111_v36 = vld [vmem:[#allocation8 + $0x344] sm:$0xf] }
 0x785   :  { %v2305_v48 = vmul.f32 %v6348_v33, %v2304_v44  ;;  %v5344_v44 = vld [vmem:[#allocation8 + $0x418] sm:$0xf0] }
 0x786   :  { %6349 = vrsqrt.f32 %v2299_v43  ;;  %vm2316_vm14 = vweird.f32 %v2299_v43 }
 0x787   :  { %v2309_v52 = vsel %vm2308_vm12, %v6348_v33, %v2305_v48  ;;  %v5582_v33 = vld [vmem:[#allocation8 + $0x5e0] sm:$0xf]  ;;  %v5536_v48 = vld [vmem:[#allocation8 + $0x598] sm:$0xf0] }
 0x788   :  { %v2320_v46 = vmul.f32 %v2309_v52, %v2294_v55  ;;  %v2321_v32 = vmul.f32 %v2309_v52, %v2295_v56  ;;  %v5583_v24 = vor.u32 %v6198_v3, %v5582_v33  ;;  %v6132_v52 = vld [vmem:[#allocation8 + $0x3e4] sm:$0xf0]  ;;  %v5510_v56 = vld [vmem:[#allocation8 + $0x550] sm:$0xf] }
 0x789   :  { %v6120_v33 = vld [vmem:[#allocation8 + $0x384] sm:$0xf0] }
 0x78a   :  { %v2329_v22 = vmul.f32 %v2325_v60, %v2320_v46  ;;  %v2330_v25 = vmul.f32 %v2326_v0, %v2321_v32  ;;  %v5512_v46 = vld [vmem:[#allocation8 + $0x568] sm:$0xf0]  ;;  %v5319_v32 = vor.u32 %v6132_v52, %v5318_v11  ;;  %v5271_v27 = vor.u32 %v6120_v33, %v5270_v14 }
 0x78b   :  { %v5416_v11 = vld [vmem:[#allocation8 + $0x4a8] sm:$0xf0] }
 0x78c   :  { %v6350_v47 = vpop.eup %6349  ;;  %v7196_v16 = vadd.f32 %v2334_v39, %v2329_v22  ;;  %v7198_v15 = vadd.f32 %v2335_v9, %v2330_v25  ;;  %v6174_v22 = vld [vmem:[#allocation8 + $0x534] sm:$0xf0]  ;;  %v6123_v25 = vld [vmem:[#allocation8 + $0x3a4] sm:$0xf] }
 0x78d   :  { %v2311_v49 = vmul.f32 %v6350_v47, %v2299_v43  ;;  %vm2317_vm13 = vweird.f32 %v6350_v47  ;;  %v6186_v43 = vld [vmem:[#allocation8 + $0x594] sm:$0xf0] }
 0x78e   :  { %vm2318_vm15 = vmor %vm2316_vm14, %vm2317_vm13 }
 0x78f   :  { %v2312_v50 = vmul.f32 %v6350_v47, %v2311_v49  ;;  %v5343_v49 = vor.u32 %v6138_v41, %v5342_v61  ;;  %v5440_v61 = vld [vmem:[#allocation8 + $0x4d8] sm:$0xf0] }
 0x791   :  { %v2313_v53 = vmul.f32 0.5, %v2312_v50  ;;  %v5535_v50 = vor.u32 %v6186_v43, %v5534_v42  ;;  %v6108_v42 = vld [vmem:[#allocation8 + $0x324] sm:$0xf0] }
 0x793   :  { %v2314_v57 = vsub.f32 1.5, %v2313_v53  ;;  %v5347_v53 = vor.u32 %v6135_v5, %v5344_v44  ;;  %v5414_v44 = vld [vmem:[#allocation8 + $0x490] sm:$0xf] }
 0x795   :  { %v2315_v1 = vmul.f32 %v6350_v47, %v2314_v57  ;;  %v6180_v57 = vld [vmem:[#allocation8 + $0x564] sm:$0xf0] }
 0x797   :  { %v2319_v10 = vsel %vm2318_vm15, %v6350_v47, %v2315_v1  ;;  %v6183_v47 = vld [vmem:[#allocation8 + $0x584] sm:$0xf]  ;;  %v5511_v1 = vor.u32 %v6180_v57, %v5510_v56 }
 0x798   :  { %v2322_v45 = vmul.f32 %v2319_v10, %v2296_v8  ;;  %v2323_v54 = vmul.f32 %v2319_v10, %v2297_v21  ;;  %v5539_v55 = vor.u32 %v6183_v47, %v5536_v48  ;;  %v5294_v8 = vld [vmem:[#allocation8 + $0x3a0] sm:$0xf]  ;;  %v6126_v21 = vld [vmem:[#allocation8 + $0x3b4] sm:$0xf0]  ;;  %v6156_v47 = vld [vmem:[#allocation8 + $0x4a4] sm:$0xf0] }
 0x799   :  { %v5486_v10 = vld [vmem:[#allocation8 + $0x520] sm:$0xf]  ;;  %v6105_v48 = vld [vmem:[#allocation8 + $0x314] sm:$0xf]  ;;  %v7224_v57 = vld [vmem:[#allocation10 + $0x6] sm:$0x3f] }
 0x79a   :  { %v2331_v51 = vmul.f32 %v2325_v60, %v2322_v45  ;;  %v2332_v12 = vmul.f32 %v2326_v0, %v2323_v54  ;;  %v5320_v60 = vld [vmem:[#allocation8 + $0x3e8] sm:$0xf0]  ;;  %v6177_v0 = vld [vmem:[#allocation8 + $0x554] sm:$0xf]  ;;  %v5296_v45 = vld [vmem:[#allocation8 + $0x3b8] sm:$0xf0]  ;;  %v5487_v13 = vor.u32 %v6174_v22, %v5486_v10 }
 0x79b   :  { %v6171_v54 = vld [vmem:[#allocation8 + $0x524] sm:$0xf]  ;;  %v5299_v3 = vor.u32 %v6123_v25, %v5296_v45 }
 0x79c   :  { %v7200_v2 = vadd.f32 %v2334_v39, %v2331_v51  ;;  %v7202_v59 = vadd.f32 %v2335_v9, %v2332_v12  ;;  %v5323_v39 = vor.u32 %v6129_v58, %v5320_v60  ;;  %v5515_v9 = vor.u32 %v6177_v0, %v5512_v46  ;;  %v5488_v51 = vld [vmem:[#allocation8 + $0x538] sm:$0xf0] }
 0x79d   :  { %v5295_v12 = vor.u32 %v6126_v21, %v5294_v8  ;;  %v5491_v7 = vor.u32 %v6171_v54, %v5488_v51  ;;  %v2444_v0 = vperm.slane %v7224_v57, 0  ;;  %v2445_v46 = vperm.slane %v7224_v57, 1 }
 0x79e   :  { %v7206_v20 = vpack.c.bf16 %v7200_v2, %v7196_v16  ;;  %v7210_v38 = vpack.c.bf16 %v7202_v59, %v7198_v15  ;;  %v2446_v54 = vperm.slane %v7224_v57, 2 }
 0x7a0   :  { %2944 = vmatmul.bf16.vlgmr.msra.gmra.mxu0 %v7206_v20  ;;  %2958 = vmatmul.bf16.vlgmr.msra.gmra.mxu1 %v7210_v38 }
 0x7a1   :  { %2972 = vmatmul.bf16.vlgmr.msrb.gmra.mxu2 %v7206_v20  ;;  %2986 = vmatmul.bf16.vlgmr.msrb.gmra.mxu3 %v7210_v38 }
 0x7a2   :  { %3048 = vmatpush.bf16.msra.mxu0 %v5391_v23  ;;  %3062 = vmatpush.bf16.msra.mxu1 %v5583_v24  ;;  %v5272_v23 = vld [vmem:[#allocation8 + $0x388] sm:$0xf0]  ;;  %v6165_v24 = vld [vmem:[#allocation8 + $0x4f4] sm:$0xf] }
 0x7a3   :  { %3076 = vmatpush.bf16.msrb.mxu2 %v5395_v28  ;;  %3090 = vmatpush.bf16.msrb.mxu3 %v5587_v62  ;;  %v5463_v28 = vor.u32 %v6168_v18, %v5462_v17  ;;  %v5246_v62 = vld [vmem:[#allocation8 + $0x340] sm:$0xf]  ;;  %v5275_v30 = vor.u32 %v6117_v19, %v5272_v23  ;;  %v5467_v31 = vor.u32 %v6165_v24, %v5464_v26 }
 0x7a4   :  { %v5247_v41 = vor.u32 %v6114_v29, %v5246_v62 }
 0x7a6   :  { %3049 = vmatpush.bf16.msra.mxu0 %v5367_v37  ;;  %3063 = vmatpush.bf16.msra.mxu1 %v5559_v40  ;;  %v5248_v37 = vld [vmem:[#allocation8 + $0x358] sm:$0xf0]  ;;  %v6159_v40 = vld [vmem:[#allocation8 + $0x4c4] sm:$0xf] }
 0x7a7   :  { %3077 = vmatpush.bf16.msrb.mxu2 %v5371_v63  ;;  %3091 = vmatpush.bf16.msrb.mxu3 %v5563_v4  ;;  %v5439_v63 = vor.u32 %v6162_v35, %v5438_v34  ;;  %v5222_v4 = vld [vmem:[#allocation8 + $0x310] sm:$0xf]  ;;  %v5251_v43 = vor.u32 %v6111_v36, %v5248_v37  ;;  %v5443_v5 = vor.u32 %v6159_v40, %v5440_v61 }
 0x7a8   :  { %v5223_v52 = vor.u32 %v6108_v42, %v5222_v4  ;;  %v2449_v42 = vperm.slane %v7224_v57, 5 }
 0x7aa   :  { %3050 = vmatpush.bf16.msra.mxu0 %v5343_v49  ;;  %3064 = vmatpush.bf16.msra.mxu1 %v5535_v50  ;;  %v5224_v49 = vld [vmem:[#allocation8 + $0x328] sm:$0xf0]  ;;  %v6153_v50 = vld [vmem:[#allocation8 + $0x494] sm:$0xf] }
 0x7ab   :  { %3078 = vmatpush.bf16.msrb.mxu2 %v5347_v53  ;;  %3092 = vmatpush.bf16.msrb.mxu3 %v5539_v55  ;;  %v5415_v53 = vor.u32 %v6156_v47, %v5414_v44  ;;  %v5227_v55 = vor.u32 %v6105_v48, %v5224_v49  ;;  %v5419_v56 = vor.u32 %v6153_v50, %v5416_v11 }
 0x7ae   :  { %3051 = vmatpush.bf16.msra.mxu0 %v5319_v32  ;;  %3065 = vmatpush.bf16.msra.mxu1 %v5511_v1 }
 0x7af   :  { %3079 = vmatpush.bf16.msrb.mxu2 %v5323_v39  ;;  %3093 = vmatpush.bf16.msrb.mxu3 %v5515_v9 }
 0x7b0   :  { %3000 = vmatmul.bf16.vlgmr.msrb.gmra.mxu0 %v7206_v20  ;;  %3014 = vmatmul.bf16.vlgmr.msrb.gmra.mxu1 %v7210_v38 }
 0x7b1   :  { %3028 = vmatmul.bf16.vlgmr.msra.gmra.mxu2 %v7206_v20  ;;  %3042 = vmatmul.bf16.vlgmr.msra.gmra.mxu3 %v7210_v38 }
 0x7b2   :  { %3052 = vmatpush.bf16.msra.mxu0 %v5295_v12  ;;  %3066 = vmatpush.bf16.msra.mxu1 %v5487_v13  ;;  %v2447_v12 = vperm.slane %v7224_v57, 3 }
 0x7b3   :  { %3080 = vmatpush.bf16.msrb.mxu2 %v5299_v3  ;;  %3094 = vmatpush.bf16.msrb.mxu3 %v5491_v7 }
 0x7b6   :  { %3053 = vmatpush.bf16.msra.mxu0 %v5271_v27  ;;  %3067 = vmatpush.bf16.msra.mxu1 %v5463_v28 }
 0x7b7   :  { %3081 = vmatpush.bf16.msrb.mxu2 %v5275_v30  ;;  %3095 = vmatpush.bf16.msrb.mxu3 %v5467_v31 }
 0x7ba   :  { %3054 = vmatpush.bf16.msra.mxu0 %v5247_v41  ;;  %3068 = vmatpush.bf16.msra.mxu1 %v5439_v63  ;;  %v2448_v41 = vperm.slane %v7224_v57, 4 }
 0x7bb   :  { %3082 = vmatpush.bf16.msrb.mxu2 %v5251_v43  ;;  %3096 = vmatpush.bf16.msrb.mxu3 %v5443_v5 }
 0x7be   :  { %3055 = vmatpush.bf16.msra.mxu0 %v5223_v52  ;;  %3069 = vmatpush.bf16.msra.mxu1 %v5415_v53 }
 0x7bf   :  { %3083 = vmatpush.bf16.msrb.mxu2 %v5227_v55  ;;  %3097 = vmatpush.bf16.msrb.mxu3 %v5419_v56 }
 0x7c1   :  { %3056 = vmatmul.bf16.vlgmr.msra.gmra.mxu0 %v7206_v20  ;;  %3070 = vmatmul.bf16.vlgmr.msra.gmra.mxu1 %v7210_v38 }
 0x7c2   :  { %3084 = vmatmul.bf16.vlgmr.msrb.gmra.mxu2 %v7206_v20  ;;  %3098 = vmatmul.bf16.vlgmr.msrb.gmra.mxu3 %v7210_v38 }
 0x81d   :  { %v2945_v58 = vpop.f32.mrf.mxu0  ;;  %v2959_v60 = vpop.f32.mrf.mxu1 }
 0x81e   :  { %v2946_v32 = vadd.f32 %v2945_v58, %v2444_v0 }
 0x820   :  { %v2960_v10 = vadd.f32 %v2959_v60, %v2946_v32 }
 0x824   :  { %v2973_v1 = vpop.f32.mrf.mxu2  ;;  %v2987_v8 = vpop.f32.mrf.mxu3 }
 0x825   :  { %v2974_v21 = vadd.f32 %v2973_v1, %v2445_v46  ;;  %v2947_v39 = vpop.f32.mrf.mxu0  ;;  %v2961_v9 = vpop.f32.mrf.mxu1 }
 0x826   :  { %v2948_v26 = vadd.f32 %v2947_v39, %v2444_v0 }
 0x827   :  { %v2988_v22 = vadd.f32 %v2987_v8, %v2974_v21 }
 0x828   :  { %v2962_v36 = vadd.f32 %v2961_v9, %v2948_v26 }
 0x829   :  { %v7228_v25 = vpack.c.bf16 %v2988_v22, %v2960_v10 }
 0x82b   :  { %3114 = vrot.lane.b32.xlu2 %v7228_v25, %s6764_s27  ;;  %v3112_v39 = vrot.slane %v7228_v25, 4 }
 0x82c   :  { %v2975_v20 = vpop.f32.mrf.mxu2  ;;  %v2989_v38 = vpop.f32.mrf.mxu3 }
 0x82d   :  { %v3001_v45 = vpop.f32.mrf.mxu0  ;;  %v3015_v51 = vpop.f32.mrf.mxu1  ;;  %v2976_v19 = vadd.f32 %v2975_v20, %v2445_v46 }
 0x82e   :  { %v3002_v13 = vadd.f32 %v3001_v45, %v2446_v54 }
 0x82f   :  { %v2990_v31 = vadd.f32 %v2989_v38, %v2976_v19 }
 0x830   :  { %v3016_v17 = vadd.f32 %v3015_v51, %v3002_v13 }
 0x831   :  { %v3107_v63 = vpack.c.bf16 %v2990_v31, %v2962_v36 }
 0x833   :  { %v3113_v38 = vrot.slane %v3107_v63, 4 }
 0x834   :  { %v3029_v14 = vpop.f32.mrf.mxu2  ;;  %v3043_v33 = vpop.f32.mrf.mxu3 }
 0x835   :  { %v3030_v3 = vadd.f32 %v3029_v14, %v2447_v12  ;;  %v3003_v7 = vpop.f32.mrf.mxu0  ;;  %v3017_v24 = vpop.f32.mrf.mxu1 }
 0x836   :  { %v3004_v27 = vadd.f32 %v3003_v7, %v2446_v54 }
 0x837   :  { %v3044_v18 = vadd.f32 %v3043_v33, %v3030_v3 }
 0x838   :  { %v3018_v37 = vadd.f32 %v3017_v24, %v3004_v27 }
 0x839   :  { %v3105_v23 = vpack.c.bf16 %v3044_v18, %v3016_v17 }
 0x83b   :  { %3124 = vrot.lane.b32.xlu0 %v3105_v23, %s6764_s27  ;;  %v3144_v28 = vsel %vm1187_vm0, %v3105_v23, 0  ;;  %v3122_v62 = vrot.slane %v3105_v23, 4 }
 0x83c   :  { %v3031_v29 = vpop.f32.mrf.mxu2  ;;  %v3045_v30 = vpop.f32.mrf.mxu3  ;;  %3153 = vmatpush.bf16.xpose.msrb.mxu0 %v3144_v28 }
 0x83d   :  { %v3032_v34 = vadd.f32 %v3031_v29, %v2447_v12  ;;  %v3220_v35 = vsel %vm1187_vm0, %v3122_v62, 0 }
 0x83e   :  { %v3057_v61 = vpop.f32.mrf.mxu0  ;;  %v3071_v47 = vpop.f32.mrf.mxu1 }
 0x83f   :  { %v3046_v40 = vadd.f32 %v3045_v30, %v3032_v34  ;;  %v3058_v44 = vadd.f32 %v3057_v61, %v2448_v41 }
 0x841   :  { %v3108_v4 = vpack.c.bf16 %v3046_v40, %v3018_v37  ;;  %v3072_v52 = vadd.f32 %v3071_v47, %v3058_v44 }
 0x843   :  { %3126 = vrot.lane.b32.xlu1 %v3108_v4, %s6764_s27  ;;  %3116 = vrot.lane.b32.xlu0 %v3107_v63, %s6764_s27  ;;  %v3163_v43 = vsel %vm1187_vm0, %v3108_v4, 0  ;;  %v3123_v5 = vrot.slane %v3108_v4, 4 }
 0x844   :  { %3229 = vmatpush.bf16.xpose.msra.mxu0 %v3220_v35  ;;  %3172 = vmatpush.bf16.xpose.msrb.mxu1 %v3163_v43 }
 0x845   :  { %5588 = vmatmul.msk.bf16.vlgmr.msrb.gmra.mxu0 %vm1187_vm0, %v7228_v25  ;;  %v3085_v48 = vpop.f32.mrf.mxu2  ;;  %v3099_v49 = vpop.f32.mrf.mxu3  ;;  %v3239_v50 = vsel %vm1187_vm0, %v3123_v5, 0 }
 0x846   :  { %v3086_v11 = vadd.f32 %v3085_v48, %v2449_v42  ;;  %v3059_v55 = vpop.f32.mrf.mxu0  ;;  %v3073_v46 = vpop.f32.mrf.mxu1 }
 0x847   :  { %v3060_v57 = vadd.f32 %v3059_v55, %v2448_v41 }
 0x848   :  { %v3100_v53 = vadd.f32 %v3099_v49, %v3086_v11 }
 0x849   :  { %v3074_v1 = vadd.f32 %v3073_v46, %v3060_v57 }
 0x84a   :  { %v7245_v56 = vpack.c.bf16 %v3100_v53, %v3072_v52 }
 0x84b   :  { %5589 = vmatmul.msk.bf16.vlgmr.msrb.gmra.mxu1 %vm1187_vm0, %v3107_v63 }
 0x84c   :  { %3248 = vmatpush.bf16.xpose.msra.mxu1 %v3239_v50  ;;  %v3392_v58 = vsel %vm1440_vm1, %v7245_v56, 0  ;;  %v3132_v21 = vrot.slane %v7245_v56, 4 }
 0x84d   :  { %v3087_v60 = vpop.f32.mrf.mxu2  ;;  %3401 = vmatpush.bf16.msrb.mxu0 %v3392_v58  ;;  %v3101_v32 = vpop.f32.mrf.mxu3 }
 0x84e   :  { %v3088_v0 = vadd.f32 %v3087_v60, %v2449_v42  ;;  %v3468_v10 = vsel %vm1440_vm1, %v3132_v21, 0 }
 0x850   :  { %v3102_v8 = vadd.f32 %v3101_v32, %v3088_v0 }
 0x852   :  { %v7252_v9 = vpack.c.bf16 %v3102_v8, %v3074_v1 }
 0x854   :  { %v3411_v22 = vsel %vm1440_vm1, %v7252_v9, 0  ;;  %v3133_v20 = vrot.slane %v7252_v9, 4 }
 0x855   :  { %5592 = vmatmul.msk.bf16.vlgmr.msra.gmra.mxu0 %vm1187_vm0, %v3112_v39  ;;  %3420 = vmatpush.bf16.msrb.mxu1 %v3411_v22 }
 0x856   :  { %3477 = vmatpush.bf16.msra.mxu0 %v3468_v10  ;;  %v3487_v45 = vsel %vm1440_vm1, %v3133_v20, 0 }
 0x85b   :  { %5593 = vmatmul.msk.bf16.vlgmr.msra.gmra.mxu1 %vm1187_vm0, %v3113_v38 }
 0x85c   :  { %3496 = vmatpush.bf16.msra.mxu1 %v3487_v45 }
 0x885   :  { %v3115_v13 = vpop.permute.xlu2 %3114 }
 0x886   :  { %v3118_v19 = vrot.slane %v3115_v13, 4 }
 0x8ad   :  { %v3125_v25 = vpop.permute.xlu0 %3124 }
 0x8ae   :  { %v3128_v54 = vrot.slane %v3125_v25, 4  ;;  %v3182_v51 = vsel %vm1187_vm0, %v3125_v25, 0 }
 0x8af   :  { %3191 = vmatpush.bf16.xpose.msra.mxu2 %v3182_v51 }
 0x8b0   :  { %v3258_v12 = vsel %vm1187_vm0, %v3128_v54, 0 }
 0x8b5   :  { %v3127_v14 = vpop.permute.xlu1 %3126  ;;  %v3117_v17 = vpop.permute.xlu0 %3116 }
 0x8b6   :  { %v3129_v33 = vrot.slane %v3127_v14, 4  ;;  %v3201_v3 = vsel %vm1187_vm0, %v3127_v14, 0  ;;  %5590 = vmatmul.msk.bf16.vlgmr.msra.gmra.mxu2 %vm1187_vm0, %v3115_v13  ;;  %v3119_v26 = vrot.slane %v3117_v17, 4 }
 0x8b7   :  { %3267 = vmatpush.bf16.xpose.msrb.mxu2 %v3258_v12  ;;  %3210 = vmatpush.bf16.xpose.msra.mxu3 %v3201_v3 }
 0x8b8   :  { %v3277_v7 = vsel %vm1187_vm0, %v3129_v33, 0 }
 0x8be   :  { %5591 = vmatmul.msk.bf16.vlgmr.msra.gmra.mxu3 %vm1187_vm0, %v3117_v17 }
 0x8bf   :  { %3286 = vmatpush.bf16.xpose.msrb.mxu3 %v3277_v7 }
 0x8c2   :  { %v3155_v18 = vpop.f32.mrf.mxu0 }
 0x8c3   :  { %v3292_v63 = vsel %vm1340_vm2, %v3155_v18, -inf }
 0x8c6   :  { %5594 = vmatmul.msk.bf16.vlgmr.msrb.gmra.mxu2 %vm1187_vm0, %v3118_v19 }
 0x8c8   :  { %v3174_v23 = vpop.f32.mrf.mxu1 }
 0x8c9   :  { %v3295_v5 = vsel %vm1340_vm2, %v3174_v23, -inf }
 0x8ca   :  { %v3157_v24 = vpop.f32.mrf.mxu0 }
 0x8ce   :  { %5595 = vmatmul.msk.bf16.vlgmr.msrb.gmra.mxu3 %vm1187_vm0, %v3119_v26 }
 0x8d0   :  { %v3176_v27 = vpop.f32.mrf.mxu1 }
 0x8d2   :  { %v7269_v28 = vpop.f32.mrf.mxu0 }
 0x8d3   :  { %v3304_v44 = vsel %vm1340_vm2, %v7269_v28, -inf }
 0x8d8   :  { %v7271_v62 = vpop.f32.mrf.mxu1 }
 0x8d9   :  { %v3307_v22 = vsel %vm1340_vm2, %v7271_v62, -inf }
 0x8da   :  { %v3233_v29 = vpop.f32.mrf.mxu0 }
 0x8e0   :  { %v3252_v30 = vpop.f32.mrf.mxu1 }
 0x939   :  { %v3193_v31 = vpop.f32.mrf.mxu2 }
 0x93a   :  { %v3298_v34 = vsel %vm1340_vm2, %v3193_v31, -inf }
 0x93b   :  { %3299 = vmax.xlane.f32.xlu0 %v3298_v34 }
 0x941   :  { %v3195_v35 = vpop.f32.mrf.mxu2  ;;  %v3212_v36 = vpop.f32.mrf.mxu3 }
 0x942   :  { %v3301_v37 = vsel %vm1340_vm2, %v3212_v36, -inf }
 0x943   :  { %3302 = vmax.xlane.f32.xlu1 %v3301_v37 }
 0x949   :  { %v3214_v40 = vpop.f32.mrf.mxu3  ;;  %v3269_v61 = vpop.f32.mrf.mxu2 }
 0x94a   :  { %v3310_v41 = vsel %vm1340_vm2, %v3269_v61, -inf }
 0x94b   :  { %3311 = vmax.xlane.f32.xlu2 %v3310_v41  ;;  %3293 = vmax.xlane.f32.xlu1 %v3292_v63 }
 0x951   :  { %v3271_v4 = vpop.f32.mrf.mxu2  ;;  %v3288_v42 = vpop.f32.mrf.mxu3 }
 0x952   :  { %v3313_v43 = vsel %vm1340_vm2, %v3288_v42, -inf }
 0x953   :  { %3314 = vmax.xlane.f32.xlu0 %v3313_v43  ;;  %3296 = vmax.xlane.f32.xlu2 %v3295_v5 }
 0x954   :  { %3305 = vmax.xlane.f32.xlu1 %v3304_v44 }
 0x959   :  { %v3290_v47 = vpop.f32.mrf.mxu3 }
 0x96b   :  { %3134 = vrot.lane.b32.xlu2 %v7245_v56, %s6764_s27 }
 0x9ae   :  { %v3300_v48 = vpop.xlane.xlu0 %3299 }
 0x9af   :  { %v3318_v49 = vsub.f32 %v3193_v31, %v3300_v48 }
 0x9b1   :  { %v3328_v50 = vmul.f32 1.442695, %v3318_v49 }
 0x9b3   :  { %6351 = vpow2.f32 %v3328_v50 }
 0x9b6   :  { %v3303_v11 = vpop.xlane.xlu1 %3302 }
 0x9b7   :  { %v3319_v52 = vsub.f32 %v3212_v36, %v3303_v11 }
 0x9b9   :  { %v6352_v53 = vpop.eup %6351  ;;  %v3330_v55 = vmul.f32 1.442695, %v3319_v52 }
 0x9ba   :  { %v3346_v57 = vsel %vm1340_vm2, %v6352_v53, 0.0 }
 0x9bb   :  { %6353 = vpow2.f32 %v3330_v55  ;;  %3347 = vadd.xlane.f32.xlu0 %v3346_v57 }
 0x9be   :  { %v3312_v58 = vpop.xlane.xlu2 %3311  ;;  %v3294_v60 = vpop.xlane.xlu1 %3293 }
 0x9bf   :  { %v3316_v0 = vsub.f32 %v3155_v18, %v3294_v60  ;;  %v3322_v32 = vsub.f32 %v3269_v61, %v3312_v58 }
 0x9c1   :  { %v6354_v46 = vpop.eup %6353  ;;  %v3324_v1 = vmul.f32 1.442695, %v3316_v0  ;;  %v3336_v8 = vmul.f32 1.442695, %v3322_v32 }
 0x9c2   :  { %v3349_v56 = vsel %vm1340_vm2, %v6354_v46, 0.0 }
 0x9c3   :  { %3350 = vadd.xlane.f32.xlu1 %v3349_v56  ;;  %6355 = vpow2.f32 %v3324_v1 }
 0x9c4   :  { %6357 = vpow2.f32 %v3336_v8 }
 0x9c6   :  { %v3297_v21 = vpop.xlane.xlu2 %3296 }
 0x9c7   :  { %v3317_v39 = vsub.f32 %v3174_v23, %v3297_v21  ;;  %v3306_v45 = vpop.xlane.xlu1 %3305 }
 0x9c8   :  { %v3320_v13 = vsub.f32 %v7269_v28, %v3306_v45 }
 0x9c9   :  { %v6356_v10 = vpop.eup %6355  ;;  %v3326_v38 = vmul.f32 1.442695, %v3317_v39 }
 0x9ca   :  { %v3340_v20 = vsel %vm1340_vm2, %v6356_v10, 0.0  ;;  %v6358_v54 = vpop.eup %6357  ;;  %v3332_v3 = vmul.f32 1.442695, %v3320_v13 }
 0x9cb   :  { %3308 = vmax.xlane.f32.xlu1 %v3307_v22  ;;  %3341 = vadd.xlane.f32.xlu2 %v3340_v20  ;;  %6359 = vpow2.f32 %v3326_v38  ;;  %v3358_v33 = vsel %vm1340_vm2, %v6358_v54, 0.0 }
 0x9cc   :  { %6361 = vpow2.f32 %v3332_v3 }
 0x9ce   :  { %v3135_v25 = vpop.permute.xlu2 %3134 }
 0x9cf   :  { %v3138_v51 = vrot.slane %v3135_v25, 4  ;;  %v3430_v12 = vsel %vm1440_vm1, %v3135_v25, 0  ;;  %3136 = vrot.lane.b32.xlu0 %v7252_v9, %s6764_s27  ;;  %v3315_v9 = vpop.xlane.xlu0 %3314 }
 0x9d0   :  { %3439 = vmatpush.bf16.msra.mxu2 %v3430_v12  ;;  %v3323_v23 = vsub.f32 %v3288_v42, %v3315_v9 }
 0x9d1   :  { %v3506_v14 = vsel %vm1440_vm1, %v3138_v51, 0  ;;  %v6360_v7 = vpop.eup %6359 }
 0x9d2   :  { %v3343_v17 = vsel %vm1340_vm2, %v6360_v7, 0.0  ;;  %v6362_v18 = vpop.eup %6361  ;;  %v3338_v24 = vmul.f32 1.442695, %v3323_v23 }
 0x9d3   :  { %3359 = vadd.xlane.f32.xlu1 %v3358_v33  ;;  %v3352_v19 = vsel %vm1340_vm2, %v6362_v18, 0.0 }
 0x9d4   :  { %3515 = vmatpush.bf16.msrb.mxu2 %v3506_v14  ;;  %6363 = vpow2.f32 %v3338_v24 }
 0x9da   :  { %v6364_v26 = vpop.eup %6363 }
 0x9db   :  { %3344 = vadd.xlane.f32.xlu1 %v3343_v17  ;;  %v3361_v27 = vsel %vm1340_vm2, %v6364_v26, 0.0 }
 0x9e3   :  { %3353 = vadd.xlane.f32.xlu1 %v3352_v19 }
 0x9f9   :  { %3362 = vadd.xlane.f32.xlu0 %v3361_v27 }
 0xa2e   :  { %v3348_v28 = vpop.xlane.xlu0 %3347 }
 0xa2f   :  { %6365 = vrcp.f32 %v3348_v28 }
 0xa35   :  { %v6366_v29 = vpop.eup %6365 }
 0xa36   :  { %v3374_v30 = vmul.f32 %v6366_v29, %v6352_v53  ;;  %v3351_v31 = vpop.xlane.xlu1 %3350 }
 0xa37   :  { %6367 = vrcp.f32 %v3351_v31  ;;  %v5663_v31 = vld [vmem:[#allocation11 + $0x170] sm:$0xf] }
 0xa38   :  { %v3382_v34 = vpack.c.bf16 %v3374_v30, %v3374_v30 }
 0xa3a   :  { %5598 = vmatmul.msk.bf16.vlgmr.msra.gmra.mxu2 %vm1340_vm2, %v3382_v34  ;;  %v6214_v34 = vld [vmem:[#allocation11 + $0x174] sm:$0xf0] }
 0xa3d   :  { %v6368_v35 = vpop.eup %6367 }
 0xa3e   :  { %v3309_v36 = vpop.xlane.xlu1 %3308  ;;  %v3342_v37 = vpop.xlane.xlu2 %3341  ;;  %v3375_v61 = vmul.f32 %v6368_v35, %v6354_v46  ;;  %v6213_v35 = vld [vmem:[#allocation11 + $0x174] sm:$0xf] }
 0xa3f   :  { %v3321_v40 = vsub.f32 %v7271_v62, %v3309_v36  ;;  %6369 = vrcp.f32 %v3342_v37  ;;  %v5664_v36 = vor.u32 %v6214_v34, %v5663_v31  ;;  %v5665_v37 = vld [vmem:[#allocation11 + $0x178] sm:$0xf0]  ;;  %v5727_v34 = vld [vmem:[#allocation11 + $0x1f0] sm:$0xf] }
 0xa40   :  { %v3383_v43 = vpack.c.bf16 %v3375_v61, %v3375_v61  ;;  %v6212_v61 = vld [vmem:[#allocation11 + $0x164] sm:$0xf0] }
 0xa41   :  { %v3334_v41 = vmul.f32 1.442695, %v3321_v40  ;;  %v3137_v63 = vpop.permute.xlu0 %3136  ;;  %v5655_v40 = vld [vmem:[#allocation11 + $0x160] sm:$0xf] }
 0xa42   :  { %v3139_v4 = vrot.slane %v3137_v63, 4  ;;  %v3449_v42 = vsel %vm1440_vm1, %v3137_v63, 0  ;;  %v6211_v63 = vld [vmem:[#allocation11 + $0x164] sm:$0xf] }
 0xa43   :  { %6371 = vpow2.f32 %v3334_v41  ;;  %3458 = vmatpush.bf16.msra.mxu3 %v3449_v42  ;;  %v5668_v41 = vor.u32 %v6213_v35, %v5665_v37  ;;  %v5656_v42 = vor.u32 %v6212_v61, %v5655_v40  ;;  %v6230_v35 = vld [vmem:[#allocation11 + $0x1f4] sm:$0xf0]  ;;  %v5729_v40 = vld [vmem:[#allocation11 + $0x1f8] sm:$0xf0]  ;;  %v5719_v61 = vld [vmem:[#allocation11 + $0x1e0] sm:$0xf] }
 0xa44   :  { %v3525_v5 = vsel %vm1440_vm1, %v3139_v4, 0  ;;  %v5657_v4 = vld [vmem:[#allocation11 + $0x168] sm:$0xf0]  ;;  %v5728_v37 = vor.u32 %v6230_v35, %v5727_v34  ;;  %v5604_v35 = vld [vmem:[%s7434_s6 + $0x2] sm:$0x3] }
 0xa45   :  { %v6370_v44 = vpop.eup %6369  ;;  %3808 = vmatpush.bf16.msra.mxu2 %v5668_v41  ;;  %v6228_v41 = vld [vmem:[#allocation11 + $0x1e4] sm:$0xf0] }
 0xa46   :  { %5599 = vmatmul.msk.bf16.vlgmr.msra.gmra.mxu3 %vm1340_vm2, %v3383_v43  ;;  %v3360_v47 = vpop.xlane.xlu1 %3359  ;;  %v3372_v48 = vmul.f32 %v6370_v44, %v6356_v10  ;;  %v5647_v44 = vld [vmem:[#allocation11 + $0x150] sm:$0xf] }
 0xa47   :  { %3534 = vmatpush.bf16.msrb.mxu3 %v3525_v5  ;;  %6373 = vrcp.f32 %v3360_v47  ;;  %v5660_v5 = vor.u32 %v6211_v63, %v5657_v4  ;;  %v6210_v47 = vld [vmem:[#allocation11 + $0x154] sm:$0xf0]  ;;  %v6227_v4 = vld [vmem:[#allocation11 + $0x1e4] sm:$0xf] }
 0xa48   :  { %v3380_v49 = vpack.c.bf16 %v3372_v48, %v3372_v48  ;;  %v6209_v48 = vld [vmem:[#allocation11 + $0x154] sm:$0xf] }
 0xa49   :  { %v6372_v62 = vpop.eup %6371  ;;  %3809 = vmatpush.bf16.msra.mxu2 %v5660_v5 }
 0xa4a   :  { %v3355_v50 = vsel %vm1340_vm2, %v6372_v62, 0.0  ;;  %5596 = vmatmul.msk.bf16.vlgmr.msrb.gmra.mxu0 %vm1340_vm2, %v3380_v49  ;;  %v5648_v49 = vor.u32 %v6210_v47, %v5647_v44  ;;  %v5711_v44 = vld [vmem:[#allocation11 + $0x1d0] sm:$0xf]  ;;  %v6226_v47 = vld [vmem:[#allocation11 + $0x1d4] sm:$0xf0] }
 0xa4b   :  { %3356 = vadd.xlane.f32.xlu1 %v3355_v50  ;;  %3780 = vmatpush.bf16.msrb.mxu0 %v5664_v36  ;;  %v6229_v36 = vld [vmem:[#allocation11 + $0x1f4] sm:$0xf] }
 0xa4c   :  { %v5732_v63 = vor.u32 %v6229_v36, %v5729_v40  ;;  %v3616_v36 = vperm.slane %v5604_v35, 0 }
 0xa4d   :  { %v6374_v11 = vpop.eup %6373 }
 0xa4e   :  { %v3378_v52 = vmul.f32 %v6374_v11, %v6358_v54  ;;  %v3345_v53 = vpop.xlane.xlu1 %3344  ;;  %v5639_v11 = vld [vmem:[#allocation11 + $0x140] sm:$0xf]  ;;  %3822 = vmatpush.bf16.msra.mxu3 %v5732_v63  ;;  %v3617_v63 = vperm.slane %v5604_v35, 1 }
 0xa4f   :  { %6375 = vrcp.f32 %v3345_v53  ;;  %3781 = vmatpush.bf16.msrb.mxu0 %v5656_v42  ;;  %v6207_v53 = vld [vmem:[#allocation11 + $0x144] sm:$0xf]  ;;  %v5721_v42 = vld [vmem:[#allocation11 + $0x1e8] sm:$0xf0] }
 0xa50   :  { %v3386_v55 = vpack.c.bf16 %v3378_v52, %v3378_v52  ;;  %v6208_v52 = vld [vmem:[#allocation11 + $0x144] sm:$0xf0]  ;;  %v5724_v5 = vor.u32 %v6227_v4, %v5721_v42 }
 0xa52   :  { %5602 = vmatmul.msk.bf16.vlgmr.msrb.gmra.mxu2 %vm1340_vm2, %v3386_v55  ;;  %v5641_v55 = vld [vmem:[#allocation11 + $0x148] sm:$0xf0]  ;;  %3823 = vmatpush.bf16.msra.mxu3 %v5724_v5 }
 0xa53   :  { %3782 = vmatpush.bf16.msrb.mxu0 %v5648_v49  ;;  %v5712_v49 = vor.u32 %v6226_v47, %v5711_v44 }
 0xa55   :  { %v6376_v57 = vpop.eup %6375 }
 0xa56   :  { %v3373_v58 = vmul.f32 %v6376_v57, %v6360_v7  ;;  %v3354_v60 = vpop.xlane.xlu1 %3353  ;;  %v5640_v57 = vor.u32 %v6208_v52, %v5639_v11  ;;  %v5703_v11 = vld [vmem:[#allocation11 + $0x1c0] sm:$0xf]  ;;  %v6224_v52 = vld [vmem:[#allocation11 + $0x1c4] sm:$0xf0] }
 0xa57   :  { %6377 = vrcp.f32 %v3354_v60  ;;  %v5631_v60 = vld [vmem:[#allocation11 + $0x130] sm:$0xf] }
 0xa58   :  { %v3381_v0 = vpack.c.bf16 %v3373_v58, %v3373_v58  ;;  %v5644_v58 = vor.u32 %v6207_v53, %v5641_v55  ;;  %3783 = vmatpush.bf16.msrb.mxu0 %v5640_v57  ;;  %v6223_v53 = vld [vmem:[#allocation11 + $0x1c4] sm:$0xf]  ;;  %v5705_v55 = vld [vmem:[#allocation11 + $0x1c8] sm:$0xf0]  ;;  %v5704_v57 = vor.u32 %v6224_v52, %v5703_v11 }
 0xa5a   :  { %5597 = vmatmul.msk.bf16.vlgmr.msrb.gmra.mxu1 %vm1340_vm2, %v3381_v0  ;;  %v6206_v0 = vld [vmem:[#allocation11 + $0x134] sm:$0xf0] }
 0xa5b   :  { %3794 = vmatpush.bf16.msrb.mxu1 %v5728_v37 }
 0xa5d   :  { %v6378_v46 = vpop.eup %6377 }
 0xa5e   :  { %v3376_v32 = vmul.f32 %v6378_v46, %v6362_v18  ;;  %v6205_v46 = vld [vmem:[#allocation11 + $0x134] sm:$0xf] }
 0xa60   :  { %v3384_v1 = vpack.c.bf16 %v3376_v32, %v3376_v32  ;;  %v5633_v32 = vld [vmem:[#allocation11 + $0x138] sm:$0xf0] }
 0xa62   :  { %5600 = vmatmul.msk.bf16.vlgmr.msra.gmra.mxu0 %vm1340_vm2, %v3384_v1  ;;  %v5632_v1 = vor.u32 %v6206_v0, %v5631_v60  ;;  %v5695_v60 = vld [vmem:[#allocation11 + $0x1b0] sm:$0xf]  ;;  %v6222_v0 = vld [vmem:[#allocation11 + $0x1b4] sm:$0xf0] }
 0xa64   :  { %3784 = vmatpush.bf16.msrb.mxu0 %v5632_v1  ;;  %v5696_v1 = vor.u32 %v6222_v0, %v5695_v60 }
 0xa6c   :  { %v3363_v56 = vpop.xlane.xlu0 %3362 }
 0xa6d   :  { %6379 = vrcp.f32 %v3363_v56  ;;  %v5636_v56 = vor.u32 %v6205_v46, %v5633_v32  ;;  %v6221_v46 = vld [vmem:[#allocation11 + $0x1b4] sm:$0xf]  ;;  %v5697_v32 = vld [vmem:[#allocation11 + $0x1b8] sm:$0xf0] }
 0xa73   :  { %v6380_v8 = vpop.eup %6379 }
 0xa74   :  { %v3379_v21 = vmul.f32 %v6380_v8, %v6364_v26  ;;  %v5623_v8 = vld [vmem:[#allocation11 + $0x120] sm:$0xf] }
 0xa76   :  { %v3387_v39 = vpack.c.bf16 %v3379_v21, %v3379_v21  ;;  %v6204_v21 = vld [vmem:[#allocation11 + $0x124] sm:$0xf0] }
 0xa78   :  { %5603 = vmatmul.msk.bf16.vlgmr.msrb.gmra.mxu3 %vm1340_vm2, %v3387_v39  ;;  %v6203_v39 = vld [vmem:[#allocation11 + $0x124] sm:$0xf] }
 0xabd   :  { %v3441_v10 = vpop.f32.mrf.mxu2 }
 0xabe   :  { %v3357_v22 = vpop.xlane.xlu1 %3356  ;;  %v3542_v25 = vpack.c.bf16 %v3441_v10, %v3441_v10  ;;  %v5625_v10 = vld [vmem:[#allocation11 + $0x128] sm:$0xf0] }
 0xabf   :  { %6381 = vrcp.f32 %v3357_v22  ;;  %v5624_v22 = vor.u32 %v6204_v21, %v5623_v8  ;;  %v5687_v8 = vld [vmem:[#allocation11 + $0x1a0] sm:$0xf]  ;;  %v6220_v21 = vld [vmem:[#allocation11 + $0x1a4] sm:$0xf0] }
 0xac0   :  { %v3555_v14 = vunpack.c.l.b16 %v3542_v25  ;;  %v6201_v25 = vld [vmem:[#allocation11 + $0x114] sm:$0xf] }
 0xac1   :  { %3785 = vmatpush.bf16.msrb.mxu0 %v5624_v22 }
 0xac5   :  { %v6382_v20 = vpop.eup %6381  ;;  %v3443_v38 = vpop.f32.mrf.mxu2 }
 0xac6   :  { %v3377_v45 = vmul.f32 %v6382_v20, %v6372_v62  ;;  %v5649_v62 = vld [vmem:[#allocation11 + $0x158] sm:$0xf0]  ;;  %v5628_v20 = vor.u32 %v6203_v39, %v5625_v10  ;;  %v5615_v38 = vld [vmem:[#allocation11 + $0x110] sm:$0xf]  ;;  %v6219_v39 = vld [vmem:[#allocation11 + $0x1a4] sm:$0xf] }
 0xac7   :  { %v3403_v51 = vpop.f32.mrf.mxu0  ;;  %v5652_v50 = vor.u32 %v6209_v48, %v5649_v62  ;;  %v6225_v48 = vld [vmem:[#allocation11 + $0x1d4] sm:$0xf]  ;;  %v5713_v62 = vld [vmem:[#allocation11 + $0x1d8] sm:$0xf0]  ;;  %v5689_v10 = vld [vmem:[#allocation11 + $0x1a8] sm:$0xf0] }
 0xac8   :  { %v3385_v54 = vpack.c.bf16 %v3377_v45, %v3377_v45  ;;  %v3540_v19 = vpack.c.bf16 %v3403_v51, %v3403_v51  ;;  %v6202_v45 = vld [vmem:[#allocation11 + $0x114] sm:$0xf0] }
 0xac9   :  { %v3460_v12 = vpop.f32.mrf.mxu3  ;;  %3810 = vmatpush.bf16.msra.mxu2 %v5652_v50  ;;  %v5716_v50 = vor.u32 %v6225_v48, %v5713_v62 }
 0xaca   :  { %v3543_v13 = vpack.c.bf16 %v3460_v12, %v3460_v12  ;;  %5601 = vmatmul.msk.bf16.vlgmr.msra.gmra.mxu1 %vm1340_vm2, %v3385_v54  ;;  %v7312_v24 = vunpack.c.l.b16 %v3540_v19  ;;  %v5617_v54 = vld [vmem:[#allocation11 + $0x118] sm:$0xf0]  ;;  %v5616_v12 = vor.u32 %v6202_v45, %v5615_v38  ;;  %v5609_v19 = vld [vmem:[#allocation11 + $0x108] sm:$0xf0]  ;;  %v5692_v45 = vor.u32 %v6219_v39, %v5689_v10  ;;  %v6244_v39 = vld [vmem:[#allocation16 + $0xe8] sm:$0xff] }
 0xacb   :  { %3824 = vmatpush.bf16.msra.mxu3 %v5716_v50  ;;  %v6235_v10 = vld [vmem:[#allocation16 + $0xa0] sm:$0xff] }
 0xacc   :  { %v3556_v33 = vunpack.c.l.b16 %v3543_v13  ;;  %3786 = vmatpush.bf16.msrb.mxu0 %v5616_v12  ;;  %v5681_v12 = vld [vmem:[#allocation11 + $0x198] sm:$0xf0] }
 0xacd   :  { %3811 = vmatpush.bf16.msra.mxu2 %v5644_v58  ;;  %v5708_v58 = vor.u32 %v6223_v53, %v5705_v55 }
 0xace   :  { %v3557_v3 = vpack.c.b16 %v3556_v33, %v3555_v14  ;;  %v5620_v14 = vor.u32 %v6201_v25, %v5617_v54  ;;  %v5607_v33 = vld [vmem:[#allocation11 + $0x100] sm:$0xf]  ;;  %v5679_v25 = vld [vmem:[#allocation11 + $0x190] sm:$0xf]  ;;  %v6218_v54 = vld [vmem:[#allocation11 + $0x194] sm:$0xf0] }
 0xacf   :  { %v3405_v7 = vpop.f32.mrf.mxu0  ;;  %3825 = vmatpush.bf16.msra.mxu3 %v5708_v58 }
 0xad0   :  { %3558 = vrot.lane.b32.xlu1 %v3557_v3, %s6764_s27  ;;  %v6200_v3 = vld [vmem:[#allocation11 + $0x104] sm:$0xf0] }
 0xad1   :  { %v3462_v17 = vpop.f32.mrf.mxu3  ;;  %3812 = vmatpush.bf16.msra.mxu2 %v5636_v56  ;;  %v5700_v56 = vor.u32 %v6221_v46, %v5697_v32 }
 0xad2   :  { %v6199_v17 = vld [vmem:[#allocation11 + $0x104] sm:$0xf] }
 0xad3   :  { %3826 = vmatpush.bf16.msra.mxu3 %v5700_v56  ;;  %v6238_v56 = vld [vmem:[#allocation16 + $0xb8] sm:$0xff] }
 0xad5   :  { %v7310_v18 = vpop.f32.mrf.mxu2  ;;  %3813 = vmatpush.bf16.msra.mxu2 %v5628_v20  ;;  %v5688_v20 = vor.u32 %v6220_v21, %v5687_v8  ;;  %v6246_v8 = vld [vmem:[#allocation16 + $0xf8] sm:$0xff]  ;;  %v6245_v21 = vld [vmem:[#allocation16 + $0xf0] sm:$0xff] }
 0xad6   :  { %v3546_v51 = vpack.c.bf16 %v7310_v18, %v7310_v18 }
 0xad7   :  { %v3422_v9 = vpop.f32.mrf.mxu1  ;;  %3827 = vmatpush.bf16.msra.mxu3 %v5692_v45 }
 0xad8   :  { %v3541_v23 = vpack.c.bf16 %v3422_v9, %v3422_v9  ;;  %v3567_v9 = vunpack.c.l.b16 %v3546_v51  ;;  %v6217_v51 = vld [vmem:[#allocation11 + $0x194] sm:$0xf] }
 0xad9   :  { %3814 = vmatpush.bf16.msra.mxu2 %v5620_v14 }
 0xada   :  { %v7314_v26 = vunpack.c.l.b16 %v3541_v23 }
 0xadc   :  { %v3552_v27 = vpack.c.b16 %v7314_v26, %v7312_v24 }
 0xadd   :  { %v3519_v28 = vpop.f32.mrf.mxu2 }
 0xade   :  { %v5608_v28 = vor.u32 %v6200_v3, %v5607_v33  ;;  %v5684_v33 = vor.u32 %v6217_v51, %v5681_v12  ;;  %v5671_v3 = vld [vmem:[#allocation11 + $0x180] sm:$0xf] }
 0xadf   :  { %v3424_v29 = vpop.f32.mrf.mxu1  ;;  %v7318_v30 = vpop.f32.mrf.mxu0 }
 0xae0   :  { %v5612_v29 = vor.u32 %v6199_v17, %v5609_v19  ;;  %3787 = vmatpush.bf16.msrb.mxu0 %v5608_v28  ;;  %v6215_v17 = vld [vmem:[#allocation11 + $0x184] sm:$0xf]  ;;  %v5673_v19 = vld [vmem:[#allocation11 + $0x188] sm:$0xf0]  ;;  %3828 = vmatpush.bf16.msra.mxu3 %v5684_v33  ;;  %v6241_v33 = vld [vmem:[#allocation16 + $0xd0] sm:$0xff] }
 0xae1   :  { %v5676_v26 = vor.u32 %v6215_v17, %v5673_v19  ;;  %v6232_v17 = vld [vmem:[#allocation16 + $0x88] sm:$0xff] }
 0xae2   :  { %3815 = vmatpush.bf16.msra.mxu2 %v5612_v29  ;;  %v6240_v19 = vld [vmem:[#allocation16 + $0xc8] sm:$0xff] }
 0xae4   :  { %3829 = vmatpush.bf16.msra.mxu3 %v5676_v26  ;;  %4052 = vmatpush.bf16.msra.mxu0 %v6238_v56  ;;  %v6239_v26 = vld [vmem:[#allocation16 + $0xc0] sm:$0xff] }
 0xae7   :  { %v3481_v43 = vpop.f32.mrf.mxu0 }
 0xae8   :  { %v5720_v43 = vor.u32 %v6228_v41, %v5719_v61 }
 0xaea   :  { %3795 = vmatpush.bf16.msrb.mxu1 %v5720_v43 }
 0xaee   :  { %3796 = vmatpush.bf16.msrb.mxu1 %v5712_v49 }
 0xaf2   :  { %3797 = vmatpush.bf16.msrb.mxu1 %v5704_v57 }
 0xaf6   :  { %3798 = vmatpush.bf16.msrb.mxu1 %v5696_v1 }
 0xafa   :  { %3799 = vmatpush.bf16.msrb.mxu1 %v5688_v20 }
 0xafb   :  { %v3536_v13 = vpop.f32.mrf.mxu3 }
 0xafc   :  { %v3547_v7 = vpack.c.bf16 %v3536_v13, %v3536_v13  ;;  %v5680_v13 = vor.u32 %v6218_v54, %v5679_v25  ;;  %v6234_v25 = vld [vmem:[#allocation16 + $0x98] sm:$0xff] }
 0xafd   :  { %v6242_v54 = vld [vmem:[#allocation16 + $0xd8] sm:$0xff] }
 0xafe   :  { %v3568_v23 = vunpack.c.l.b16 %v3547_v7  ;;  %v6216_v7 = vld [vmem:[#allocation11 + $0x184] sm:$0xf0]  ;;  %3800 = vmatpush.bf16.msrb.mxu1 %v5680_v13 }
 0xaff   :  { %v5672_v24 = vor.u32 %v6216_v7, %v5671_v3 }
 0xb00   :  { %v3569_v31 = vpack.c.b16 %v3568_v23, %v3567_v9  ;;  %v3544_v23 = vpack.c.bf16 %v7318_v30, %v7318_v30 }
 0xb02   :  { %3570 = vrot.lane.b32.xlu0 %v3569_v31, %s6764_s27  ;;  %3801 = vmatpush.bf16.msrb.mxu1 %v5672_v24  ;;  %v3562_v29 = vunpack.c.l.b16 %v3544_v23  ;;  %v6231_v24 = vld [vmem:[#allocation16 + $0x80] sm:$0xff]  ;;  %s4465_s27 = sshll.u32 %s7445_s17, 4  ;;  %s4466_s27 = int_to_ptr.hbm [resolvable:$true] %s4465_s27 }
 0xb03   :  { %v3538_v18 = vpop.f32.mrf.mxu3 }
 0xb06   :  { %4066 = vmatpush.bf16.msra.mxu1 %v6246_v8 }
 0xb0a   :  { %4067 = vmatpush.bf16.msra.mxu1 %v6245_v21 }
 0xb0e   :  { %4068 = vmatpush.bf16.msra.mxu1 %v6244_v39 }
 0xb42   :  { %v3559_v22 = vpop.permute.xlu1 %3558 }
 0xb43   :  { %v3574_v38 = vsel %vm1187_vm0, %v3552_v27, %v3559_v22  ;;  %v6243_v22 = vld [vmem:[#allocation16 + $0xe0] sm:$0xff] }
 0xb44   :  { %3788 = vmatmul.bf16.vlgmr.msrb.gmra.mxu0 %v3574_v38  ;;  %3816 = vmatmul.bf16.vlgmr.msra.gmra.mxu2 %v3574_v38 }
 0xb45   :  { %4069 = vmatpush.bf16.msra.mxu1 %v6243_v22 }
 0xb47   :  { %v3498_v14 = vpop.f32.mrf.mxu1 }
 0xb48   :  { %v3545_v9 = vpack.c.bf16 %v3498_v14, %v3498_v14  ;;  %v6233_v14 = vld [vmem:[#allocation16 + $0x90] sm:$0xff] }
 0xb49   :  { %4070 = vmatpush.bf16.msra.mxu1 %v6242_v54 }
 0xb4a   :  { %v3563_v28 = vunpack.c.l.b16 %v3545_v9 }
 0xb4c   :  { %v3564_v31 = vpack.c.b16 %v3563_v28, %v3562_v29 }
 0xb4d   :  { %4071 = vmatpush.bf16.msra.mxu1 %v6241_v33 }
 0xb4f   :  { %v3500_v27 = vpop.f32.mrf.mxu1 }
 0xb51   :  { %4072 = vmatpush.bf16.msra.mxu1 %v6240_v19 }
 0xb55   :  { %4073 = vmatpush.bf16.msra.mxu1 %v6239_v26 }
 0xb74   :  { %v3571_v18 = vpop.permute.xlu0 %3570 }
 0xb75   :  { %v3578_v34 = vsel %vm1187_vm0, %v3564_v31, %v3571_v18  ;;  %v5856_v18 = vld [vmem:[#allocation19 + $0xf0] sm:$0xf] }
 0xb76   :  { %3802 = vmatmul.bf16.vlgmr.msrb.gmra.mxu1 %v3578_v34  ;;  %3830 = vmatmul.bf16.vlgmr.msra.gmra.mxu3 %v3578_v34  ;;  %v6262_v34 = vld [vmem:[#allocation19 + $0xf4] sm:$0xf0] }
 0xbc1   :  { %v3789_v37 = vpop.f32.mrf.mxu0 }
 0xbc2   :  { %v3790_v41 = vadd.f32 %v3789_v37, %v3616_v36  ;;  %v6261_v37 = vld [vmem:[#allocation19 + $0xf4] sm:$0xf] }
 0xbc7   :  { %v3817_v40 = vpop.f32.mrf.mxu2 }
 0xbc8   :  { %v3818_v30 = vadd.f32 %v3817_v40, %v3617_v63  ;;  %v5858_v40 = vld [vmem:[#allocation19 + $0xf8] sm:$0xf0] }
 0xbc9   :  { %v3791_v44 = vpop.f32.mrf.mxu0 }
 0xbca   :  { %v3792_v49 = vadd.f32 %v3791_v44, %v3616_v36  ;;  %v5857_v36 = vor.u32 %v6262_v34, %v5856_v18  ;;  %v6254_v18 = vld [vmem:[#allocation19 + $0xb4] sm:$0xf0]  ;;  %v6253_v34 = vld [vmem:[#allocation19 + $0xb4] sm:$0xf] }
 0xbcc   :  { %4187 = vmatpush.bf16.msrb.mxu2 %v5857_v36  ;;  %v5826_v36 = vld [vmem:[#allocation19 + $0xb8] sm:$0xf0] }
 0xbcf   :  { %v3819_v48 = vpop.f32.mrf.mxu2 }
 0xbd0   :  { %v3820_v53 = vadd.f32 %v3819_v48, %v3617_v63  ;;  %v5861_v63 = vor.u32 %v6261_v37, %v5858_v40  ;;  %v5829_v37 = vor.u32 %v6253_v34, %v5826_v36  ;;  %v5816_v40 = vld [vmem:[#allocation19 + $0xa0] sm:$0xf]  ;;  %v6275_v36 = vld [vmem:[#allocation22 + $0x60] sm:$0xff] }
 0xbd2   :  { %4201 = vmatpush.bf16.msrb.mxu3 %v5861_v63 }
 0xbf3   :  { %v3803_v61 = vpop.f32.mrf.mxu1 }
 0xbf4   :  { %v3804_v4 = vadd.f32 %v3803_v61, %v3790_v41  ;;  %v5848_v61 = vld [vmem:[#allocation19 + $0xe0] sm:$0xf] }
 0xbf6   :  { %v7334_v43 = vadd.f32 %v3804_v4, %v7196_v16  ;;  %v6260_v4 = vld [vmem:[#allocation19 + $0xe4] sm:$0xf0] }
 0xbf8   :  { %v3852_v11 = vmul.f32 %v7334_v43, %v7334_v43 }
 0xbf9   :  { %v3831_v42 = vpop.f32.mrf.mxu3 }
 0xbfa   :  { %v3832_v5 = vadd.f32 %v3831_v42, %v3818_v30  ;;  %v6259_v30 = vld [vmem:[#allocation19 + $0xe4] sm:$0xf]  ;;  %v5850_v42 = vld [vmem:[#allocation19 + $0xe8] sm:$0xf0] }
 0xbfb   :  { %v3805_v62 = vpop.f32.mrf.mxu1  ;;  %v5853_v48 = vor.u32 %v6259_v30, %v5850_v42  ;;  %v5808_v42 = vld [vmem:[#allocation19 + $0x90] sm:$0xf] }
 0xbfc   :  { %v7337_v47 = vadd.f32 %v3832_v5, %v7198_v15  ;;  %v3806_v16 = vadd.f32 %v3805_v62, %v3792_v49  ;;  %v5849_v5 = vor.u32 %v6260_v4, %v5848_v61  ;;  %v5840_v62 = vld [vmem:[#allocation19 + $0xd0] sm:$0xf]  ;;  %v6258_v49 = vld [vmem:[#allocation19 + $0xd4] sm:$0xf0]  ;;  %v6252_v61 = vld [vmem:[#allocation19 + $0xa4] sm:$0xf0] }
 0xbfd   :  { %4202 = vmatpush.bf16.msrb.mxu3 %v5853_v48  ;;  %v5817_v63 = vor.u32 %v6252_v61, %v5816_v40  ;;  %v5818_v4 = vld [vmem:[#allocation19 + $0xa8] sm:$0xf0] }
 0xbfe   :  { %v3844_v50 = vadd.f32 %v7337_v47, %v7334_v43  ;;  %v3853_v52 = vmul.f32 %v7337_v47, %v7337_v47  ;;  %v7346_v15 = vadd.f32 %v3806_v16, %v7200_v2  ;;  %v6237_v2 = vld [vmem:[#allocation16 + $0xb0] sm:$0xff]  ;;  %4188 = vmatpush.bf16.msrb.mxu2 %v5849_v5  ;;  %v6250_v5 = vld [vmem:[#allocation19 + $0x94] sm:$0xf0] }
 0xbff   :  { %4053 = vmatpush.bf16.msra.mxu0 %v6237_v2  ;;  %v5809_v48 = vor.u32 %v6250_v5, %v5808_v42  ;;  %v6265_v5 = vld [vmem:[#allocation22 + $0x10] sm:$0xff] }
 0xc00   :  { %3845 = vadd.xlane.f32.xlu2 %v3844_v50  ;;  %v3856_v55 = vadd.f32 %v3853_v52, %v3852_v11  ;;  %v3854_v32 = vmul.f32 %v7346_v15, %v7346_v15  ;;  %v6257_v11 = vld [vmem:[#allocation19 + $0xd4] sm:$0xf]  ;;  %v5842_v52 = vld [vmem:[#allocation19 + $0xd8] sm:$0xf0] }
 0xc01   :  { %v3833_v57 = vpop.f32.mrf.mxu3  ;;  %v5845_v16 = vor.u32 %v6257_v11, %v5842_v52  ;;  %v6248_v11 = vld [vmem:[#allocation19 + $0x84] sm:$0xf0]  ;;  %v6247_v52 = vld [vmem:[#allocation19 + $0x84] sm:$0xf] }
 0xc02   :  { %v3834_v58 = vadd.f32 %v3833_v57, %v3820_v53  ;;  %3857 = vadd.xlane.f32.xlu1 %v3856_v55  ;;  %v5841_v53 = vor.u32 %v6258_v49, %v5840_v62  ;;  %v5832_v55 = vld [vmem:[#allocation19 + $0xc0] sm:$0xf]  ;;  %v6256_v57 = vld [vmem:[#allocation19 + $0xc4] sm:$0xf0]  ;;  %v5810_v62 = vld [vmem:[#allocation19 + $0x98] sm:$0xf0] }
 0xc03   :  { %4203 = vmatpush.bf16.msrb.mxu3 %v5845_v16  ;;  %v5802_v16 = vld [vmem:[#allocation19 + $0x88] sm:$0xf0] }
 0xc04   :  { %v7349_v60 = vadd.f32 %v3834_v58, %v7202_v59  ;;  %v6236_v59 = vld [vmem:[#allocation16 + $0xa8] sm:$0xff]  ;;  %4189 = vmatpush.bf16.msrb.mxu2 %v5841_v53 }
 0xc05   :  { %4054 = vmatpush.bf16.msra.mxu0 %v6236_v59  ;;  %v3841_v59 = vld [vmem:[#allocation13 + $0x2] sm:$0x3] }
 0xc06   :  { %v3847_v0 = vadd.f32 %v7349_v60, %v7346_v15  ;;  %v3855_v46 = vmul.f32 %v7349_v60, %v7349_v60  ;;  %v3900_v54 = vperm.slane %v3841_v59, 1 }
 0xc08   :  { %3848 = vadd.xlane.f32.xlu2 %v3847_v0  ;;  %v3859_v1 = vadd.f32 %v3855_v46, %v3854_v32  ;;  %v6255_v0 = vld [vmem:[#allocation19 + $0xc4] sm:$0xf]  ;;  %v5834_v46 = vld [vmem:[#allocation19 + $0xc8] sm:$0xf0]  ;;  %v5833_v32 = vor.u32 %v6256_v57, %v5832_v55  ;;  %v5805_v55 = vor.u32 %v6247_v52, %v5802_v16 }
 0xc09   :  { %4055 = vmatpush.bf16.msra.mxu0 %v6235_v10  ;;  %v5837_v56 = vor.u32 %v6255_v0, %v5834_v46  ;;  %v6307_v0 = vld [vmem:[#allocation17 + $0x1] ss:$0 sm:$0xff] }
 0xc0a   :  { %4190 = vmatpush.bf16.msrb.mxu2 %v5833_v32 }
 0xc0b   :  { %4204 = vmatpush.bf16.msrb.mxu3 %v5837_v56 }
 0xc0d   :  { %4056 = vmatpush.bf16.msra.mxu0 %v6234_v25  ;;  %v3899_v25 = vperm.slane %v3841_v59, 0 }
 0xc0f   :  { %4205 = vmatpush.bf16.msrb.mxu3 %v5829_v37 }
 0xc10   :  { %3860 = vadd.xlane.f32.xlu2 %v3859_v1 }
 0xc11   :  { %4057 = vmatpush.bf16.msra.mxu0 %v6233_v14 }
 0xc15   :  { %4058 = vmatpush.bf16.msra.mxu0 %v6232_v17 }
 0xc19   :  { %4059 = vmatpush.bf16.msra.mxu0 %v6231_v24 }
 0xc73   :  { %v3846_v20 = vpop.xlane.xlu2 %3845 }
 0xc74   :  { %v7358_v38 = vmul.f32 %v3846_v20, %v7107_v6 }
 0xc75   :  { %v3858_v45 = vpop.xlane.xlu1 %3857 }
 0xc76   :  { %v3862_v51 = vmul.f32 %v3858_v45, %v7107_v6  ;;  %v3864_v12 = vmul.f32 %v7358_v38, %v7358_v38  ;;  %v3868_v22 = vsub.f32 %v7334_v43, %v7358_v38  ;;  %v3869_v20 = vsub.f32 %v7337_v47, %v7358_v38 }
 0xc78   :  { %v3866_v13 = vsub.f32 %v3862_v51, %v3864_v12 }
 0xc7a   :  { %v3872_v3 = vadd.f32 1e-05, %v3866_v13  ;;  %v3843_v13 = vld [vmem:[#allocation14 + $0x2] sm:$0x3] }
 0xc7b   :  { %v3849_v7 = vpop.xlane.xlu2 %3848  ;;  %v3909_v17 = vperm.slane %v3843_v13, 1 }
 0xc7c   :  { %6383 = vrsqrt.f32 %v3872_v3  ;;  %v7364_v27 = vmul.f32 %v3849_v7, %v7107_v6  ;;  %vm3880_vm1 = vweird.f32 %v3872_v3  ;;  %v3908_v7 = vperm.slane %v3843_v13, 0 }
 0xc7e   :  { %v3865_v29 = vmul.f32 %v7364_v27, %v7364_v27  ;;  %v3870_v33 = vsub.f32 %v7346_v15, %v7364_v27 }
 0xc82   :  { %v6384_v9 = vpop.eup %6383 }
 0xc83   :  { %v3875_v23 = vmul.f32 %v6384_v9, %v3872_v3  ;;  %v3861_v28 = vpop.xlane.xlu2 %3860  ;;  %vm3881_vm0 = vweird.f32 %v6384_v9  ;;  %v3871_v3 = vsub.f32 %v7349_v60, %v7364_v27  ;;  %v5824_v27 = vld [vmem:[#allocation19 + $0xb0] sm:$0xf] }
 0xc84   :  { %v3863_v31 = vmul.f32 %v3861_v28, %v7107_v6  ;;  %vm3882_vm2 = vmor %vm3880_vm1, %vm3881_vm0 }
 0xc85   :  { %v3876_v35 = vmul.f32 %v6384_v9, %v3875_v23 }
 0xc86   :  { %v3867_v41 = vsub.f32 %v3863_v31, %v3865_v29 }
 0xc87   :  { %v3877_v50 = vmul.f32 0.5, %v3876_v35  ;;  %v5825_v35 = vor.u32 %v6254_v18, %v5824_v27  ;;  %v6277_v27 = vld [vmem:[#allocation22 + $0x70] sm:$0xff]  ;;  %v6276_v18 = vld [vmem:[#allocation22 + $0x68] sm:$0xff] }
 0xc88   :  { %v3873_v44 = vadd.f32 1e-05, %v3867_v41  ;;  %v6251_v41 = vld [vmem:[#allocation19 + $0xa4] sm:$0xf] }
 0xc89   :  { %v3878_v58 = vsub.f32 1.5, %v3877_v50  ;;  %4191 = vmatpush.bf16.msrb.mxu2 %v5825_v35  ;;  %v5821_v30 = vor.u32 %v6251_v41, %v5818_v4  ;;  %v5800_v50 = vld [vmem:[#allocation19 + $0x80] sm:$0xf]  ;;  %v6267_v35 = vld [vmem:[#allocation22 + $0x20] sm:$0xff] }
 0xc8a   :  { %6385 = vrsqrt.f32 %v3873_v44  ;;  %vm3890_vm4 = vweird.f32 %v3873_v44  ;;  %v5801_v53 = vor.u32 %v6248_v11, %v5800_v50  ;;  %v6274_v4 = vld [vmem:[#allocation22 + $0x58] sm:$0xff]  ;;  %v6263_v50 = vld [vmem:[#allocation22] sm:$0xff] }
 0xc8b   :  { %v3879_v8 = vmul.f32 %v6384_v9, %v3878_v58  ;;  %4206 = vmatpush.bf16.msrb.mxu3 %v5821_v30  ;;  %v6271_v11 = vld [vmem:[#allocation22 + $0x40] sm:$0xff] }
 0xc8d   :  { %v3883_v39 = vsel %vm3882_vm2, %v6384_v9, %v3879_v8  ;;  %4192 = vmatpush.bf16.msrb.mxu2 %v5817_v63  ;;  %v6266_v63 = vld [vmem:[#allocation22 + $0x18] sm:$0xff] }
 0xc8e   :  { %v3894_v51 = vmul.f32 %v3883_v39, %v3868_v22  ;;  %v3895_v12 = vmul.f32 %v3883_v39, %v3869_v20 }
 0xc90   :  { %v6386_v1 = vpop.eup %6385  ;;  %v3903_v47 = vmul.f32 %v3899_v25, %v3894_v51  ;;  %v3904_v38 = vmul.f32 %v3900_v54, %v3895_v12 }
 0xc91   :  { %v3885_v2 = vmul.f32 %v6386_v1, %v3873_v44  ;;  %vm3891_vm3 = vweird.f32 %v6386_v1  ;;  %v6249_v44 = vld [vmem:[#allocation19 + $0x94] sm:$0xf]  ;;  %4193 = vmatpush.bf16.msrb.mxu2 %v5809_v48 }
 0xc92   :  { %vm3892_vm5 = vmor %vm3890_vm4, %vm3891_vm3  ;;  %v3912_v23 = vadd.f32 %v3908_v7, %v3903_v47  ;;  %v3913_v29 = vadd.f32 %v3909_v17, %v3904_v38  ;;  %v5813_v49 = vor.u32 %v6249_v44, %v5810_v62  ;;  %v6273_v44 = vld [vmem:[#allocation22 + $0x50] sm:$0xff]  ;;  %v6264_v62 = vld [vmem:[#allocation22 + $0x8] sm:$0xff] }
 0xc93   :  { %v3886_v21 = vmul.f32 %v6386_v1, %v3885_v2 }
 0xc94   :  { %4207 = vmatpush.bf16.msrb.mxu3 %v5813_v49  ;;  %v6272_v49 = vld [vmem:[#allocation22 + $0x48] sm:$0xff] }
 0xc95   :  { %v3887_v10 = vmul.f32 0.5, %v3886_v21  ;;  %4194 = vmatpush.bf16.msrb.mxu2 %v5801_v53 }
 0xc97   :  { %v3888_v45 = vsub.f32 1.5, %v3887_v10  ;;  %v5797_v10 = vld [vmem:[%s7440_s12 + $0x2] sm:$0x3] }
 0xc98   :  { %4208 = vmatpush.bf16.msrb.mxu3 %v5805_v55  ;;  %v4103_v22 = vperm.slane %v5797_v10, 0  ;;  %v4104_v20 = vperm.slane %v5797_v10, 1 }
 0xc99   :  { %v3889_v14 = vmul.f32 %v6386_v1, %v3888_v45 }
 0xc9b   :  { %v3893_v43 = vsel %vm3892_vm5, %v6386_v1, %v3889_v14 }
 0xc9c   :  { %v3896_v19 = vmul.f32 %v3893_v43, %v3870_v33  ;;  %v3897_v24 = vmul.f32 %v3893_v43, %v3871_v3 }
 0xc9e   :  { %v3905_v26 = vmul.f32 %v3899_v25, %v3896_v19  ;;  %v3906_v9 = vmul.f32 %v3900_v54, %v3897_v24 }
 0xca0   :  { %v7377_v28 = vadd.f32 %v3908_v7, %v3905_v26  ;;  %v7379_v31 = vadd.f32 %v3909_v17, %v3906_v9 }
 0xca2   :  { %v3916_v15 = vpack.c.bf16 %v7377_v28, %v3912_v23  ;;  %v3917_v60 = vpack.c.bf16 %v7379_v31, %v3913_v29 }
 0xca4   :  { %4060 = vmatmul.bf16.vlgmr.msra.gmra.mxu0 %v3916_v15  ;;  %4074 = vmatmul.bf16.vlgmr.msra.gmra.mxu1 %v3917_v60  ;;  %v6270_v15 = vld [vmem:[#allocation22 + $0x38] sm:$0xff] }
 0xca5   :  { %v6278_v60 = vld [vmem:[#allocation22 + $0x78] sm:$0xff]  ;;  %4429 = vmatpush.bf16.msrb.mxu0 %v6270_v15 }
 0xca6   :  { %4443 = vmatpush.bf16.msrb.mxu1 %v6278_v60 }
 0xcaa   :  { %4444 = vmatpush.bf16.msrb.mxu1 %v6277_v27 }
 0xcae   :  { %4445 = vmatpush.bf16.msrb.mxu1 %v6276_v18 }
 0xcb2   :  { %4446 = vmatpush.bf16.msrb.mxu1 %v6275_v36 }
 0xcb6   :  { %4447 = vmatpush.bf16.msrb.mxu1 %v6274_v4 }
 0xcba   :  { %4448 = vmatpush.bf16.msrb.mxu1 %v6273_v44 }
 0xcbe   :  { %4449 = vmatpush.bf16.msrb.mxu1 %v6272_v49 }
 0xcc2   :  { %4450 = vmatpush.bf16.msrb.mxu1 %v6271_v11 }
 0xd21   :  { %v4061_v57 = vpop.f32.mrf.mxu0  ;;  %v4075_v58 = vpop.f32.mrf.mxu1 }
 0xd22   :  { %v4062_v46 = vadd.f32 %v6307_v0, %v4061_v57 }
 0xd24   :  { %v4076_v1 = vadd.f32 %v4075_v58, %v4062_v46 }
 0xd26   :  { %v4080_v21 = vmax.f32 %v4076_v1, 0.0 }
 0xd29   :  { %v4063_v32 = vpop.f32.mrf.mxu0  ;;  %v4077_v8 = vpop.f32.mrf.mxu1 }
 0xd2a   :  { %v4064_v56 = vadd.f32 %v6307_v0, %v4063_v32 }
 0xd2c   :  { %v4078_v2 = vadd.f32 %v4077_v8, %v4064_v56 }
 0xd2e   :  { %v4081_v59 = vmax.f32 %v4078_v2, 0.0 }
 0xd30   :  { %v4082_v39 = vpack.c.bf16 %v4081_v59, %v4080_v21 }
 0xd32   :  { %4195 = vmatmul.bf16.vlgmr.msrb.gmra.mxu2 %v4082_v39  ;;  %4209 = vmatmul.bf16.vlgmr.msrb.gmra.mxu3 %v4082_v39  ;;  %v5862_v39 = vld [vmem:[%s7441_s13 + $0x2] sm:$0x3] }
 0xdb5   :  { %v4196_v45 = vpop.f32.mrf.mxu2  ;;  %v4210_v25 = vpop.f32.mrf.mxu3 }
 0xdb6   :  { %v4197_v54 = vadd.f32 %v4196_v45, %v4103_v22  ;;  %v4211_v51 = vadd.f32 %v4210_v25, %v4104_v20  ;;  %v4278_v25 = vperm.slane %v5862_v39, 0 }
 0xdb8   :  { %v7386_v12 = vadd.f32 %v4197_v54, %v3912_v23  ;;  %v7388_v13 = vadd.f32 %v4211_v51, %v3913_v29  ;;  %v4279_v54 = vperm.slane %v5862_v39, 1 }
 0xdba   :  { %v4223_v14 = vadd.f32 %v7388_v13, %v7386_v12  ;;  %v4231_v33 = vmul.f32 %v7386_v12, %v7386_v12  ;;  %v4232_v3 = vmul.f32 %v7388_v13, %v7388_v13 }
 0xdbc   :  { %4224 = vadd.xlane.f32.xlu0 %v4223_v14  ;;  %v4235_v43 = vadd.f32 %v4232_v3, %v4231_v33  ;;  %v4222_v33 = vld [vmem:[#allocation20 + $0x2] sm:$0x3] }
 0xdbd   :  { %v4198_v7 = vpop.f32.mrf.mxu2  ;;  %v4212_v17 = vpop.f32.mrf.mxu3 }
 0xdbe   :  { %v4199_v47 = vadd.f32 %v4198_v7, %v4103_v22  ;;  %v4213_v38 = vadd.f32 %v4212_v17, %v4104_v20  ;;  %4236 = vadd.xlane.f32.xlu2 %v4235_v43 }
 0xdc0   :  { %v7397_v19 = vadd.f32 %v4199_v47, %v7377_v28  ;;  %v7400_v24 = vadd.f32 %v4213_v38, %v7379_v31  ;;  %v6269_v28 = vld [vmem:[#allocation22 + $0x30] sm:$0xff]  ;;  %v6268_v31 = vld [vmem:[#allocation22 + $0x28] sm:$0xff]  ;;  %v4287_v47 = vperm.slane %v4222_v33, 0  ;;  %v4288_v38 = vperm.slane %v4222_v33, 1 }
 0xdc1   :  { %4430 = vmatpush.bf16.msrb.mxu0 %v6269_v28 }
 0xdc2   :  { %v4226_v26 = vadd.f32 %v7400_v24, %v7397_v19  ;;  %v4233_v9 = vmul.f32 %v7397_v19, %v7397_v19  ;;  %v4234_v23 = vmul.f32 %v7400_v24, %v7400_v24 }
 0xdc4   :  { %v4238_v29 = vadd.f32 %v4234_v23, %v4233_v9 }
 0xdc5   :  { %4431 = vmatpush.bf16.msrb.mxu0 %v6268_v31 }
 0xdc6   :  { %4227 = vadd.xlane.f32.xlu2 %v4226_v26 }
 0xdc9   :  { %4432 = vmatpush.bf16.msrb.mxu0 %v6267_v35 }
 0xdcd   :  { %4433 = vmatpush.bf16.msrb.mxu0 %v6266_v63 }
 0xdce   :  { %4239 = vadd.xlane.f32.xlu2 %v4238_v29 }
 0xdd1   :  { %4434 = vmatpush.bf16.msrb.mxu0 %v6265_v5 }
 0xdd5   :  { %4435 = vmatpush.bf16.msrb.mxu0 %v6264_v62 }
 0xdd9   :  { %4436 = vmatpush.bf16.msrb.mxu0 %v6263_v50 }
 0xe2f   :  { %v4225_v34 = vpop.xlane.xlu0 %4224 }
 0xe30   :  { %v4229_v37 = vmul.f32 %v4225_v34, %v7107_v6 }
 0xe31   :  { %v4237_v40 = vpop.xlane.xlu2 %4236 }
 0xe32   :  { %v4241_v61 = vmul.f32 %v4237_v40, %v7107_v6  ;;  %v4243_v41 = vmul.f32 %v4229_v37, %v4229_v37  ;;  %v4248_v20 = vsub.f32 %v7388_v13, %v4229_v37 }
 0xe34   :  { %v4245_v30 = vsub.f32 %v4241_v61, %v4243_v41 }
 0xe36   :  { %v4251_v42 = vadd.f32 1e-05, %v4245_v30 }
 0xe38   :  { %6387 = vrsqrt.f32 %v4251_v42  ;;  %vm4259_vm7 = vweird.f32 %v4251_v42 }
 0xe39   :  { %v4228_v48 = vpop.xlane.xlu2 %4227 }
 0xe3a   :  { %v4230_v53 = vmul.f32 %v4228_v48, %v7107_v6 }
 0xe3c   :  { %v4244_v57 = vmul.f32 %v4230_v53, %v4230_v53  ;;  %v4249_v43 = vsub.f32 %v7397_v19, %v4230_v53  ;;  %v4250_v7 = vsub.f32 %v7400_v24, %v4230_v53  ;;  %v6308_v19 = vld [vmem:[%s7444_s16] ss:$0 sm:$0xff] }
 0xe3e   :  { %v6388_v52 = vpop.eup %6387 }
 0xe3f   :  { %v4254_v16 = vmul.f32 %v6388_v52, %v4251_v42  ;;  %vm4260_vm6 = vweird.f32 %v6388_v52 }
 0xe40   :  { %vm4261_vm8 = vmor %vm4259_vm7, %vm4260_vm6 }
 0xe41   :  { %v4240_v55 = vpop.xlane.xlu2 %4239  ;;  %v4255_v0 = vmul.f32 %v6388_v52, %v4254_v16 }
 0xe42   :  { %v4242_v58 = vmul.f32 %v4240_v55, %v7107_v6  ;;  %v4247_v6 = vsub.f32 %v7386_v12, %v4229_v37 }
 0xe43   :  { %v4256_v1 = vmul.f32 0.5, %v4255_v0 }
 0xe44   :  { %v4246_v46 = vsub.f32 %v4242_v58, %v4244_v57 }
 0xe45   :  { %v4257_v56 = vsub.f32 1.5, %v4256_v1 }
 0xe46   :  { %v4252_v32 = vadd.f32 1e-05, %v4246_v46 }
 0xe47   :  { %v4258_v2 = vmul.f32 %v6388_v52, %v4257_v56 }
 0xe48   :  { %6389 = vrsqrt.f32 %v4252_v32  ;;  %vm4269_vm10 = vweird.f32 %v4252_v32 }
 0xe49   :  { %v4262_v10 = vsel %vm4261_vm8, %v6388_v52, %v4258_v2 }
 0xe4a   :  { %v4273_v51 = vmul.f32 %v4262_v10, %v4247_v6  ;;  %v4274_v14 = vmul.f32 %v4262_v10, %v4248_v20 }
 0xe4c   :  { %v4282_v12 = vmul.f32 %v4278_v25, %v4273_v51  ;;  %v4283_v26 = vmul.f32 %v4279_v54, %v4274_v14 }
 0xe4e   :  { %v6390_v8 = vpop.eup %6389  ;;  %v4291_v15 = vadd.f32 %v4287_v47, %v4282_v12  ;;  %v4292_v28 = vadd.f32 %v4288_v38, %v4283_v26 }
 0xe4f   :  { %v4264_v21 = vmul.f32 %v6390_v8, %v4252_v32  ;;  %vm4270_vm9 = vweird.f32 %v6390_v8 }
 0xe50   :  { %vm4271_vm11 = vmor %vm4269_vm10, %vm4270_vm9 }
 0xe51   :  { %v4265_v59 = vmul.f32 %v6390_v8, %v4264_v21 }
 0xe53   :  { %v4266_v22 = vmul.f32 0.5, %v4265_v59 }
 0xe55   :  { %v4267_v45 = vsub.f32 1.5, %v4266_v22 }
 0xe57   :  { %v4268_v3 = vmul.f32 %v6390_v8, %v4267_v45 }
 0xe59   :  { %v4272_v17 = vsel %vm4271_vm11, %v6390_v8, %v4268_v3 }
 0xe5a   :  { %v4275_v13 = vmul.f32 %v4272_v17, %v4249_v43  ;;  %v4276_v9 = vmul.f32 %v4272_v17, %v4250_v7 }
 0xe5c   :  { %v4284_v23 = vmul.f32 %v4278_v25, %v4275_v13  ;;  %v4285_v29 = vmul.f32 %v4279_v54, %v4276_v9 }
 0xe5e   :  { %v4293_v60 = vadd.f32 %v4287_v47, %v4284_v23  ;;  %v4294_v27 = vadd.f32 %v4288_v38, %v4285_v29 }
 0xe60   :  { %v4295_v31 = vpack.c.bf16 %v4293_v60, %v4291_v15  ;;  %v4296_v18 = vpack.c.bf16 %v4294_v27, %v4292_v28 }
 0xe62   :  { %4437 = vmatmul.bf16.vlgmr.msrb.gmra.mxu0 %v4295_v31  ;;  %4451 = vmatmul.bf16.vlgmr.msrb.gmra.mxu1 %v4296_v18 }
 0xedf   :  { %v4438_v24 = vpop.f32.mrf.mxu0  ;;  %v4452_v34 = vpop.f32.mrf.mxu1 }
 0xee0   :  { %v4439_v35 = vadd.f32 %v6308_v19, %v4438_v24 }
 0xee2   :  { %v4453_v36 = vadd.f32 %v4452_v34, %v4439_v35 }
 0xee4   :  { %4457 = vst [vmem:[#allocation23] sm:$0xff] %v4453_v36 }
 0xee7   :  { %v4440_v37 = vpop.f32.mrf.mxu0  ;;  %v4454_v61 = vpop.f32.mrf.mxu1 }
 0xee8   :  { %v4441_v40 = vadd.f32 %v6308_v19, %v4440_v37 }
 0xeea   :  { %v4455_v41 = vadd.f32 %v4454_v61, %v4441_v40 }
 0xeec   :  { %4458 = vst [vmem:[#allocation23 + $0x8] sm:$0xff] %v4455_v41 }
 0xeed   :  { %4471 = dma.vmem_to_hbm [thread:$0]  %s4464_s7, 256, %s4466_s27, [#allocation4], %s7452_s22, %s7452_s22, %s6745_s1  }
 0xeee   :  { %6741 = dma.done.wait [#allocation4], 256  }
 0xeef   :  { %6742 = vsyncadd [#allocation4], 4294967040 }
 0xef0   :  { %4476 = vsyncpa [#allocation3], 1 }
 0xef1   :  { %4477 = vsyncpa [#allocation6], 1 }
 0xef2   :  { %4478 = vsyncpa [#allocation9], 1 }
 0xef3   :  { %4479 = vsyncpa [#allocation12], 1 }
 0xef4   :  { %4480 = vsyncpa [#allocation15], 1 }
 0xef5   :  { %4481 = vsyncpa [#allocation18], 1 }
 0xef6   :  { %4482 = vsyncpa [#allocation21], 1 }
 0xef7   :  { %4483 = vsyncpa [#allocation4], 1 }

</bundles_post_ra>
